<compile_context>
chip_gen: v7x
topology: tpu7x:2x2x1
jax: 0.10.0
libtpu: 0.0.40
codegen_flags: <defaults>
</compile_context>

<pallas_src>
import functools

import jax
import jax.numpy as jnp
from jax import lax
from jax.experimental import pallas as pl
from jax.experimental.pallas import tpu as pltpu


# ---------------------------------------------------------------------------
# Helpers
# ---------------------------------------------------------------------------
def _round_up(x, m):
    return ((x + m - 1) // m) * m


def _largest_divisor_leq(n, cap):
    d = min(cap, n)
    while n % d:
        d -= 1
    return d


def _build_halo_slabs(x_nhwc, th):
    """(N,H,W,C) -> (N*T, th+2, W+2, C) row slabs incl. spatial halo (glue)."""
    N, H, W, C = x_nhwc.shape
    T = H // th
    xp = jnp.pad(x_nhwc, ((0, 0), (1, 1), (1, 1), (0, 0)))          # zero pad
    slabs = jnp.stack([xp[:, t * th: t * th + th + 2] for t in range(T)], axis=1)
    return slabs.reshape(N * T, th + 2, W + 2, C)


# ---------------------------------------------------------------------------
# Kernels
# ---------------------------------------------------------------------------
def _conv3x3_stats_kernel(x_ref, w_ref, y_ref, s_ref, ss_ref, *, th, W):
    """3x3 SAME conv on one row-tile (in-VMEM im2col as 9 matmuls) + partial
    per-channel sum / sum-of-squares for the two-pass BatchNorm."""
    # x_ref: (1, th+2, W+2, Cin)  (bf16)   w_ref: (3, 3, Cin, Cp)  (bf16)
    # y_ref: (th*W, Cp) f32   s_ref/ss_ref: (1, 1, Cp) f32
    x = x_ref[...][0].astype(jnp.float32)     # f32 for robust slicing/reshape
    w = w_ref[...]                            # (3, 3, Cin, Cp)
    cin = x.shape[-1]
    cp = y_ref.shape[-1]

    acc = jnp.zeros((th * W, cp), jnp.float32)
    for kh in range(3):
        for kw in range(3):
            patch = x[kh:kh + th, kw:kw + W, :].reshape(th * W, cin)
            patch = patch.astype(w.dtype)     # bf16 operand for the MXU
            acc = acc + jnp.dot(patch, w[kh, kw],
                                preferred_element_type=jnp.float32)

    y_ref[...] = acc
    s_ref[...] = jnp.sum(acc, axis=0, keepdims=True)[None]
    ss_ref[...] = jnp.sum(acc * acc, axis=0, keepdims=True)[None]


def _bn_relu_kernel(y_ref, scale_ref, shift_ref, o_ref):
    """Fused BatchNorm affine (precomputed scale/shift) + ReLU on one tile."""
    o = jnp.maximum(y_ref[...] * scale_ref[...] + shift_ref[...], 0.0)
    o_ref[...] = o.astype(o_ref.dtype)


# ---------------------------------------------------------------------------
# pallas_call wrappers
# ---------------------------------------------------------------------------
def _conv3x3_stats(slabs, w_p, *, th, W):
    NT, thp2, Wp2, Cin = slabs.shape
    Cp = w_p.shape[-1]
    M = NT * th * W
    kernel = functools.partial(_conv3x3_stats_kernel, th=th, W=W)
    return pl.pallas_call(
        kernel,
        out_shape=(
            jax.ShapeDtypeStruct((M, Cp), jnp.float32),     # conv output
            jax.ShapeDtypeStruct((NT, 1, Cp), jnp.float32),  # partial sum
            jax.ShapeDtypeStruct((NT, 1, Cp), jnp.float32),  # partial sumsq
        ),
        grid=(NT,),
        in_specs=[
            pl.BlockSpec((1, thp2, Wp2, Cin), lambda i: (i, 0, 0, 0)),
            pl.BlockSpec((3, 3, Cin, Cp), lambda i: (0, 0, 0, 0)),
        ],
        out_specs=(
            pl.BlockSpec((th * W, Cp), lambda i: (i, 0)),
            pl.BlockSpec((1, 1, Cp), lambda i: (i, 0, 0)),
            pl.BlockSpec((1, 1, Cp), lambda i: (i, 0, 0)),
        ),
        compiler_params=pltpu.CompilerParams(
            dimension_semantics=("parallel",)),
    )(slabs, w_p)


def _bn_relu(y, scale, shift, out_dtype, *, tm):
    M, Cp = y.shape
    return pl.pallas_call(
        _bn_relu_kernel,
        out_shape=jax.ShapeDtypeStruct((M, Cp), out_dtype),
        grid=(M // tm,),
        in_specs=[
            pl.BlockSpec((tm, Cp), lambda i: (i, 0)),
            pl.BlockSpec((1, Cp), lambda i: (0, 0)),
            pl.BlockSpec((1, Cp), lambda i: (0, 0)),
        ],
        out_specs=pl.BlockSpec((tm, Cp), lambda i: (i, 0)),
        compiler_params=pltpu.CompilerParams(
            dimension_semantics=("parallel",)),
    )(y, scale, shift)


def _finalize_bn_stats(s_parts, ss_parts, gamma_p, beta_p, count, eps):
    """Combine per-tile partials into fused per-channel scale/shift (tiny)."""
    cp = s_parts.shape[-1]
    s = jnp.sum(s_parts.reshape(-1, cp), axis=0)
    ss = jnp.sum(ss_parts.reshape(-1, cp), axis=0)
    mean = s / count
    var = jnp.maximum(ss / count - mean * mean, 0.0)   # biased variance
    scale = gamma_p * lax.rsqrt(var + eps)             # 0 for padded channels
    shift = beta_p - mean * scale
    return scale.reshape(1, cp), shift.reshape(1, cp)


# ---------------------------------------------------------------------------
# Block forward
# ---------------------------------------------------------------------------
@functools.partial(jax.jit, static_argnames=("eps", "row_tile", "compute_dtype"))
def _block_forward_nchw(x_nchw, params, *, eps=1e-5, row_tile=8,
                        compute_dtype=jnp.bfloat16):
    w1, g1, b1, w2, g2, b2 = params
    x = jnp.transpose(x_nchw, (0, 2, 3, 1))            # NCHW -> NHWC
    N, H, W, in_ch = x.shape
    out_ch = w1.shape[-1]
    Cp = _round_up(out_ch, 128)                        # lane-dense channel pad
    th = _largest_divisor_leq(H, row_tile)             # rows per conv tile
    M = N * H * W
    count = float(M)
    tm = _largest_divisor_leq(M, 1024)                 # rows per bn_relu tile

    pad_c = Cp - out_ch
    # ---- stage 1: conv1 (+stats) -> bn1+relu -------------------------------
    w1p = jnp.pad(w1, ((0, 0), (0, 0), (0, 0), (0, pad_c))).astype(compute_dtype)
    g1p = jnp.pad(g1, (0, pad_c)).astype(jnp.float32)
    b1p = jnp.pad(b1, (0, pad_c)).astype(jnp.float32)
    slabs1 = _build_halo_slabs(x.astype(compute_dtype), th)
    y1, s1, ss1 = _conv3x3_stats(slabs1, w1p, th=th, W=W)
    sc1, sh1 = _finalize_bn_stats(s1, ss1, g1p, b1p, count, eps)
    a1 = _bn_relu(y1, sc1, sh1, compute_dtype, tm=tm)  # (M, Cp) bf16

    # ---- stage 2: conv2 (+stats) -> bn2+relu -------------------------------
    w2p = jnp.pad(w2, ((0, 0), (0, 0), (0, pad_c), (0, pad_c))).astype(compute_dtype)
    g2p = jnp.pad(g2, (0, pad_c)).astype(jnp.float32)
    b2p = jnp.pad(b2, (0, pad_c)).astype(jnp.float32)
    slabs2 = _build_halo_slabs(a1.reshape(N, H, W, Cp), th)
    y2, s2, ss2 = _conv3x3_stats(slabs2, w2p, th=th, W=W)
    sc2, sh2 = _finalize_bn_stats(s2, ss2, g2p, b2p, count, eps)
    out = _bn_relu(y2, sc2, sh2, jnp.float32, tm=tm)   # (M, Cp) f32

    out = out.reshape(N, H, W, Cp)[..., :out_ch]       # drop channel padding
    return jnp.transpose(out, (0, 3, 1, 2))            # NHWC -> NCHW


class BlockPallas:
    """Mirror of the PyTorch Block, with deterministically initialized params."""

    def __init__(self, in_ch, out_ch, key, eps=1e-5, compute_dtype=jnp.bfloat16):
        k1, k2 = jax.random.split(key)
        self.in_ch, self.out_ch, self.eps = in_ch, out_ch, eps
        self.compute_dtype = compute_dtype
        # Conv weights stored in HWIO (= OIHW transposed); f32 master copies.
        self.w1 = 0.1 * jax.random.normal(k1, (3, 3, in_ch, out_ch), jnp.float32)
        self.w2 = 0.1 * jax.random.normal(k2, (3, 3, out_ch, out_ch), jnp.float32)
        # BatchNorm2d defaults: weight=1, bias=0.
        self.g1 = jnp.ones((out_ch,), jnp.float32)
        self.b1 = jnp.zeros((out_ch,), jnp.float32)
        self.g2 = jnp.ones((out_ch,), jnp.float32)
        self.b2 = jnp.zeros((out_ch,), jnp.float32)

    def __call__(self, x_nchw):
        params = (self.w1, self.g1, self.b1, self.w2, self.g2, self.b2)
        return _block_forward_nchw(x_nchw, params, eps=self.eps,
                                   compute_dtype=self.compute_dtype)


# ---------------------------------------------------------------------------
# Pure-JAX f32 reference (PyTorch semantics) for the correctness check
# ---------------------------------------------------------------------------
def _reference_block(x_nchw, blk):
    eps = blk.eps

    def conv(x, w_hwio):
        return lax.conv_general_dilated(
            x, w_hwio, window_strides=(1, 1), padding="SAME",
            dimension_numbers=("NCHW", "HWIO", "NCHW"))

    def bn_relu(y, g, b):
        mean = jnp.mean(y, axis=(0, 2, 3), keepdims=True)
        var = jnp.mean(jnp.square(y - mean), axis=(0, 2, 3), keepdims=True)
        yh = (y - mean) * lax.rsqrt(var + eps) * g.reshape(1, -1, 1, 1) \
            + b.reshape(1, -1, 1, 1)
        return jnp.maximum(yh, 0.0)

    y = bn_relu(conv(x_nchw, blk.w1), blk.g1, blk.b1)
    return bn_relu(conv(y, blk.w2), blk.g2, blk.b2)


if __name__ == "__main__":
    key = jax.random.PRNGKey(0)
    kx, kp = jax.random.split(key)

    N, in_ch, out_ch, H, W = 2, 4, 8, 16, 16
    x = jax.random.normal(kx, (N, in_ch, H, W), jnp.float32)

    block = BlockPallas(in_ch, out_ch, kp)

    out = jax.block_until_ready(block(x))
    ref = jax.block_until_ready(_reference_block(x, block))

    assert out.shape == (N, out_ch, H, W)
    assert out.dtype == jnp.float32
    # Kernel feeds the MXU bf16 operands (f32 accumulation / f32 BN stats), so
    # compare against the pure-f32 reference at bf16-operand-level tolerance.
    assert jnp.allclose(out, ref, rtol=2e-2, atol=3e-2), "mismatch vs JAX reference"

    print("KERNEL_OK")
</pallas_src>

<mosaic_0001>
module attributes {stable_mosaic.version = 11 : i64} {
  func.func @_conv3x3_stats_kernel(%arg0: i32, %arg1: memref<1x10x18x4xbf16, #tpu.memory_space<vmem>>, %arg2: memref<3x3x4x128xbf16, #tpu.memory_space<vmem>>, %arg3: memref<128x128xf32, #tpu.memory_space<vmem>>, %arg4: memref<1x1x128xf32, #tpu.memory_space<vmem>>, %arg5: memref<1x1x128xf32, #tpu.memory_space<vmem>>) attributes {dimension_semantics = [#tpu.dimension_semantics<parallel>], iteration_bounds = array<i64: 4>, scalar_prefetch = 0 : i64, scratch_operands = 0 : i64, tpu.core_type = #tpu.core_type<tc>, window_params = [{transform_indices = @transform_0, window_bounds = array<i64: 1, 10, 18, 4>}, {pipeline_mode = #tpu.pipeline_mode<synchronous>, transform_indices = @transform_1, window_bounds = array<i64: 3, 3, 4, 128>}, {transform_indices = @transform_2, window_bounds = array<i64: 128, 128>}, {transform_indices = @transform_3, window_bounds = array<i64: 1, 1, 128>}, {transform_indices = @transform_4, window_bounds = array<i64: 1, 1, 128>}]} {
    %c0 = arith.constant 0 : index
    %c0_0 = arith.constant 0 : index
    %c0_1 = arith.constant 0 : index
    %c0_2 = arith.constant 0 : index
    %0 = vector.load %arg1[%c0, %c0_0, %c0_1, %c0_2] : memref<1x10x18x4xbf16, #tpu.memory_space<vmem>>, vector<1x10x18x4xbf16>
    %1 = vector.shape_cast %0 : vector<1x10x18x4xbf16> to vector<10x18x4xbf16>
    %2 = arith.extf %1 : vector<10x18x4xbf16> to vector<10x18x4xf32>
    %c0_3 = arith.constant 0 : index
    %c0_4 = arith.constant 0 : index
    %c0_5 = arith.constant 0 : index
    %c0_6 = arith.constant 0 : index
    %3 = vector.load %arg2[%c0_3, %c0_4, %c0_5, %c0_6] : memref<3x3x4x128xbf16, #tpu.memory_space<vmem>>, vector<3x3x4x128xbf16>
    %cst = arith.constant 0.000000e+00 : f32
    %4 = vector.broadcast %cst : f32 to vector<128x128xf32>
    %5 = vector.extract_strided_slice %2 {offsets = [0, 0, 0], sizes = [8, 16, 4], strides = [1, 1, 1]} : vector<10x18x4xf32> to vector<8x16x4xf32>
    %6 = vector.shape_cast %5 : vector<8x16x4xf32> to vector<128x4xf32>
    %7 = arith.truncf %6 : vector<128x4xf32> to vector<128x4xbf16>
    %8 = vector.extract_strided_slice %3 {offsets = [0, 0, 0, 0], sizes = [1, 1, 4, 128], strides = [1, 1, 1, 1]} : vector<3x3x4x128xbf16> to vector<1x1x4x128xbf16>
    %9 = vector.shape_cast %8 : vector<1x1x4x128xbf16> to vector<4x128xbf16>
    %cst_7 = arith.constant dense<0.000000e+00> : vector<128x128xf32>
    %10 = tpu.matmul %7, %9, %cst_7 {dimension_numbers = #tpu.dot_dimension_numbers<[1], [0], [0], [1], [0, 0, 1, 1], [], []>} : vector<128x4xbf16>, vector<4x128xbf16>, vector<128x128xf32> -> vector<128x128xf32>
    %11 = arith.addf %4, %10 : vector<128x128xf32>
    %12 = vector.extract_strided_slice %2 {offsets = [0, 1, 0], sizes = [8, 16, 4], strides = [1, 1, 1]} : vector<10x18x4xf32> to vector<8x16x4xf32>
    %13 = vector.shape_cast %12 : vector<8x16x4xf32> to vector<128x4xf32>
    %14 = arith.truncf %13 : vector<128x4xf32> to vector<128x4xbf16>
    %15 = vector.extract_strided_slice %3 {offsets = [0, 1, 0, 0], sizes = [1, 1, 4, 128], strides = [1, 1, 1, 1]} : vector<3x3x4x128xbf16> to vector<1x1x4x128xbf16>
    %16 = vector.shape_cast %15 : vector<1x1x4x128xbf16> to vector<4x128xbf16>
    %cst_8 = arith.constant dense<0.000000e+00> : vector<128x128xf32>
    %17 = tpu.matmul %14, %16, %cst_8 {dimension_numbers = #tpu.dot_dimension_numbers<[1], [0], [0], [1], [0, 0, 1, 1], [], []>} : vector<128x4xbf16>, vector<4x128xbf16>, vector<128x128xf32> -> vector<128x128xf32>
    %18 = arith.addf %11, %17 : vector<128x128xf32>
    %19 = vector.extract_strided_slice %2 {offsets = [0, 2, 0], sizes = [8, 16, 4], strides = [1, 1, 1]} : vector<10x18x4xf32> to vector<8x16x4xf32>
    %20 = vector.shape_cast %19 : vector<8x16x4xf32> to vector<128x4xf32>
    %21 = arith.truncf %20 : vector<128x4xf32> to vector<128x4xbf16>
    %22 = vector.extract_strided_slice %3 {offsets = [0, 2, 0, 0], sizes = [1, 1, 4, 128], strides = [1, 1, 1, 1]} : vector<3x3x4x128xbf16> to vector<1x1x4x128xbf16>
    %23 = vector.shape_cast %22 : vector<1x1x4x128xbf16> to vector<4x128xbf16>
    %cst_9 = arith.constant dense<0.000000e+00> : vector<128x128xf32>
    %24 = tpu.matmul %21, %23, %cst_9 {dimension_numbers = #tpu.dot_dimension_numbers<[1], [0], [0], [1], [0, 0, 1, 1], [], []>} : vector<128x4xbf16>, vector<4x128xbf16>, vector<128x128xf32> -> vector<128x128xf32>
    %25 = arith.addf %18, %24 : vector<128x128xf32>
    %26 = vector.extract_strided_slice %2 {offsets = [1, 0, 0], sizes = [8, 16, 4], strides = [1, 1, 1]} : vector<10x18x4xf32> to vector<8x16x4xf32>
    %27 = vector.shape_cast %26 : vector<8x16x4xf32> to vector<128x4xf32>
    %28 = arith.truncf %27 : vector<128x4xf32> to vector<128x4xbf16>
    %29 = vector.extract_strided_slice %3 {offsets = [1, 0, 0, 0], sizes = [1, 1, 4, 128], strides = [1, 1, 1, 1]} : vector<3x3x4x128xbf16> to vector<1x1x4x128xbf16>
    %30 = vector.shape_cast %29 : vector<1x1x4x128xbf16> to vector<4x128xbf16>
    %cst_10 = arith.constant dense<0.000000e+00> : vector<128x128xf32>
    %31 = tpu.matmul %28, %30, %cst_10 {dimension_numbers = #tpu.dot_dimension_numbers<[1], [0], [0], [1], [0, 0, 1, 1], [], []>} : vector<128x4xbf16>, vector<4x128xbf16>, vector<128x128xf32> -> vector<128x128xf32>
    %32 = arith.addf %25, %31 : vector<128x128xf32>
    %33 = vector.extract_strided_slice %2 {offsets = [1, 1, 0], sizes = [8, 16, 4], strides = [1, 1, 1]} : vector<10x18x4xf32> to vector<8x16x4xf32>
    %34 = vector.shape_cast %33 : vector<8x16x4xf32> to vector<128x4xf32>
    %35 = arith.truncf %34 : vector<128x4xf32> to vector<128x4xbf16>
    %36 = vector.extract_strided_slice %3 {offsets = [1, 1, 0, 0], sizes = [1, 1, 4, 128], strides = [1, 1, 1, 1]} : vector<3x3x4x128xbf16> to vector<1x1x4x128xbf16>
    %37 = vector.shape_cast %36 : vector<1x1x4x128xbf16> to vector<4x128xbf16>
    %cst_11 = arith.constant dense<0.000000e+00> : vector<128x128xf32>
    %38 = tpu.matmul %35, %37, %cst_11 {dimension_numbers = #tpu.dot_dimension_numbers<[1], [0], [0], [1], [0, 0, 1, 1], [], []>} : vector<128x4xbf16>, vector<4x128xbf16>, vector<128x128xf32> -> vector<128x128xf32>
    %39 = arith.addf %32, %38 : vector<128x128xf32>
    %40 = vector.extract_strided_slice %2 {offsets = [1, 2, 0], sizes = [8, 16, 4], strides = [1, 1, 1]} : vector<10x18x4xf32> to vector<8x16x4xf32>
    %41 = vector.shape_cast %40 : vector<8x16x4xf32> to vector<128x4xf32>
    %42 = arith.truncf %41 : vector<128x4xf32> to vector<128x4xbf16>
    %43 = vector.extract_strided_slice %3 {offsets = [1, 2, 0, 0], sizes = [1, 1, 4, 128], strides = [1, 1, 1, 1]} : vector<3x3x4x128xbf16> to vector<1x1x4x128xbf16>
    %44 = vector.shape_cast %43 : vector<1x1x4x128xbf16> to vector<4x128xbf16>
    %cst_12 = arith.constant dense<0.000000e+00> : vector<128x128xf32>
    %45 = tpu.matmul %42, %44, %cst_12 {dimension_numbers = #tpu.dot_dimension_numbers<[1], [0], [0], [1], [0, 0, 1, 1], [], []>} : vector<128x4xbf16>, vector<4x128xbf16>, vector<128x128xf32> -> vector<128x128xf32>
    %46 = arith.addf %39, %45 : vector<128x128xf32>
    %47 = vector.extract_strided_slice %2 {offsets = [2, 0, 0], sizes = [8, 16, 4], strides = [1, 1, 1]} : vector<10x18x4xf32> to vector<8x16x4xf32>
    %48 = vector.shape_cast %47 : vector<8x16x4xf32> to vector<128x4xf32>
    %49 = arith.truncf %48 : vector<128x4xf32> to vector<128x4xbf16>
    %50 = vector.extract_strided_slice %3 {offsets = [2, 0, 0, 0], sizes = [1, 1, 4, 128], strides = [1, 1, 1, 1]} : vector<3x3x4x128xbf16> to vector<1x1x4x128xbf16>
    %51 = vector.shape_cast %50 : vector<1x1x4x128xbf16> to vector<4x128xbf16>
    %cst_13 = arith.constant dense<0.000000e+00> : vector<128x128xf32>
    %52 = tpu.matmul %49, %51, %cst_13 {dimension_numbers = #tpu.dot_dimension_numbers<[1], [0], [0], [1], [0, 0, 1, 1], [], []>} : vector<128x4xbf16>, vector<4x128xbf16>, vector<128x128xf32> -> vector<128x128xf32>
    %53 = arith.addf %46, %52 : vector<128x128xf32>
    %54 = vector.extract_strided_slice %2 {offsets = [2, 1, 0], sizes = [8, 16, 4], strides = [1, 1, 1]} : vector<10x18x4xf32> to vector<8x16x4xf32>
    %55 = vector.shape_cast %54 : vector<8x16x4xf32> to vector<128x4xf32>
    %56 = arith.truncf %55 : vector<128x4xf32> to vector<128x4xbf16>
    %57 = vector.extract_strided_slice %3 {offsets = [2, 1, 0, 0], sizes = [1, 1, 4, 128], strides = [1, 1, 1, 1]} : vector<3x3x4x128xbf16> to vector<1x1x4x128xbf16>
    %58 = vector.shape_cast %57 : vector<1x1x4x128xbf16> to vector<4x128xbf16>
    %cst_14 = arith.constant dense<0.000000e+00> : vector<128x128xf32>
    %59 = tpu.matmul %56, %58, %cst_14 {dimension_numbers = #tpu.dot_dimension_numbers<[1], [0], [0], [1], [0, 0, 1, 1], [], []>} : vector<128x4xbf16>, vector<4x128xbf16>, vector<128x128xf32> -> vector<128x128xf32>
    %60 = arith.addf %53, %59 : vector<128x128xf32>
    %61 = vector.extract_strided_slice %2 {offsets = [2, 2, 0], sizes = [8, 16, 4], strides = [1, 1, 1]} : vector<10x18x4xf32> to vector<8x16x4xf32>
    %62 = vector.shape_cast %61 : vector<8x16x4xf32> to vector<128x4xf32>
    %63 = arith.truncf %62 : vector<128x4xf32> to vector<128x4xbf16>
    %64 = vector.extract_strided_slice %3 {offsets = [2, 2, 0, 0], sizes = [1, 1, 4, 128], strides = [1, 1, 1, 1]} : vector<3x3x4x128xbf16> to vector<1x1x4x128xbf16>
    %65 = vector.shape_cast %64 : vector<1x1x4x128xbf16> to vector<4x128xbf16>
    %cst_15 = arith.constant dense<0.000000e+00> : vector<128x128xf32>
    %66 = tpu.matmul %63, %65, %cst_15 {dimension_numbers = #tpu.dot_dimension_numbers<[1], [0], [0], [1], [0, 0, 1, 1], [], []>} : vector<128x4xbf16>, vector<4x128xbf16>, vector<128x128xf32> -> vector<128x128xf32>
    %67 = arith.addf %60, %66 : vector<128x128xf32>
    %c0_16 = arith.constant 0 : index
    %c0_17 = arith.constant 0 : index
    %68 = vector.load %arg3[%c0_16, %c0_17] : memref<128x128xf32, #tpu.memory_space<vmem>>, vector<128x128xf32>
    tpu.vector_store %arg3[%c0_16, %c0_17], %67 {strides = array<i32>} : memref<128x128xf32, #tpu.memory_space<vmem>>, vector<128x128xf32>,
    %cst_18 = arith.constant dense<0.000000e+00> : vector<128xf32>
    %69 = vector.multi_reduction <add>, %67, %cst_18 [0] : vector<128x128xf32> to vector<128xf32>
    %70 = vector.shape_cast %69 : vector<128xf32> to vector<1x128xf32>
    %71 = vector.shape_cast %70 : vector<1x128xf32> to vector<1x1x128xf32>
    %c0_19 = arith.constant 0 : index
    %c0_20 = arith.constant 0 : index
    %c0_21 = arith.constant 0 : index
    %72 = vector.load %arg4[%c0_19, %c0_20, %c0_21] : memref<1x1x128xf32, #tpu.memory_space<vmem>>, vector<1x1x128xf32>
    tpu.vector_store %arg4[%c0_19, %c0_20, %c0_21], %71 {strides = array<i32>} : memref<1x1x128xf32, #tpu.memory_space<vmem>>, vector<1x1x128xf32>,
    %73 = arith.mulf %67, %67 : vector<128x128xf32>
    %cst_22 = arith.constant dense<0.000000e+00> : vector<128xf32>
    %74 = vector.multi_reduction <add>, %73, %cst_22 [0] : vector<128x128xf32> to vector<128xf32>
    %75 = vector.shape_cast %74 : vector<128xf32> to vector<1x128xf32>
    %76 = vector.shape_cast %75 : vector<1x128xf32> to vector<1x1x128xf32>
    %c0_23 = arith.constant 0 : index
    %c0_24 = arith.constant 0 : index
    %c0_25 = arith.constant 0 : index
    %77 = vector.load %arg5[%c0_23, %c0_24, %c0_25] : memref<1x1x128xf32, #tpu.memory_space<vmem>>, vector<1x1x128xf32>
    tpu.vector_store %arg5[%c0_23, %c0_24, %c0_25], %76 {strides = array<i32>} : memref<1x1x128xf32, #tpu.memory_space<vmem>>, vector<1x1x128xf32>,
    return
  }
  func.func @transform_0(%arg0: i32) -> (i32, i32, i32, i32) {
    %c0_i32 = arith.constant 0 : i32
    %c0_i32_0 = arith.constant 0 : i32
    %c0_i32_1 = arith.constant 0 : i32
    %c0_i32_2 = arith.constant 0 : i32
    return %arg0, %c0_i32, %c0_i32_0, %c0_i32_1 : i32, i32, i32, i32
  }
  func.func @transform_1(%arg0: i32) -> (i32, i32, i32, i32) {
    %c0_i32 = arith.constant 0 : i32
    %c0_i32_0 = arith.constant 0 : i32
    %c0_i32_1 = arith.constant 0 : i32
    %c0_i32_2 = arith.constant 0 : i32
    %c0_i32_3 = arith.constant 0 : i32
    return %c0_i32, %c0_i32_0, %c0_i32_1, %c0_i32_2 : i32, i32, i32, i32
  }
  func.func @transform_2(%arg0: i32) -> (i32, i32) {
    %c0_i32 = arith.constant 0 : i32
    %c0_i32_0 = arith.constant 0 : i32
    return %arg0, %c0_i32 : i32, i32
  }
  func.func @transform_3(%arg0: i32) -> (i32, i32, i32) {
    %c0_i32 = arith.constant 0 : i32
    %c0_i32_0 = arith.constant 0 : i32
    %c0_i32_1 = arith.constant 0 : i32
    return %arg0, %c0_i32, %c0_i32_0 : i32, i32, i32
  }
  func.func @transform_4(%arg0: i32) -> (i32, i32, i32) {
    %c0_i32 = arith.constant 0 : i32
    %c0_i32_0 = arith.constant 0 : i32
    %c0_i32_1 = arith.constant 0 : i32
    return %arg0, %c0_i32, %c0_i32_0 : i32, i32, i32
  }
}

module attributes {stable_mosaic.version = 11 : i64} {
  func.func @_bn_relu_kernel(%arg0: i32, %arg1: memref<512x128xf32, #tpu.memory_space<vmem>>, %arg2: memref<1x128xf32, #tpu.memory_space<vmem>>, %arg3: memref<1x128xf32, #tpu.memory_space<vmem>>, %arg4: memref<512x128xbf16, #tpu.memory_space<vmem>>) attributes {dimension_semantics = [#tpu.dimension_semantics<parallel>], iteration_bounds = array<i64: 1>, scalar_prefetch = 0 : i64, scratch_operands = 0 : i64, tpu.core_type = #tpu.core_type<tc>, window_params = [{transform_indices = @transform_0, window_bounds = array<i64: 512, 128>}, {pipeline_mode = #tpu.pipeline_mode<synchronous>, transform_indices = @transform_1, window_bounds = array<i64: 1, 128>}, {pipeline_mode = #tpu.pipeline_mode<synchronous>, transform_indices = @transform_2, window_bounds = array<i64: 1, 128>}, {transform_indices = @transform_3, window_bounds = array<i64: 512, 128>}]} {
    %c0 = arith.constant 0 : index
    %c0_0 = arith.constant 0 : index
    %0 = vector.load %arg1[%c0, %c0_0] : memref<512x128xf32, #tpu.memory_space<vmem>>, vector<512x128xf32>
    %c0_1 = arith.constant 0 : index
    %c0_2 = arith.constant 0 : index
    %1 = vector.load %arg2[%c0_1, %c0_2] : memref<1x128xf32, #tpu.memory_space<vmem>>, vector<1x128xf32>
    %2 = vector.broadcast %1 : vector<1x128xf32> to vector<512x128xf32>
    %3 = arith.mulf %0, %2 : vector<512x128xf32>
    %c0_3 = arith.constant 0 : index
    %c0_4 = arith.constant 0 : index
    %4 = vector.load %arg3[%c0_3, %c0_4] : memref<1x128xf32, #tpu.memory_space<vmem>>, vector<1x128xf32>
    %5 = vector.broadcast %4 : vector<1x128xf32> to vector<512x128xf32>
    %6 = arith.addf %3, %5 : vector<512x128xf32>
    %cst = arith.constant 0.000000e+00 : f32
    %7 = vector.broadcast %cst : f32 to vector<512x128xf32>
    %8 = arith.maximumf %6, %7 : vector<512x128xf32>
    %9 = arith.truncf %8 : vector<512x128xf32> to vector<512x128xbf16>
    %c0_5 = arith.constant 0 : index
    %c0_6 = arith.constant 0 : index
    %10 = vector.load %arg4[%c0_5, %c0_6] : memref<512x128xbf16, #tpu.memory_space<vmem>>, vector<512x128xbf16>
    tpu.vector_store %arg4[%c0_5, %c0_6], %9 {strides = array<i32>} : memref<512x128xbf16, #tpu.memory_space<vmem>>, vector<512x128xbf16>,
    return
  }
  func.func @transform_0(%arg0: i32) -> (i32, i32) {
    %c0_i32 = arith.constant 0 : i32
    %c0_i32_0 = arith.constant 0 : i32
    return %arg0, %c0_i32 : i32, i32
  }
  func.func @transform_1(%arg0: i32) -> (i32, i32) {
    %c0_i32 = arith.constant 0 : i32
    %c0_i32_0 = arith.constant 0 : i32
    %c0_i32_1 = arith.constant 0 : i32
    return %c0_i32, %c0_i32_0 : i32, i32
  }
  func.func @transform_2(%arg0: i32) -> (i32, i32) {
    %c0_i32 = arith.constant 0 : i32
    %c0_i32_0 = arith.constant 0 : i32
    %c0_i32_1 = arith.constant 0 : i32
    return %c0_i32, %c0_i32_0 : i32, i32
  }
  func.func @transform_3(%arg0: i32) -> (i32, i32) {
    %c0_i32 = arith.constant 0 : i32
    %c0_i32_0 = arith.constant 0 : i32
    return %arg0, %c0_i32 : i32, i32
  }
}

module attributes {stable_mosaic.version = 11 : i64} {
  func.func @_conv3x3_stats_kernel(%arg0: i32, %arg1: memref<1x10x18x128xbf16, #tpu.memory_space<vmem>>, %arg2: memref<3x3x128x128xbf16, #tpu.memory_space<vmem>>, %arg3: memref<128x128xf32, #tpu.memory_space<vmem>>, %arg4: memref<1x1x128xf32, #tpu.memory_space<vmem>>, %arg5: memref<1x1x128xf32, #tpu.memory_space<vmem>>) attributes {dimension_semantics = [#tpu.dimension_semantics<parallel>], iteration_bounds = array<i64: 4>, scalar_prefetch = 0 : i64, scratch_operands = 0 : i64, tpu.core_type = #tpu.core_type<tc>, window_params = [{transform_indices = @transform_0, window_bounds = array<i64: 1, 10, 18, 128>}, {pipeline_mode = #tpu.pipeline_mode<synchronous>, transform_indices = @transform_1, window_bounds = array<i64: 3, 3, 128, 128>}, {transform_indices = @transform_2, window_bounds = array<i64: 128, 128>}, {transform_indices = @transform_3, window_bounds = array<i64: 1, 1, 128>}, {transform_indices = @transform_4, window_bounds = array<i64: 1, 1, 128>}]} {
    %c0 = arith.constant 0 : index
    %c0_0 = arith.constant 0 : index
    %c0_1 = arith.constant 0 : index
    %c0_2 = arith.constant 0 : index
    %0 = vector.load %arg1[%c0, %c0_0, %c0_1, %c0_2] : memref<1x10x18x128xbf16, #tpu.memory_space<vmem>>, vector<1x10x18x128xbf16>
    %1 = vector.shape_cast %0 : vector<1x10x18x128xbf16> to vector<10x18x128xbf16>
    %2 = arith.extf %1 : vector<10x18x128xbf16> to vector<10x18x128xf32>
    %c0_3 = arith.constant 0 : index
    %c0_4 = arith.constant 0 : index
    %c0_5 = arith.constant 0 : index
    %c0_6 = arith.constant 0 : index
    %3 = vector.load %arg2[%c0_3, %c0_4, %c0_5, %c0_6] : memref<3x3x128x128xbf16, #tpu.memory_space<vmem>>, vector<3x3x128x128xbf16>
    %cst = arith.constant 0.000000e+00 : f32
    %4 = vector.broadcast %cst : f32 to vector<128x128xf32>
    %5 = vector.extract_strided_slice %2 {offsets = [0, 0, 0], sizes = [8, 16, 128], strides = [1, 1, 1]} : vector<10x18x128xf32> to vector<8x16x128xf32>
    %6 = vector.shape_cast %5 : vector<8x16x128xf32> to vector<128x128xf32>
    %7 = arith.truncf %6 : vector<128x128xf32> to vector<128x128xbf16>
    %8 = vector.extract_strided_slice %3 {offsets = [0, 0, 0, 0], sizes = [1, 1, 128, 128], strides = [1, 1, 1, 1]} : vector<3x3x128x128xbf16> to vector<1x1x128x128xbf16>
    %9 = vector.shape_cast %8 : vector<1x1x128x128xbf16> to vector<128x128xbf16>
    %cst_7 = arith.constant dense<0.000000e+00> : vector<128x128xf32>
    %10 = tpu.matmul %7, %9, %cst_7 {dimension_numbers = #tpu.dot_dimension_numbers<[1], [0], [0], [1], [0, 0, 1, 1], [], []>} : vector<128x128xbf16>, vector<128x128xbf16>, vector<128x128xf32> -> vector<128x128xf32>
    %11 = arith.addf %4, %10 : vector<128x128xf32>
    %12 = vector.extract_strided_slice %2 {offsets = [0, 1, 0], sizes = [8, 16, 128], strides = [1, 1, 1]} : vector<10x18x128xf32> to vector<8x16x128xf32>
    %13 = vector.shape_cast %12 : vector<8x16x128xf32> to vector<128x128xf32>
    %14 = arith.truncf %13 : vector<128x128xf32> to vector<128x128xbf16>
    %15 = vector.extract_strided_slice %3 {offsets = [0, 1, 0, 0], sizes = [1, 1, 128, 128], strides = [1, 1, 1, 1]} : vector<3x3x128x128xbf16> to vector<1x1x128x128xbf16>
    %16 = vector.shape_cast %15 : vector<1x1x128x128xbf16> to vector<128x128xbf16>
    %cst_8 = arith.constant dense<0.000000e+00> : vector<128x128xf32>
    %17 = tpu.matmul %14, %16, %cst_8 {dimension_numbers = #tpu.dot_dimension_numbers<[1], [0], [0], [1], [0, 0, 1, 1], [], []>} : vector<128x128xbf16>, vector<128x128xbf16>, vector<128x128xf32> -> vector<128x128xf32>
    %18 = arith.addf %11, %17 : vector<128x128xf32>
    %19 = vector.extract_strided_slice %2 {offsets = [0, 2, 0], sizes = [8, 16, 128], strides = [1, 1, 1]} : vector<10x18x128xf32> to vector<8x16x128xf32>
    %20 = vector.shape_cast %19 : vector<8x16x128xf32> to vector<128x128xf32>
    %21 = arith.truncf %20 : vector<128x128xf32> to vector<128x128xbf16>
    %22 = vector.extract_strided_slice %3 {offsets = [0, 2, 0, 0], sizes = [1, 1, 128, 128], strides = [1, 1, 1, 1]} : vector<3x3x128x128xbf16> to vector<1x1x128x128xbf16>
    %23 = vector.shape_cast %22 : vector<1x1x128x128xbf16> to vector<128x128xbf16>
    %cst_9 = arith.constant dense<0.000000e+00> : vector<128x128xf32>
    %24 = tpu.matmul %21, %23, %cst_9 {dimension_numbers = #tpu.dot_dimension_numbers<[1], [0], [0], [1], [0, 0, 1, 1], [], []>} : vector<128x128xbf16>, vector<128x128xbf16>, vector<128x128xf32> -> vector<128x128xf32>
    %25 = arith.addf %18, %24 : vector<128x128xf32>
    %26 = vector.extract_strided_slice %2 {offsets = [1, 0, 0], sizes = [8, 16, 128], strides = [1, 1, 1]} : vector<10x18x128xf32> to vector<8x16x128xf32>
    %27 = vector.shape_cast %26 : vector<8x16x128xf32> to vector<128x128xf32>
    %28 = arith.truncf %27 : vector<128x128xf32> to vector<128x128xbf16>
    %29 = vector.extract_strided_slice %3 {offsets = [1, 0, 0, 0], sizes = [1, 1, 128, 128], strides = [1, 1, 1, 1]} : vector<3x3x128x128xbf16> to vector<1x1x128x128xbf16>
    %30 = vector.shape_cast %29 : vector<1x1x128x128xbf16> to vector<128x128xbf16>
    %cst_10 = arith.constant dense<0.000000e+00> : vector<128x128xf32>
    %31 = tpu.matmul %28, %30, %cst_10 {dimension_numbers = #tpu.dot_dimension_numbers<[1], [0], [0], [1], [0, 0, 1, 1], [], []>} : vector<128x128xbf16>, vector<128x128xbf16>, vector<128x128xf32> -> vector<128x128xf32>
    %32 = arith.addf %25, %31 : vector<128x128xf32>
    %33 = vector.extract_strided_slice %2 {offsets = [1, 1, 0], sizes = [8, 16, 128], strides = [1, 1, 1]} : vector<10x18x128xf32> to vector<8x16x128xf32>
    %34 = vector.shape_cast %33 : vector<8x16x128xf32> to vector<128x128xf32>
    %35 = arith.truncf %34 : vector<128x128xf32> to vector<128x128xbf16>
    %36 = vector.extract_strided_slice %3 {offsets = [1, 1, 0, 0], sizes = [1, 1, 128, 128], strides = [1, 1, 1, 1]} : vector<3x3x128x128xbf16> to vector<1x1x128x128xbf16>
    %37 = vector.shape_cast %36 : vector<1x1x128x128xbf16> to vector<128x128xbf16>
    %cst_11 = arith.constant dense<0.000000e+00> : vector<128x128xf32>
    %38 = tpu.matmul %35, %37, %cst_11 {dimension_numbers = #tpu.dot_dimension_numbers<[1], [0], [0], [1], [0, 0, 1, 1], [], []>} : vector<128x128xbf16>, vector<128x128xbf16>, vector<128x128xf32> -> vector<128x128xf32>
    %39 = arith.addf %32, %38 : vector<128x128xf32>
    %40 = vector.extract_strided_slice %2 {offsets = [1, 2, 0], sizes = [8, 16, 128], strides = [1, 1, 1]} : vector<10x18x128xf32> to vector<8x16x128xf32>
    %41 = vector.shape_cast %40 : vector<8x16x128xf32> to vector<128x128xf32>
    %42 = arith.truncf %41 : vector<128x128xf32> to vector<128x128xbf16>
    %43 = vector.extract_strided_slice %3 {offsets = [1, 2, 0, 0], sizes = [1, 1, 128, 128], strides = [1, 1, 1, 1]} : vector<3x3x128x128xbf16> to vector<1x1x128x128xbf16>
    %44 = vector.shape_cast %43 : vector<1x1x128x128xbf16> to vector<128x128xbf16>
    %cst_12 = arith.constant dense<0.000000e+00> : vector<128x128xf32>
    %45 = tpu.matmul %42, %44, %cst_12 {dimension_numbers = #tpu.dot_dimension_numbers<[1], [0], [0], [1], [0, 0, 1, 1], [], []>} : vector<128x128xbf16>, vector<128x128xbf16>, vector<128x128xf32> -> vector<128x128xf32>
    %46 = arith.addf %39, %45 : vector<128x128xf32>
    %47 = vector.extract_strided_slice %2 {offsets = [2, 0, 0], sizes = [8, 16, 128], strides = [1, 1, 1]} : vector<10x18x128xf32> to vector<8x16x128xf32>
    %48 = vector.shape_cast %47 : vector<8x16x128xf32> to vector<128x128xf32>
    %49 = arith.truncf %48 : vector<128x128xf32> to vector<128x128xbf16>
    %50 = vector.extract_strided_slice %3 {offsets = [2, 0, 0, 0], sizes = [1, 1, 128, 128], strides = [1, 1, 1, 1]} : vector<3x3x128x128xbf16> to vector<1x1x128x128xbf16>
    %51 = vector.shape_cast %50 : vector<1x1x128x128xbf16> to vector<128x128xbf16>
    %cst_13 = arith.constant dense<0.000000e+00> : vector<128x128xf32>
    %52 = tpu.matmul %49, %51, %cst_13 {dimension_numbers = #tpu.dot_dimension_numbers<[1], [0], [0], [1], [0, 0, 1, 1], [], []>} : vector<128x128xbf16>, vector<128x128xbf16>, vector<128x128xf32> -> vector<128x128xf32>
    %53 = arith.addf %46, %52 : vector<128x128xf32>
    %54 = vector.extract_strided_slice %2 {offsets = [2, 1, 0], sizes = [8, 16, 128], strides = [1, 1, 1]} : vector<10x18x128xf32> to vector<8x16x128xf32>
    %55 = vector.shape_cast %54 : vector<8x16x128xf32> to vector<128x128xf32>
    %56 = arith.truncf %55 : vector<128x128xf32> to vector<128x128xbf16>
    %57 = vector.extract_strided_slice %3 {offsets = [2, 1, 0, 0], sizes = [1, 1, 128, 128], strides = [1, 1, 1, 1]} : vector<3x3x128x128xbf16> to vector<1x1x128x128xbf16>
    %58 = vector.shape_cast %57 : vector<1x1x128x128xbf16> to vector<128x128xbf16>
    %cst_14 = arith.constant dense<0.000000e+00> : vector<128x128xf32>
    %59 = tpu.matmul %56, %58, %cst_14 {dimension_numbers = #tpu.dot_dimension_numbers<[1], [0], [0], [1], [0, 0, 1, 1], [], []>} : vector<128x128xbf16>, vector<128x128xbf16>, vector<128x128xf32> -> vector<128x128xf32>
    %60 = arith.addf %53, %59 : vector<128x128xf32>
    %61 = vector.extract_strided_slice %2 {offsets = [2, 2, 0], sizes = [8, 16, 128], strides = [1, 1, 1]} : vector<10x18x128xf32> to vector<8x16x128xf32>
    %62 = vector.shape_cast %61 : vector<8x16x128xf32> to vector<128x128xf32>
    %63 = arith.truncf %62 : vector<128x128xf32> to vector<128x128xbf16>
    %64 = vector.extract_strided_slice %3 {offsets = [2, 2, 0, 0], sizes = [1, 1, 128, 128], strides = [1, 1, 1, 1]} : vector<3x3x128x128xbf16> to vector<1x1x128x128xbf16>
    %65 = vector.shape_cast %64 : vector<1x1x128x128xbf16> to vector<128x128xbf16>
    %cst_15 = arith.constant dense<0.000000e+00> : vector<128x128xf32>
    %66 = tpu.matmul %63, %65, %cst_15 {dimension_numbers = #tpu.dot_dimension_numbers<[1], [0], [0], [1], [0, 0, 1, 1], [], []>} : vector<128x128xbf16>, vector<128x128xbf16>, vector<128x128xf32> -> vector<128x128xf32>
    %67 = arith.addf %60, %66 : vector<128x128xf32>
    %c0_16 = arith.constant 0 : index
    %c0_17 = arith.constant 0 : index
    %68 = vector.load %arg3[%c0_16, %c0_17] : memref<128x128xf32, #tpu.memory_space<vmem>>, vector<128x128xf32>
    tpu.vector_store %arg3[%c0_16, %c0_17], %67 {strides = array<i32>} : memref<128x128xf32, #tpu.memory_space<vmem>>, vector<128x128xf32>,
    %cst_18 = arith.constant dense<0.000000e+00> : vector<128xf32>
    %69 = vector.multi_reduction <add>, %67, %cst_18 [0] : vector<128x128xf32> to vector<128xf32>
    %70 = vector.shape_cast %69 : vector<128xf32> to vector<1x128xf32>
    %71 = vector.shape_cast %70 : vector<1x128xf32> to vector<1x1x128xf32>
    %c0_19 = arith.constant 0 : index
    %c0_20 = arith.constant 0 : index
    %c0_21 = arith.constant 0 : index
    %72 = vector.load %arg4[%c0_19, %c0_20, %c0_21] : memref<1x1x128xf32, #tpu.memory_space<vmem>>, vector<1x1x128xf32>
    tpu.vector_store %arg4[%c0_19, %c0_20, %c0_21], %71 {strides = array<i32>} : memref<1x1x128xf32, #tpu.memory_space<vmem>>, vector<1x1x128xf32>,
    %73 = arith.mulf %67, %67 : vector<128x128xf32>
    %cst_22 = arith.constant dense<0.000000e+00> : vector<128xf32>
    %74 = vector.multi_reduction <add>, %73, %cst_22 [0] : vector<128x128xf32> to vector<128xf32>
    %75 = vector.shape_cast %74 : vector<128xf32> to vector<1x128xf32>
    %76 = vector.shape_cast %75 : vector<1x128xf32> to vector<1x1x128xf32>
    %c0_23 = arith.constant 0 : index
    %c0_24 = arith.constant 0 : index
    %c0_25 = arith.constant 0 : index
    %77 = vector.load %arg5[%c0_23, %c0_24, %c0_25] : memref<1x1x128xf32, #tpu.memory_space<vmem>>, vector<1x1x128xf32>
    tpu.vector_store %arg5[%c0_23, %c0_24, %c0_25], %76 {strides = array<i32>} : memref<1x1x128xf32, #tpu.memory_space<vmem>>, vector<1x1x128xf32>,
    return
  }
  func.func @transform_0(%arg0: i32) -> (i32, i32, i32, i32) {
    %c0_i32 = arith.constant 0 : i32
    %c0_i32_0 = arith.constant 0 : i32
    %c0_i32_1 = arith.constant 0 : i32
    %c0_i32_2 = arith.constant 0 : i32
    return %arg0, %c0_i32, %c0_i32_0, %c0_i32_1 : i32, i32, i32, i32
  }
  func.func @transform_1(%arg0: i32) -> (i32, i32, i32, i32) {
    %c0_i32 = arith.constant 0 : i32
    %c0_i32_0 = arith.constant 0 : i32
    %c0_i32_1 = arith.constant 0 : i32
    %c0_i32_2 = arith.constant 0 : i32
    %c0_i32_3 = arith.constant 0 : i32
    return %c0_i32, %c0_i32_0, %c0_i32_1, %c0_i32_2 : i32, i32, i32, i32
  }
  func.func @transform_2(%arg0: i32) -> (i32, i32) {
    %c0_i32 = arith.constant 0 : i32
    %c0_i32_0 = arith.constant 0 : i32
    return %arg0, %c0_i32 : i32, i32
  }
  func.func @transform_3(%arg0: i32) -> (i32, i32, i32) {
    %c0_i32 = arith.constant 0 : i32
    %c0_i32_0 = arith.constant 0 : i32
    %c0_i32_1 = arith.constant 0 : i32
    return %arg0, %c0_i32, %c0_i32_0 : i32, i32, i32
  }
  func.func @transform_4(%arg0: i32) -> (i32, i32, i32) {
    %c0_i32 = arith.constant 0 : i32
    %c0_i32_0 = arith.constant 0 : i32
    %c0_i32_1 = arith.constant 0 : i32
    return %arg0, %c0_i32, %c0_i32_0 : i32, i32, i32
  }
}

module attributes {stable_mosaic.version = 11 : i64} {
  func.func @_bn_relu_kernel(%arg0: i32, %arg1: memref<512x128xf32, #tpu.memory_space<vmem>>, %arg2: memref<1x128xf32, #tpu.memory_space<vmem>>, %arg3: memref<1x128xf32, #tpu.memory_space<vmem>>, %arg4: memref<512x128xf32, #tpu.memory_space<vmem>>) attributes {dimension_semantics = [#tpu.dimension_semantics<parallel>], iteration_bounds = array<i64: 1>, scalar_prefetch = 0 : i64, scratch_operands = 0 : i64, tpu.core_type = #tpu.core_type<tc>, window_params = [{transform_indices = @transform_0, window_bounds = array<i64: 512, 128>}, {pipeline_mode = #tpu.pipeline_mode<synchronous>, transform_indices = @transform_1, window_bounds = array<i64: 1, 128>}, {pipeline_mode = #tpu.pipeline_mode<synchronous>, transform_indices = @transform_2, window_bounds = array<i64: 1, 128>}, {transform_indices = @transform_3, window_bounds = array<i64: 512, 128>}]} {
    %c0 = arith.constant 0 : index
    %c0_0 = arith.constant 0 : index
    %0 = vector.load %arg1[%c0, %c0_0] : memref<512x128xf32, #tpu.memory_space<vmem>>, vector<512x128xf32>
    %c0_1 = arith.constant 0 : index
    %c0_2 = arith.constant 0 : index
    %1 = vector.load %arg2[%c0_1, %c0_2] : memref<1x128xf32, #tpu.memory_space<vmem>>, vector<1x128xf32>
    %2 = vector.broadcast %1 : vector<1x128xf32> to vector<512x128xf32>
    %3 = arith.mulf %0, %2 : vector<512x128xf32>
    %c0_3 = arith.constant 0 : index
    %c0_4 = arith.constant 0 : index
    %4 = vector.load %arg3[%c0_3, %c0_4] : memref<1x128xf32, #tpu.memory_space<vmem>>, vector<1x128xf32>
    %5 = vector.broadcast %4 : vector<1x128xf32> to vector<512x128xf32>
    %6 = arith.addf %3, %5 : vector<512x128xf32>
    %cst = arith.constant 0.000000e+00 : f32
    %7 = vector.broadcast %cst : f32 to vector<512x128xf32>
    %8 = arith.maximumf %6, %7 : vector<512x128xf32>
    %c0_5 = arith.constant 0 : index
    %c0_6 = arith.constant 0 : index
    %9 = vector.load %arg4[%c0_5, %c0_6] : memref<512x128xf32, #tpu.memory_space<vmem>>, vector<512x128xf32>
    tpu.vector_store %arg4[%c0_5, %c0_6], %8 {strides = array<i32>} : memref<512x128xf32, #tpu.memory_space<vmem>>, vector<512x128xf32>,
    return
  }
  func.func @transform_0(%arg0: i32) -> (i32, i32) {
    %c0_i32 = arith.constant 0 : i32
    %c0_i32_0 = arith.constant 0 : i32
    return %arg0, %c0_i32 : i32, i32
  }
  func.func @transform_1(%arg0: i32) -> (i32, i32) {
    %c0_i32 = arith.constant 0 : i32
    %c0_i32_0 = arith.constant 0 : i32
    %c0_i32_1 = arith.constant 0 : i32
    return %c0_i32, %c0_i32_0 : i32, i32
  }
  func.func @transform_2(%arg0: i32) -> (i32, i32) {
    %c0_i32 = arith.constant 0 : i32
    %c0_i32_0 = arith.constant 0 : i32
    %c0_i32_1 = arith.constant 0 : i32
    return %c0_i32, %c0_i32_0 : i32, i32
  }
  func.func @transform_3(%arg0: i32) -> (i32, i32) {
    %c0_i32 = arith.constant 0 : i32
    %c0_i32_0 = arith.constant 0 : i32
    return %arg0, %c0_i32 : i32, i32
  }
}

</mosaic_0001>

<bundles_post_ra>
// kernel: _block_forward_nchw.5
= control target key start
LH: loop header
LB: loop body
LE: loop exit
PB: predicated region body
PF: predicated region fallthrough
CT: control target
= control target key end

     0   :  { %s1375_s0 = inlined_call_operand.vmem [shape: f32[512,128], index: 0, kind: input, shape index: {}]   ;;  %s1376_s1 = inlined_call_operand.vmem [shape: f32[1,128], index: 1, kind: input, shape index: {}]   ;;  %s1377_s2 = inlined_call_operand.vmem [shape: f32[1,128], index: 2, kind: input, shape index: {}]   ;;  %s1378_s3 = inlined_call_operand.vmem [shape: bf16[512,128], index: 3, kind: output, shape index: {}]  }
   0x1   :  { %v14_v0 = vld [vmem:[%s1375_s0] sm:$0xff]  ;;  %v15_v1 = vld [vmem:[%s1375_s0 + $0x8] sm:$0xff]  ;;  %v16_v6 = vld [vmem:[%s1375_s0 + $0x10] sm:$0xff] }
   0x2   :  { %v958_v2 = vld [vmem:[%s1376_s1] ss:$0 sm:$0xff]  ;;  %v17_v7 = vld [vmem:[%s1375_s0 + $0x18] sm:$0xff]  ;;  %v19_v11 = vld [vmem:[%s1375_s0 + $0x28] sm:$0xff] }
   0x3   :  { %v85_v3 = vmul.f32 %v958_v2, %v14_v0  ;;  %v86_v4 = vmul.f32 %v958_v2, %v15_v1  ;;  %v965_v5 = vld [vmem:[%s1377_s2] ss:$0 sm:$0xff]  ;;  %v87_v8 = vmul.f32 %v958_v2, %v16_v6  ;;  %v88_v9 = vmul.f32 %v958_v2, %v17_v7  ;;  %v20_v12 = vld [vmem:[%s1375_s0 + $0x30] sm:$0xff]  ;;  %v21_v17 = vld [vmem:[%s1375_s0 + $0x38] sm:$0xff] }
   0x4   :  { %v18_v10 = vld [vmem:[%s1375_s0 + $0x20] sm:$0xff]  ;;  %v90_v16 = vmul.f32 %v958_v2, %v19_v11  ;;  %v91_v20 = vmul.f32 %v958_v2, %v20_v12  ;;  %v92_v21 = vmul.f32 %v958_v2, %v21_v17  ;;  %v23_v27 = vld [vmem:[%s1375_s0 + $0x48] sm:$0xff]  ;;  %v24_v32 = vld [vmem:[%s1375_s0 + $0x50] sm:$0xff] }
   0x5   :  { %v156_v13 = vadd.f32 %v965_v5, %v85_v3  ;;  %v157_v14 = vadd.f32 %v965_v5, %v86_v4  ;;  %v89_v15 = vmul.f32 %v958_v2, %v18_v10  ;;  %v158_v18 = vadd.f32 %v965_v5, %v87_v8  ;;  %v22_v22 = vld [vmem:[%s1375_s0 + $0x40] sm:$0xff]  ;;  %v25_v33 = vld [vmem:[%s1375_s0 + $0x58] sm:$0xff]  ;;  %v27_v39 = vld [vmem:[%s1375_s0 + $0x68] sm:$0xff] }
   0x6   :  { %v159_v19 = vadd.f32 %v965_v5, %v88_v9  ;;  %v161_v26 = vadd.f32 %v965_v5, %v90_v16  ;;  %v162_v30 = vadd.f32 %v965_v5, %v91_v20  ;;  %v163_v31 = vadd.f32 %v965_v5, %v92_v21  ;;  %v26_v38 = vld [vmem:[%s1375_s0 + $0x60] sm:$0xff]  ;;  %v28_v44 = vld [vmem:[%s1375_s0 + $0x70] sm:$0xff]  ;;  %v29_v49 = vld [vmem:[%s1375_s0 + $0x78] sm:$0xff] }
   0x7   :  { %v220_v23 = vmax.f32 %v156_v13, 0.0  ;;  %v221_v24 = vmax.f32 %v157_v14, 0.0  ;;  %v160_v25 = vadd.f32 %v965_v5, %v89_v15  ;;  %v222_v28 = vmax.f32 %v158_v18, 0.0  ;;  %v30_v54 = vld [vmem:[%s1375_s0 + $0x80] sm:$0xff]  ;;  %v31_v63 = vld [vmem:[%s1375_s0 + $0x88] sm:$0xff]  ;;  %v32_v6 = vld [vmem:[%s1375_s0 + $0x90] sm:$0xff] }
   0x8   :  { %v223_v29 = vmax.f32 %v159_v19, 0.0  ;;  %v225_v36 = vmax.f32 %v161_v26, 0.0  ;;  %v93_v37 = vmul.f32 %v958_v2, %v22_v22  ;;  %v226_v41 = vmax.f32 %v162_v30, 0.0  ;;  %v33_v7 = vld [vmem:[%s1375_s0 + $0x98] sm:$0xff]  ;;  %v34_v12 = vld [vmem:[%s1375_s0 + $0xa0] sm:$0xff]  ;;  %v35_v13 = vld [vmem:[%s1375_s0 + $0xa8] sm:$0xff] }
   0x9   :  { %v741_v34 = vpack.c.bf16 %v221_v24, %v220_v23  ;;  %v224_v35 = vmax.f32 %v160_v25, 0.0  ;;  %v227_v42 = vmax.f32 %v163_v31, 0.0  ;;  %v94_v43 = vmul.f32 %v958_v2, %v23_v27  ;;  %v36_v18 = vld [vmem:[%s1375_s0 + $0xb0] sm:$0xff]  ;;  %v37_v23 = vld [vmem:[%s1375_s0 + $0xb8] sm:$0xff] }
   0xa   :  { %v746_v40 = vpack.c.bf16 %v223_v29, %v222_v28  ;;  %v164_v46 = vadd.f32 %v965_v5, %v93_v37  ;;  %v95_v47 = vmul.f32 %v958_v2, %v24_v32  ;;  %v96_v48 = vmul.f32 %v958_v2, %v25_v33  ;;  %v38_v28 = vld [vmem:[%s1375_s0 + $0xc0] sm:$0xff]  ;;  %v39_v37 = vld [vmem:[%s1375_s0 + $0xc8] sm:$0xff] }
   0xb   :  { %742 = vst [vmem:[%s1378_s3] sm:$0xff] %v741_v34   ;;  %v751_v45 = vpack.c.bf16 %v225_v36, %v224_v35  ;;  %v756_v50 = vpack.c.bf16 %v227_v42, %v226_v41  ;;  %v165_v51 = vadd.f32 %v965_v5, %v94_v43  ;;  %v97_v52 = vmul.f32 %v958_v2, %v26_v38  ;;  %v40_v42 = vld [vmem:[%s1375_s0 + $0xd0] sm:$0xff]  ;;  %v41_v43 = vld [vmem:[%s1375_s0 + $0xd8] sm:$0xff] }
   0xc   :  { %898 = vst [vmem:[%s1378_s3 + $0x8] sm:$0xff] %v746_v40   ;;  %v98_v53 = vmul.f32 %v958_v2, %v27_v39  ;;  %v228_v55 = vmax.f32 %v164_v46, 0.0  ;;  %v166_v56 = vadd.f32 %v965_v5, %v95_v47  ;;  %v167_v57 = vadd.f32 %v965_v5, %v96_v48  ;;  %v42_v48 = vld [vmem:[%s1375_s0 + $0xe0] sm:$0xff] }
   0xd   :  { %899 = vst [vmem:[%s1378_s3 + $0x10] sm:$0xff] %v751_v45   ;;  %v99_v58 = vmul.f32 %v958_v2, %v28_v44  ;;  %900 = vst [vmem:[%s1378_s3 + $0x18] sm:$0xff] %v756_v50   ;;  %v229_v59 = vmax.f32 %v165_v51, 0.0  ;;  %v168_v60 = vadd.f32 %v965_v5, %v97_v52  ;;  %v100_v62 = vmul.f32 %v958_v2, %v29_v49  ;;  %v43_v49 = vld [vmem:[%s1375_s0 + $0xe8] sm:$0xff] }
   0xe   :  { %v169_v61 = vadd.f32 %v965_v5, %v98_v53  ;;  %v230_v0 = vmax.f32 %v166_v56, 0.0  ;;  %v231_v1 = vmax.f32 %v167_v57, 0.0  ;;  %v101_v4 = vmul.f32 %v958_v2, %v30_v54  ;;  %v44_v54 = vld [vmem:[%s1375_s0 + $0xf0] sm:$0xff] }
   0xf   :  { %v170_v3 = vadd.f32 %v965_v5, %v99_v58  ;;  %v761_v8 = vpack.c.bf16 %v229_v59, %v228_v55  ;;  %v232_v9 = vmax.f32 %v168_v60, 0.0  ;;  %v171_v11 = vadd.f32 %v965_v5, %v100_v62  ;;  %v45_v59 = vld [vmem:[%s1375_s0 + $0xf8] sm:$0xff] }
  0x10   :  { %v233_v10 = vmax.f32 %v169_v61, 0.0  ;;  %v766_v14 = vpack.c.bf16 %v231_v1, %v230_v0  ;;  %v102_v16 = vmul.f32 %v958_v2, %v31_v63  ;;  %v172_v17 = vadd.f32 %v965_v5, %v101_v4  ;;  %v46_v0 = vld [vmem:[%s1375_s0 + $0x100] sm:$0xff] }
  0x11   :  { %v234_v15 = vmax.f32 %v170_v3, 0.0  ;;  %901 = vst [vmem:[%s1378_s3 + $0x20] sm:$0xff] %v761_v8   ;;  %v235_v20 = vmax.f32 %v171_v11, 0.0  ;;  %v103_v21 = vmul.f32 %v958_v2, %v32_v6  ;;  %v104_v22 = vmul.f32 %v958_v2, %v33_v7  ;;  %v47_v11 = vld [vmem:[%s1375_s0 + $0x108] sm:$0xff] }
  0x12   :  { %v771_v19 = vpack.c.bf16 %v233_v10, %v232_v9  ;;  %902 = vst [vmem:[%s1378_s3 + $0x28] sm:$0xff] %v766_v14   ;;  %v173_v24 = vadd.f32 %v965_v5, %v102_v16  ;;  %v236_v25 = vmax.f32 %v172_v17, 0.0  ;;  %v105_v26 = vmul.f32 %v958_v2, %v34_v12  ;;  %v48_v16 = vld [vmem:[%s1375_s0 + $0x110] sm:$0xff]  ;;  %v49_v17 = vld [vmem:[%s1375_s0 + $0x118] sm:$0xff] }
  0x13   :  { %v106_v27 = vmul.f32 %v958_v2, %v35_v13  ;;  %v776_v29 = vpack.c.bf16 %v235_v20, %v234_v15  ;;  %v174_v30 = vadd.f32 %v965_v5, %v103_v21  ;;  %v175_v31 = vadd.f32 %v965_v5, %v104_v22  ;;  %v50_v22 = vld [vmem:[%s1375_s0 + $0x120] sm:$0xff] }
  0x14   :  { %903 = vst [vmem:[%s1378_s3 + $0x30] sm:$0xff] %v771_v19   ;;  %v107_v32 = vmul.f32 %v958_v2, %v36_v18  ;;  %v237_v33 = vmax.f32 %v173_v24, 0.0  ;;  %v176_v34 = vadd.f32 %v965_v5, %v105_v26  ;;  %v108_v36 = vmul.f32 %v958_v2, %v37_v23  ;;  %v51_v23 = vld [vmem:[%s1375_s0 + $0x128] sm:$0xff] }
  0x15   :  { %v177_v35 = vadd.f32 %v965_v5, %v106_v27  ;;  %904 = vst [vmem:[%s1378_s3 + $0x38] sm:$0xff] %v776_v29   ;;  %v238_v38 = vmax.f32 %v174_v30, 0.0  ;;  %v239_v39 = vmax.f32 %v175_v31, 0.0  ;;  %v109_v41 = vmul.f32 %v958_v2, %v38_v28  ;;  %v52_v28 = vld [vmem:[%s1375_s0 + $0x130] sm:$0xff] }
  0x16   :  { %v178_v40 = vadd.f32 %v965_v5, %v107_v32  ;;  %v781_v44 = vpack.c.bf16 %v237_v33, %v236_v25  ;;  %v240_v45 = vmax.f32 %v176_v34, 0.0  ;;  %v179_v47 = vadd.f32 %v965_v5, %v108_v36  ;;  %v53_v33 = vld [vmem:[%s1375_s0 + $0x138] sm:$0xff] }
  0x17   :  { %v241_v46 = vmax.f32 %v177_v35, 0.0  ;;  %v786_v50 = vpack.c.bf16 %v239_v39, %v238_v38  ;;  %v110_v52 = vmul.f32 %v958_v2, %v39_v37  ;;  %v180_v53 = vadd.f32 %v965_v5, %v109_v41  ;;  %v54_v38 = vld [vmem:[%s1375_s0 + $0x140] sm:$0xff] }
  0x18   :  { %v242_v51 = vmax.f32 %v178_v40, 0.0  ;;  %905 = vst [vmem:[%s1378_s3 + $0x40] sm:$0xff] %v781_v44   ;;  %v243_v56 = vmax.f32 %v179_v47, 0.0  ;;  %v111_v57 = vmul.f32 %v958_v2, %v40_v42  ;;  %v112_v58 = vmul.f32 %v958_v2, %v41_v43  ;;  %v55_v47 = vld [vmem:[%s1375_s0 + $0x148] sm:$0xff] }
  0x19   :  { %v791_v55 = vpack.c.bf16 %v241_v46, %v240_v45  ;;  %906 = vst [vmem:[%s1378_s3 + $0x48] sm:$0xff] %v786_v50   ;;  %v181_v60 = vadd.f32 %v965_v5, %v110_v52  ;;  %v244_v61 = vmax.f32 %v180_v53, 0.0  ;;  %v113_v62 = vmul.f32 %v958_v2, %v42_v48  ;;  %v56_v52 = vld [vmem:[%s1375_s0 + $0x150] sm:$0xff]  ;;  %v57_v53 = vld [vmem:[%s1375_s0 + $0x158] sm:$0xff] }
  0x1a   :  { %v114_v63 = vmul.f32 %v958_v2, %v43_v49  ;;  %v796_v1 = vpack.c.bf16 %v243_v56, %v242_v51  ;;  %v182_v3 = vadd.f32 %v965_v5, %v111_v57  ;;  %v183_v4 = vadd.f32 %v965_v5, %v112_v58  ;;  %v58_v58 = vld [vmem:[%s1375_s0 + $0x160] sm:$0xff] }
  0x1b   :  { %907 = vst [vmem:[%s1378_s3 + $0x50] sm:$0xff] %v791_v55   ;;  %v115_v6 = vmul.f32 %v958_v2, %v44_v54  ;;  %v245_v7 = vmax.f32 %v181_v60, 0.0  ;;  %v184_v8 = vadd.f32 %v965_v5, %v113_v62  ;;  %v116_v10 = vmul.f32 %v958_v2, %v45_v59  ;;  %v59_v59 = vld [vmem:[%s1375_s0 + $0x168] sm:$0xff] }
  0x1c   :  { %v185_v9 = vadd.f32 %v965_v5, %v114_v63  ;;  %908 = vst [vmem:[%s1378_s3 + $0x58] sm:$0xff] %v796_v1   ;;  %v246_v12 = vmax.f32 %v182_v3, 0.0  ;;  %v247_v13 = vmax.f32 %v183_v4, 0.0  ;;  %v117_v15 = vmul.f32 %v958_v2, %v46_v0  ;;  %v60_v0 = vld [vmem:[%s1375_s0 + $0x170] sm:$0xff] }
  0x1d   :  { %v186_v14 = vadd.f32 %v965_v5, %v115_v6  ;;  %v801_v18 = vpack.c.bf16 %v245_v7, %v244_v61  ;;  %v248_v19 = vmax.f32 %v184_v8, 0.0  ;;  %v187_v21 = vadd.f32 %v965_v5, %v116_v10  ;;  %v61_v7 = vld [vmem:[%s1375_s0 + $0x178] sm:$0xff] }
  0x1e   :  { %v249_v20 = vmax.f32 %v185_v9, 0.0  ;;  %v806_v24 = vpack.c.bf16 %v247_v13, %v246_v12  ;;  %v118_v26 = vmul.f32 %v958_v2, %v47_v11  ;;  %v188_v27 = vadd.f32 %v965_v5, %v117_v15  ;;  %v62_v12 = vld [vmem:[%s1375_s0 + $0x180] sm:$0xff] }
  0x1f   :  { %v250_v25 = vmax.f32 %v186_v14, 0.0  ;;  %909 = vst [vmem:[%s1378_s3 + $0x60] sm:$0xff] %v801_v18   ;;  %v251_v30 = vmax.f32 %v187_v21, 0.0  ;;  %v119_v31 = vmul.f32 %v958_v2, %v48_v16  ;;  %v120_v32 = vmul.f32 %v958_v2, %v49_v17  ;;  %v63_v21 = vld [vmem:[%s1375_s0 + $0x188] sm:$0xff] }
  0x20   :  { %v811_v29 = vpack.c.bf16 %v249_v20, %v248_v19  ;;  %910 = vst [vmem:[%s1378_s3 + $0x68] sm:$0xff] %v806_v24   ;;  %v189_v34 = vadd.f32 %v965_v5, %v118_v26  ;;  %v252_v35 = vmax.f32 %v188_v27, 0.0  ;;  %v121_v36 = vmul.f32 %v958_v2, %v50_v22  ;;  %v64_v26 = vld [vmem:[%s1375_s0 + $0x190] sm:$0xff]  ;;  %v65_v27 = vld [vmem:[%s1375_s0 + $0x198] sm:$0xff] }
  0x21   :  { %v122_v37 = vmul.f32 %v958_v2, %v51_v23  ;;  %v816_v39 = vpack.c.bf16 %v251_v30, %v250_v25  ;;  %v190_v40 = vadd.f32 %v965_v5, %v119_v31  ;;  %v191_v41 = vadd.f32 %v965_v5, %v120_v32  ;;  %v66_v32 = vld [vmem:[%s1375_s0 + $0x1a0] sm:$0xff] }
  0x22   :  { %911 = vst [vmem:[%s1378_s3 + $0x70] sm:$0xff] %v811_v29   ;;  %v123_v42 = vmul.f32 %v958_v2, %v52_v28  ;;  %v253_v43 = vmax.f32 %v189_v34, 0.0  ;;  %v192_v44 = vadd.f32 %v965_v5, %v121_v36  ;;  %v124_v46 = vmul.f32 %v958_v2, %v53_v33  ;;  %v67_v33 = vld [vmem:[%s1375_s0 + $0x1a8] sm:$0xff] }
  0x23   :  { %v193_v45 = vadd.f32 %v965_v5, %v122_v37  ;;  %912 = vst [vmem:[%s1378_s3 + $0x78] sm:$0xff] %v816_v39   ;;  %v254_v48 = vmax.f32 %v190_v40, 0.0  ;;  %v255_v49 = vmax.f32 %v191_v41, 0.0  ;;  %v125_v51 = vmul.f32 %v958_v2, %v54_v38  ;;  %v68_v38 = vld [vmem:[%s1375_s0 + $0x1b0] sm:$0xff] }
  0x24   :  { %v194_v50 = vadd.f32 %v965_v5, %v123_v42  ;;  %v821_v54 = vpack.c.bf16 %v253_v43, %v252_v35  ;;  %v256_v55 = vmax.f32 %v192_v44, 0.0  ;;  %v195_v57 = vadd.f32 %v965_v5, %v124_v46  ;;  %v69_v43 = vld [vmem:[%s1375_s0 + $0x1b8] sm:$0xff] }
  0x25   :  { %v257_v56 = vmax.f32 %v193_v45, 0.0  ;;  %v826_v60 = vpack.c.bf16 %v255_v49, %v254_v48  ;;  %v126_v62 = vmul.f32 %v958_v2, %v55_v47  ;;  %v196_v63 = vadd.f32 %v965_v5, %v125_v51  ;;  %v70_v48 = vld [vmem:[%s1375_s0 + $0x1c0] sm:$0xff] }
  0x26   :  { %v258_v61 = vmax.f32 %v194_v50, 0.0  ;;  %913 = vst [vmem:[%s1378_s3 + $0x80] sm:$0xff] %v821_v54   ;;  %v259_v3 = vmax.f32 %v195_v57, 0.0  ;;  %v127_v4 = vmul.f32 %v958_v2, %v56_v52  ;;  %v128_v6 = vmul.f32 %v958_v2, %v57_v53  ;;  %v71_v57 = vld [vmem:[%s1375_s0 + $0x1c8] sm:$0xff] }
  0x27   :  { %v831_v1 = vpack.c.bf16 %v257_v56, %v256_v55  ;;  %914 = vst [vmem:[%s1378_s3 + $0x88] sm:$0xff] %v826_v60   ;;  %v197_v8 = vadd.f32 %v965_v5, %v126_v62  ;;  %v260_v9 = vmax.f32 %v196_v63, 0.0  ;;  %v129_v10 = vmul.f32 %v958_v2, %v58_v58  ;;  %v72_v62 = vld [vmem:[%s1375_s0 + $0x1d0] sm:$0xff]  ;;  %v73_v63 = vld [vmem:[%s1375_s0 + $0x1d8] sm:$0xff] }
  0x28   :  { %v130_v11 = vmul.f32 %v958_v2, %v59_v59  ;;  %v836_v13 = vpack.c.bf16 %v259_v3, %v258_v61  ;;  %v198_v14 = vadd.f32 %v965_v5, %v127_v4  ;;  %v199_v15 = vadd.f32 %v965_v5, %v128_v6  ;;  %v74_v6 = vld [vmem:[%s1375_s0 + $0x1e0] sm:$0xff] }
  0x29   :  { %915 = vst [vmem:[%s1378_s3 + $0x90] sm:$0xff] %v831_v1   ;;  %v131_v16 = vmul.f32 %v958_v2, %v60_v0  ;;  %v261_v17 = vmax.f32 %v197_v8, 0.0  ;;  %v200_v18 = vadd.f32 %v965_v5, %v129_v10  ;;  %v132_v20 = vmul.f32 %v958_v2, %v61_v7  ;;  %v75_v7 = vld [vmem:[%s1375_s0 + $0x1e8] sm:$0xff] }
  0x2a   :  { %v201_v19 = vadd.f32 %v965_v5, %v130_v11  ;;  %916 = vst [vmem:[%s1378_s3 + $0x98] sm:$0xff] %v836_v13   ;;  %v262_v22 = vmax.f32 %v198_v14, 0.0  ;;  %v263_v23 = vmax.f32 %v199_v15, 0.0  ;;  %v133_v25 = vmul.f32 %v958_v2, %v62_v12  ;;  %v76_v12 = vld [vmem:[%s1375_s0 + $0x1f0] sm:$0xff] }
  0x2b   :  { %v202_v24 = vadd.f32 %v965_v5, %v131_v16  ;;  %v841_v28 = vpack.c.bf16 %v261_v17, %v260_v9  ;;  %v264_v29 = vmax.f32 %v200_v18, 0.0  ;;  %v203_v31 = vadd.f32 %v965_v5, %v132_v20  ;;  %v77_v17 = vld [vmem:[%s1375_s0 + $0x1f8] sm:$0xff] }
  0x2c   :  { %v265_v30 = vmax.f32 %v201_v19, 0.0  ;;  %v846_v34 = vpack.c.bf16 %v263_v23, %v262_v22  ;;  %v134_v36 = vmul.f32 %v958_v2, %v63_v21  ;;  %v204_v37 = vadd.f32 %v965_v5, %v133_v25 }
  0x2d   :  { %v266_v35 = vmax.f32 %v202_v24, 0.0  ;;  %917 = vst [vmem:[%s1378_s3 + $0xa0] sm:$0xff] %v841_v28   ;;  %v267_v40 = vmax.f32 %v203_v31, 0.0  ;;  %v135_v41 = vmul.f32 %v958_v2, %v64_v26  ;;  %v136_v42 = vmul.f32 %v958_v2, %v65_v27 }
  0x2e   :  { %v851_v39 = vpack.c.bf16 %v265_v30, %v264_v29  ;;  %918 = vst [vmem:[%s1378_s3 + $0xa8] sm:$0xff] %v846_v34   ;;  %v205_v44 = vadd.f32 %v965_v5, %v134_v36  ;;  %v268_v45 = vmax.f32 %v204_v37, 0.0  ;;  %v137_v46 = vmul.f32 %v958_v2, %v66_v32 }
  0x2f   :  { %v138_v47 = vmul.f32 %v958_v2, %v67_v33  ;;  %v856_v49 = vpack.c.bf16 %v267_v40, %v266_v35  ;;  %v206_v50 = vadd.f32 %v965_v5, %v135_v41  ;;  %v207_v51 = vadd.f32 %v965_v5, %v136_v42 }
  0x30   :  { %919 = vst [vmem:[%s1378_s3 + $0xb0] sm:$0xff] %v851_v39   ;;  %v139_v52 = vmul.f32 %v958_v2, %v68_v38  ;;  %v269_v53 = vmax.f32 %v205_v44, 0.0  ;;  %v208_v54 = vadd.f32 %v965_v5, %v137_v46  ;;  %v140_v56 = vmul.f32 %v958_v2, %v69_v43 }
  0x31   :  { %v209_v55 = vadd.f32 %v965_v5, %v138_v47  ;;  %920 = vst [vmem:[%s1378_s3 + $0xb8] sm:$0xff] %v856_v49   ;;  %v270_v58 = vmax.f32 %v206_v50, 0.0  ;;  %v271_v59 = vmax.f32 %v207_v51, 0.0  ;;  %v141_v61 = vmul.f32 %v958_v2, %v70_v48 }
  0x32   :  { %v210_v60 = vadd.f32 %v965_v5, %v139_v52  ;;  %v861_v0 = vpack.c.bf16 %v269_v53, %v268_v45  ;;  %v272_v1 = vmax.f32 %v208_v54, 0.0  ;;  %v211_v4 = vadd.f32 %v965_v5, %v140_v56 }
  0x33   :  { %v273_v3 = vmax.f32 %v209_v55, 0.0  ;;  %v866_v8 = vpack.c.bf16 %v271_v59, %v270_v58  ;;  %v142_v10 = vmul.f32 %v958_v2, %v71_v57  ;;  %v212_v11 = vadd.f32 %v965_v5, %v141_v61 }
  0x34   :  { %v274_v9 = vmax.f32 %v210_v60, 0.0  ;;  %921 = vst [vmem:[%s1378_s3 + $0xc0] sm:$0xff] %v861_v0   ;;  %v275_v14 = vmax.f32 %v211_v4, 0.0  ;;  %v143_v15 = vmul.f32 %v958_v2, %v72_v62  ;;  %v144_v16 = vmul.f32 %v958_v2, %v73_v63 }
  0x35   :  { %v871_v13 = vpack.c.bf16 %v273_v3, %v272_v1  ;;  %922 = vst [vmem:[%s1378_s3 + $0xc8] sm:$0xff] %v866_v8   ;;  %v213_v18 = vadd.f32 %v965_v5, %v142_v10  ;;  %v276_v19 = vmax.f32 %v212_v11, 0.0  ;;  %v145_v20 = vmul.f32 %v958_v2, %v74_v6 }
  0x36   :  { %v146_v21 = vmul.f32 %v958_v2, %v75_v7  ;;  %v876_v22 = vpack.c.bf16 %v275_v14, %v274_v9  ;;  %v214_v23 = vadd.f32 %v965_v5, %v143_v15  ;;  %v215_v24 = vadd.f32 %v965_v5, %v144_v16 }
  0x37   :  { %923 = vst [vmem:[%s1378_s3 + $0xd0] sm:$0xff] %v871_v13   ;;  %v147_v25 = vmul.f32 %v958_v2, %v76_v12  ;;  %v277_v26 = vmax.f32 %v213_v18, 0.0  ;;  %v216_v27 = vadd.f32 %v965_v5, %v145_v20  ;;  %v148_v29 = vmul.f32 %v958_v2, %v77_v17 }
  0x38   :  { %v217_v28 = vadd.f32 %v965_v5, %v146_v21  ;;  %924 = vst [vmem:[%s1378_s3 + $0xd8] sm:$0xff] %v876_v22   ;;  %v278_v30 = vmax.f32 %v214_v23, 0.0  ;;  %v279_v31 = vmax.f32 %v215_v24, 0.0 }
  0x39   :  { %v218_v32 = vadd.f32 %v965_v5, %v147_v25  ;;  %v881_v33 = vpack.c.bf16 %v277_v26, %v276_v19  ;;  %v280_v34 = vmax.f32 %v216_v27, 0.0  ;;  %v219_v36 = vadd.f32 %v965_v5, %v148_v29 }
  0x3a   :  { %v281_v35 = vmax.f32 %v217_v28, 0.0  ;;  %v886_v37 = vpack.c.bf16 %v279_v31, %v278_v30 }
  0x3b   :  { %v282_v38 = vmax.f32 %v218_v32, 0.0  ;;  %925 = vst [vmem:[%s1378_s3 + $0xe0] sm:$0xff] %v881_v33   ;;  %v283_v39 = vmax.f32 %v219_v36, 0.0 }
  0x3c   :  { %v891_v2 = vpack.c.bf16 %v281_v35, %v280_v34  ;;  %926 = vst [vmem:[%s1378_s3 + $0xe8] sm:$0xff] %v886_v37  }
  0x3d   :  { %v896_v40 = vpack.c.bf16 %v283_v39, %v282_v38 }
  0x3e   :  { %927 = vst [vmem:[%s1378_s3 + $0xf0] sm:$0xff] %v891_v2  }
  0x3f   :  { %928 = vst [vmem:[%s1378_s3 + $0xf8] sm:$0xff] %v896_v40  }

// kernel: _block_forward_nchw.4
= control target key start
LH: loop header
LB: loop body
LE: loop exit
PB: predicated region body
PF: predicated region fallthrough
CT: control target
= control target key end

     0   :  { %s2311_s15 = smov 0   ;;  %s2774_s0 = inlined_call_operand.vmem [shape: bf16[4,10,18,4], index: 0, kind: input, shape index: {}]   ;;  %s2775_s1 = inlined_call_operand.vmem [shape: bf16[3,3,4,128], index: 1, kind: input, shape index: {}]   ;;  %s2776_s2 = inlined_call_operand.vmem [shape: f32[512,128], index: 2, kind: output, shape index: {0}]   ;;  %s2777_s3 = inlined_call_operand.vmem [shape: f32[4,1,128], index: 3, kind: output, shape index: {1}]   ;;  %s2778_s4 = inlined_call_operand.vmem [shape: f32[4,1,128], index: 4, kind: output, shape index: {2}]  }
   0x1 LB: > { %s2317_s16 = sadd.s32 4294967295, %s2284_s15   ;;  %p1778_p0 = scmp.ge.s32.totalorder %s2284_s15, 1  ;;  %s2284_s15 = sphi %s2311_s15, %s15_s15  }
   0x2   : > { %p167_p1 = scmp.lt.s32.totalorder %s2284_s15, 5 }
   0x4   : > { %p168_p2 = pnand %p1778_p0, %p167_p1 }
   0x5   : > { %v278_v0 = vld [vmem:[%s2775_s1 + $0x2] sm:$0x3] (!%p168_p2)  ;;  %vm408_vm0 = vcmask (!%p168_p2), 1041408   ;;  %v2327_v1 = vld [vmem:[%s2775_s1 + $0x8] sm:$0x3] (!%p168_p2)  ;;  %p199_p3 = scmp.lt.s32.totalorder (!%p168_p2), %s2317_s16, 3 }
   0x6   : > { %171 = sbr.rel (%p168_p2) target bundleno = 405 (0x195), region = 28  ;;  %2239 = vmatprep.subr.msk.bf16.mxu1 (!%p168_p2), %vm408_vm0, %v278_v0  ;;  %2243 = vmatprep.subr.msk.bf16.mxu0 (!%p168_p2), %vm408_vm0, %v2327_v1  ;;  %v410_v2 = vsel (!%p168_p2), %vm408_vm0, %v278_v0, 0  ;;  %v2336_v3 = vsel (!%p168_p2), %vm408_vm0, %v2327_v1, 0  ;;  %v277_v4 = vld [vmem:[%s2775_s1] sm:$0x3] (!%p168_p2)  ;;  %vm318_vm1 = vcmask (!%p168_p2), 1046528  }
   0x7   : > { %1948 = vmatpush3.bf16.msra.mxu1 (!%p168_p2), %v410_v2  ;;  %2020 = vmatpush3.bf16.msra.mxu0 (!%p168_p2), %v2336_v3  ;;  %v282_v5 = vld [vmem:[%s2775_s1 + $0xa] sm:$0x3] (!%p168_p2)  ;;  %vm383_vm2 = vcmask (!%p168_p2), 31744   ;;  %v534_v27 = vsel (!%p168_p2), %vm408_vm0, %v277_v4, 0  ;;  %vm633_vm3 = vcmask (!%p168_p2), 1045504   ;;  %s1780_s14 = sshll.u32 (!%p168_p2), %s2317_s16, 4 }
   0x8   : > { %2240 = vmatprep.subr.msk.bf16.mxu1 (!%p168_p2), %vm408_vm0, %v277_v4  ;;  %2245 = vmatprep.subr.msk.bf16.mxu0 (!%p168_p2), %vm408_vm0, %v282_v5  ;;  %v1100_v31 = vsel (!%p168_p2), %vm408_vm0, %v282_v5, 0  ;;  %v2410_v47 = vld [vmem:[%s2775_s1 + $0x4] sm:$0x3] (!%p168_p2)  ;;  %v2443_v4 = vld [vmem:[%s2775_s1 + $0xc] sm:$0x3] (!%p168_p2)  ;;  %p205_p4 = scmp.lt.s32.totalorder (!%p168_p2), %s1780_s14, 63 }
   0xd   : > { %s2343_s23 = scalar_select %p199_p3, %s2317_s16, 3 }
   0xe   : > { %s2780_s14 = smov (!%p205_p4, %s1780_s14), 63 }
   0xf   : > { %s2249_s26 = smul.u32 120, %s2343_s23  ;;  %s1781_s17 = sshll.u32 %s2780_s14, 3 }
  0x10   : > { %s2745_s20 = scalar_lea.vmem %s2776_s2, %s1781_s17  ;;  %s212_s22 = scalar_lea.vmem %s2777_s3, %s2343_s23 }
  0x11   : > { %s2354_s29 = scalar_lea.vmem %s2774_s0, %s2249_s26  ;;  %s215_s26 = scalar_lea.vmem %s2778_s4, %s2343_s23 }
  0x12   : > { %v2357_v6 = vld [vmem:[%s2354_s29] sm:$0xff]   ;;  %v2360_v7 = vld [vmem:[%s2354_s29 + $0x8] sm:$0x1]  ;;  %v2363_v8 = vld [vmem:[%s2354_s29 + $0xc] sm:$0xff]  }
  0x13   : > { %v247_v9 = vunpack.c.l.bf16 %v2357_v6  ;;  %v248_v10 = vunpack.c.h.bf16 %v2357_v6  ;;  %v249_v11 = vunpack.c.l.bf16 %v2360_v7  ;;  %v222_v12 = vld [vmem:[%s2354_s29 + $0x14] sm:$0x1]  ;;  %v250_v13 = vunpack.c.l.bf16 %v2363_v8  ;;  %v2371_v14 = vld [vmem:[%s2354_s29 + $0x18] sm:$0xff]   ;;  %v2382_v23 = vld [vmem:[%s2354_s29 + $0x20] sm:$0x1] }
  0x14   : > { %v251_v15 = vunpack.c.h.bf16 %v2363_v8  ;;  %v252_v16 = vunpack.c.l.bf16 %v222_v12  ;;  %v253_v20 = vunpack.c.l.bf16 %v2371_v14  ;;  %v2388_v28 = vld [vmem:[%s2354_s29 + $0x24] sm:$0xff]   ;;  %v254_v33 = vunpack.c.h.bf16 %v2371_v14  ;;  %v2396_v36 = vld [vmem:[%s2354_s29 + $0x2c] sm:$0x1]  ;;  %v2399_v37 = vld [vmem:[%s2354_s29 + $0x30] sm:$0xff]  }
  0x15   : > { %v319_v17 = vrot.slane %v247_v9, 1  ;;  %v320_v18 = vrot.slane %v248_v10, 1  ;;  %v322_v19 = vrot.slane %v249_v11, 1  ;;  %v324_v21 = vrot.slane %v250_v13, 1  ;;  %v2405_v42 = vld [vmem:[%s2354_s29 + $0x38] sm:$0x1] }
  0x16   : > { %v325_v22 = vrot.slane %v251_v15, 1  ;;  %v327_v26 = vrot.slane %v252_v16, 1  ;;  %v255_v34 = vunpack.c.l.bf16 %v2382_v23  ;;  %v329_v35 = vrot.slane %v253_v20, 1  ;;  %v2423_v56 = vld [vmem:[%s2354_s29 + $0x3c] sm:$0xff]   ;;  %v2431_v61 = vld [vmem:[%s2354_s29 + $0x44] sm:$0x1] }
  0x17   : > { %v321_v24 = vsel %vm318_vm1, %v319_v17, %v320_v18  ;;  %v323_v25 = vsel %vm318_vm1, %v320_v18, %v322_v19  ;;  %v639_v39 = vrot.slane %v250_v13, 2  ;;  %v256_v40 = vunpack.c.l.bf16 %v2388_v28 }
  0x18   : > { %v375_v29 = vpack.c.bf16 %v323_v25, %v321_v24  ;;  %v326_v30 = vsel %vm318_vm1, %v324_v21, %v325_v22  ;;  %v328_v32 = vsel %vm318_vm1, %v325_v22, %v327_v26  ;;  %v257_v41 = vunpack.c.h.bf16 %v2388_v28  ;;  %v2462_v21 = vld [vmem:[%s2354_s29 + $0x50] sm:$0x1] }
  0x19   : > { %v376_v38 = vpack.c.bf16 %v328_v32, %v326_v30  ;;  %v640_v43 = vrot.slane %v251_v15, 2  ;;  %v642_v44 = vrot.slane %v252_v16, 2  ;;  %v330_v45 = vrot.slane %v254_v33, 1  ;;  %v2454_v16 = vld [vmem:[%s2354_s29 + $0x48] sm:$0xff]  }
  0x1a   : > { %1949 = vmatprep.mubr.msk.bf16.mxu1 %vm383_vm2, %v375_v29  ;;  %v332_v46 = vrot.slane %v255_v34, 1  ;;  %v258_v48 = vunpack.c.l.bf16 %v2396_v36  ;;  %v334_v49 = vrot.slane %v256_v40, 1  ;;  %v335_v50 = vrot.slane %v257_v41, 1  ;;  %v240_v36 = vld [vmem:[%s2354_s29 + $0x5c] sm:$0x1] }
  0x1b   : > { %2021 = vmatprep.mubr.msk.bf16.mxu0 %vm383_vm2, %v376_v38  ;;  %1950 = vmatmul.mubr.msk.bf16.vlgmr.msra.gmra.mrb[0].mxu1 %vm383_vm2, %v376_v38  ;;  %v259_v51 = vunpack.c.l.bf16 %v2399_v37  ;;  %v331_v52 = vsel %vm318_vm1, %v329_v35, %v330_v45  ;;  %v260_v54 = vunpack.c.h.bf16 %v2399_v37  ;;  %v261_v55 = vunpack.c.l.bf16 %v2405_v42 }
  0x1c   : > { %1966 = vmatpush3.bf16.msra.mxu1 %v534_v27  ;;  %v333_v53 = vsel %vm318_vm1, %v330_v45, %v332_v46  ;;  %v336_v58 = vsel %vm318_vm1, %v334_v49, %v335_v50  ;;  %v337_v59 = vrot.slane %v258_v48, 1  ;;  %v644_v62 = vrot.slane %v253_v20, 2 }
  0x1d   : > { %v2425_v57 = vpack.c.bf16 %v333_v53, %v331_v52  ;;  %v339_v60 = vrot.slane %v259_v51, 1  ;;  %2241 = vmatprep.subr.msk.bf16.mxu1 %vm408_vm0, %v2410_v47  ;;  %v340_v63 = vrot.slane %v260_v54, 1  ;;  %v342_v0 = vrot.slane %v261_v55, 1 }
  0x1e   : > { %v641_v2 = vsel %vm633_vm3, %v639_v39, %v640_v43  ;;  %v338_v5 = vsel %vm318_vm1, %v335_v50, %v337_v59  ;;  %v643_v12 = vsel %vm633_vm3, %v640_v43, %v642_v44  ;;  %v262_v13 = vunpack.c.l.bf16 %v2423_v56 }
  0x1f   : > { %2022 = vmatmul.mubr.msk.bf16.vlgmr.msra.gmra.mrb[0].mxu0 %vm383_vm2, %v2425_v57  ;;  %1953 = vmatprep.mubr.msk.bf16.mxu1 %vm383_vm2, %v2425_v57  ;;  %v263_v15 = vunpack.c.h.bf16 %v2423_v56  ;;  %v2456_v17 = vpack.c.bf16 %v338_v5, %v336_v58  ;;  %v341_v18 = vsel %vm318_vm1, %v339_v60, %v340_v63  ;;  %v343_v19 = vsel %vm318_vm1, %v340_v63, %v342_v0 }
  0x20   : > { %2038 = vmatpush3.bf16.msra.mxu0 %v1100_v31  ;;  %v264_v20 = vunpack.c.l.bf16 %v2431_v61  ;;  %v645_v22 = vrot.slane %v254_v33, 2  ;;  %v647_v23 = vrot.slane %v255_v34, 2  ;;  %v344_v24 = vrot.slane %v262_v13, 1  ;;  %v2473_v31 = vld [vmem:[%s2354_s29 + $0x54] sm:$0xff]  }
  0x21   : > { %2246 = vmatprep.subr.msk.bf16.mxu0 %vm408_vm0, %v2443_v4  ;;  %v345_v25 = vrot.slane %v263_v15, 1  ;;  %2025 = vmatprep.mubr.msk.bf16.mxu0 %vm383_vm2, %v2456_v17  ;;  %v2468_v26 = vpack.c.bf16 %v343_v19, %v341_v18  ;;  %v265_v29 = vunpack.c.l.bf16 %v2454_v16  ;;  %v266_v30 = vunpack.c.h.bf16 %v2454_v16 }
  0x22   : > { %v347_v27 = vrot.slane %v264_v20, 1  ;;  %v2477_v32 = vpack.c.bf16 %v643_v12, %v641_v2  ;;  %v267_v34 = vunpack.c.l.bf16 %v2462_v21  ;;  %v649_v35 = vrot.slane %v256_v40, 2 }
  0x23   : > { %1954 = vmatmul.mubr.msk.bf16.gmra.mrb[4].mxu1 %vm383_vm2, %v2456_v17  ;;  %v346_v33 = vsel %vm318_vm1, %v344_v24, %v345_v25  ;;  %v349_v39 = vrot.slane %v265_v29, 1  ;;  %v350_v43 = vrot.slane %v266_v30, 1  ;;  %v650_v44 = vrot.slane %v257_v41, 2 }
  0x24   : > { %1957 = vmatprep.mubr.msk.bf16.mxu1 %vm383_vm2, %v2468_v26  ;;  %v348_v38 = vsel %vm318_vm1, %v345_v25, %v347_v27  ;;  %v646_v45 = vsel %vm633_vm3, %v644_v62, %v645_v22  ;;  %v352_v46 = vrot.slane %v267_v34, 1  ;;  %v652_v49 = vrot.slane %v258_v48, 2 }
  0x25   : > { %v268_v50 = vunpack.c.l.bf16 %v2473_v31  ;;  %v648_v52 = vsel %vm633_vm3, %v645_v22, %v647_v23  ;;  %v351_v40 = vsel %vm318_vm1, %v349_v39, %v350_v43  ;;  %v269_v53 = vunpack.c.h.bf16 %v2473_v31  ;;  %v2545_v39 = vld [vmem:[%s2354_s29 + $0x60] sm:$0xff]  }
  0x26   : > { %v270_v58 = vunpack.c.l.bf16 %v240_v36  ;;  %v2494_v59 = vpack.c.bf16 %v348_v38, %v346_v33  ;;  %v353_v41 = vsel %vm318_vm1, %v350_v43, %v352_v46  ;;  %v651_v60 = vsel %vm633_vm3, %v649_v35, %v650_v44  ;;  %v2548_v43 = vld [vmem:[%s2354_s29 + $0x6c] sm:$0xff]   ;;  %v246_v46 = vld [vmem:[%s2354_s29 + $0x74] sm:$0x1] }
  0x27   : > { %2026 = vmatmul.mubr.msk.bf16.gmra.mrb[4].mxu0 %vm383_vm2, %v2468_v26  ;;  %v653_v48 = vsel %vm633_vm3, %v650_v44, %v652_v49  ;;  %v2501_v61 = vpack.c.bf16 %v353_v41, %v351_v40  ;;  %v354_v62 = vrot.slane %v268_v50, 1  ;;  %v355_v63 = vrot.slane %v269_v53, 1 }
  0x28   : > { %2039 = vmatprep.mubr.msk.bf16.mxu0 %vm383_vm2, %v2477_v32  ;;  %v357_v0 = vrot.slane %v270_v58, 1  ;;  %v2503_v2 = vpack.c.bf16 %v648_v52, %v646_v45  ;;  %v654_v5 = vrot.slane %v259_v51, 2  ;;  %v2509_v12 = vpack.c.bf16 %v653_v48, %v651_v60 }
  0x29   : > { %v655_v18 = vrot.slane %v260_v54, 2  ;;  %v657_v19 = vrot.slane %v261_v55, 2  ;;  %v659_v21 = vrot.slane %v262_v13, 2  ;;  %v356_v22 = vsel %vm318_vm1, %v354_v62, %v355_v63  ;;  %v2524_v54 = vld [vmem:[%s2775_s1 + $0xe] sm:$0x3] }
  0x2a   : > { %v358_v23 = vsel %vm318_vm1, %v355_v63, %v357_v0  ;;  %v660_v51 = vrot.slane %v263_v15, 2  ;;  %v662_v24 = vrot.slane %v264_v20, 2  ;;  %v1220_v25 = vsel %vm408_vm0, %v2443_v4, 0 }
  0x2b   : > { %1958 = vmatmul.mubr.msk.bf16.gmra.mrb[8].mxu1 %vm383_vm2, %v2494_v59  ;;  %v2528_v42 = vpack.c.bf16 %v358_v23, %v356_v22  ;;  %v656_v55 = vsel %vm633_vm3, %v654_v5, %v655_v18  ;;  %v658_v4 = vsel %vm633_vm3, %v655_v18, %v657_v19  ;;  %v664_v20 = vrot.slane %v265_v29, 2 }
  0x2c   : > { %1961 = vmatprep.mubr.msk.bf16.mxu1 %vm383_vm2, %v2501_v61  ;;  %v661_v13 = vsel %vm633_vm3, %v659_v21, %v660_v51  ;;  %v663_v15 = vsel %vm633_vm3, %v660_v51, %v662_v24  ;;  %v665_v27 = vrot.slane %v266_v30, 2  ;;  %v667_v33 = vrot.slane %v267_v34, 2  ;;  %v2553_v34 = vld [vmem:[%s2354_s29 + $0x68] sm:$0x1]  ;;  %v280_v51 = vld [vmem:[%s2775_s1 + $0x6] sm:$0x3] }
  0x2d   : > { %v2540_v35 = vpack.c.bf16 %v658_v4, %v656_v55  ;;  %v2542_v36 = vpack.c.bf16 %v663_v15, %v661_v13  ;;  %v669_v38 = vrot.slane %v268_v50, 2  ;;  %v670_v29 = vrot.slane %v269_v53, 2 }
  0x2e   : > { %v672_v30 = vrot.slane %v270_v58, 2  ;;  %v274_v44 = vunpack.c.l.bf16 %v2548_v43  ;;  %v275_v45 = vunpack.c.h.bf16 %v2548_v43  ;;  %v666_v49 = vsel %vm633_vm3, %v664_v20, %v665_v27 }
  0x2f   : > { %2040 = vmatmul.mubr.msk.bf16.vlgmr.msra.gmra.mrb[0].mxu0 %vm383_vm2, %v2503_v2  ;;  %v668_v50 = vsel %vm633_vm3, %v665_v27, %v667_v33  ;;  %v271_v53 = vunpack.c.l.bf16 %v2545_v39  ;;  %v272_v58 = vunpack.c.h.bf16 %v2545_v39  ;;  %v273_v48 = vunpack.c.l.bf16 %v2553_v34 }
  0x30   : > { %2056 = vmatpush3.bf16.msra.mxu0 %v1220_v25  ;;  %2043 = vmatprep.mubr.msk.bf16.mxu0 %vm383_vm2, %v2509_v12  ;;  %v1338_v52 = vrot.slane %v274_v44, 1  ;;  %v1339_v40 = vrot.slane %v275_v45, 1  ;;  %v1465_v41 = vrot.slane %v274_v44, 2  ;;  %v1466_v60 = vrot.slane %v275_v45, 2 }
  0x31   : > { %2247 = vmatprep.subr.msk.bf16.mxu0 %vm408_vm0, %v2524_v54  ;;  %v276_v62 = vunpack.c.l.bf16 %v246_v46  ;;  %v671_v63 = vsel %vm633_vm3, %v669_v38, %v670_v29  ;;  %v673_v0 = vsel %vm633_vm3, %v670_v29, %v672_v30  ;;  %v723_v19 = vsel %vm408_vm0, %v2410_v47, 0 }
  0x32   : > { %v2570_v5 = vsel %vm318_vm1, %v1338_v52, %v1339_v40  ;;  %v2573_v18 = vsel %vm633_vm3, %v1465_v41, %v1466_v60  ;;  %v2577_v23 = vpack.c.bf16 %v668_v50, %v666_v49  ;;  %v2584_v24 = vpack.c.bf16 %v673_v0, %v671_v63 }
  0x33   : > { %1962 = vmatmul.mubr.msk.bf16.gmra.mrb[12].mxu1 %vm383_vm2, %v2528_v42  ;;  %v1341_v21 = vrot.slane %v276_v62, 1  ;;  %v1468_v22 = vrot.slane %v276_v62, 2  ;;  %v1088_v25 = vrot.slane %v271_v53, 2  ;;  %v1089_v4 = vrot.slane %v272_v58, 2 }
  0x34   : > { %1967 = vmatprep.mubr.msk.bf16.mxu1 %vm383_vm2, %v2357_v6  ;;  %v1091_v13 = vrot.slane %v273_v48, 2  ;;  %v634_v29 = vrot.slane %v247_v9, 2  ;;  %v635_v30 = vrot.slane %v248_v10, 2  ;;  %v637_v44 = vrot.slane %v249_v11, 2  ;;  %v285_v6 = vld [vmem:[%s2775_s1 + $0x10] sm:$0x3] }
  0x35   : > { %v2589_v55 = vsel %vm318_vm1, %v1339_v40, %v1341_v21  ;;  %v2592_v47 = vsel %vm633_vm3, %v1466_v60, %v1468_v22  ;;  %v1090_v27 = vsel %vm633_vm3, %v1088_v25, %v1089_v4  ;;  %v1350_v45 = vsel %vm408_vm0, %v2524_v54, 0 }
  0x36   : > { %v1345_v15 = vpack.c.bf16 %v2589_v55, %v2570_v5  ;;  %v1472_v20 = vpack.c.bf16 %v2592_v47, %v2573_v18  ;;  %v1092_v33 = vsel %vm633_vm3, %v1089_v4, %v1091_v13  ;;  %v636_v46 = vsel %vm633_vm3, %v634_v29, %v635_v30 }
  0x37   : > { %2044 = vmatmul.mubr.msk.bf16.gmra.mrb[4].mxu0 %vm383_vm2, %v2540_v35  ;;  %v2613_v38 = vpack.c.bf16 %v1092_v33, %v1090_v27  ;;  %v638_v49 = vsel %vm633_vm3, %v635_v30, %v637_v44  ;;  %v843_v9 = vsel %vm408_vm0, %v280_v51, 0  ;;  %v961_v10 = vrot.slane %v271_v53, 1 }
  0x38   : > { %2047 = vmatprep.mubr.msk.bf16.mxu0 %vm383_vm2, %v2542_v36  ;;  %v690_v7 = vpack.c.bf16 %v638_v49, %v636_v46  ;;  %v962_v11 = vrot.slane %v272_v58, 1 }
  0x3b   : > { %1968 = vmatmul.mubr.msk.bf16.vlgmr.msra.gmra.mrb[0].mxu1 %vm383_vm2, %v2363_v8 }
  0x3c   : > { %1984 = vmatpush3.bf16.msra.mxu1 %v723_v19  ;;  %1971 = vmatprep.mubr.msk.bf16.mxu1 %vm383_vm2, %v2371_v14 }
  0x3d   : > { %2242 = vmatprep.subr.msk.bf16.mxu1 %vm408_vm0, %v280_v51 }
  0x3f   : > { %2048 = vmatmul.mubr.msk.bf16.gmra.mrb[8].mxu0 %vm383_vm2, %v2577_v23 }
  0x40   : > { %2051 = vmatprep.mubr.msk.bf16.mxu0 %vm383_vm2, %v2584_v24 }
  0x43   : > { %1972 = vmatmul.mubr.msk.bf16.gmra.mrb[4].mxu1 %vm383_vm2, %v2388_v28 }
  0x44   : > { %1975 = vmatprep.mubr.msk.bf16.mxu1 %vm383_vm2, %v2399_v37 }
  0x47   : > { %2052 = vmatmul.mubr.msk.bf16.gmra.mrb[12].mxu0 %vm383_vm2, %v2613_v38 }
  0x48   : > { %2057 = vmatprep.mubr.msk.bf16.mxu0 %vm383_vm2, %v2371_v14 }
  0x4b   : > { %1976 = vmatmul.mubr.msk.bf16.gmra.mrb[8].mxu1 %vm383_vm2, %v2423_v56 }
  0x4c   : > { %1979 = vmatprep.mubr.msk.bf16.mxu1 %vm383_vm2, %v2454_v16 }
  0x4f   : > { %2058 = vmatmul.mubr.msk.bf16.vlgmr.msra.gmra.mrb[0].mxu0 %vm383_vm2, %v2388_v28 }
  0x50   : > { %2074 = vmatpush3.bf16.msra.mxu0 %v1350_v45  ;;  %2061 = vmatprep.mubr.msk.bf16.mxu0 %vm383_vm2, %v2399_v37 }
  0x51   : > { %2248 = vmatprep.subr.msk.bf16.mxu0 %vm408_vm0, %v285_v6 }
  0x53   : > { %1980 = vmatmul.mubr.msk.bf16.gmra.mrb[12].mxu1 %vm383_vm2, %v2473_v31 }
  0x54   : > { %1985 = vmatprep.mubr.msk.bf16.mxu1 %vm383_vm2, %v690_v7 }
  0x57   : > { %2062 = vmatmul.mubr.msk.bf16.gmra.mrb[4].mxu0 %vm383_vm2, %v2423_v56 }
  0x58   : > { %2065 = vmatprep.mubr.msk.bf16.mxu0 %vm383_vm2, %v2454_v16 }
  0x5b   : > { %1986 = vmatmul.mubr.msk.bf16.vlgmr.msra.gmra.mrb[0].mxu1 %vm383_vm2, %v2477_v32 }
  0x5c   : > { %2002 = vmatpush3.bf16.msra.mxu1 %v843_v9  ;;  %1989 = vmatprep.mubr.msk.bf16.mxu1 %vm383_vm2, %v2503_v2 }
  0x5d   : > { %2244 = vmatprep.subr.msk.bf16.mxu1 %vm408_vm0, %v2327_v1  ;;  %v1477_v1 = vsel %vm408_vm0, %v285_v6, 0 }
  0x5f   : > { %2066 = vmatmul.mubr.msk.bf16.gmra.mrb[8].mxu0 %vm383_vm2, %v2473_v31 }
  0x60   : > { %2069 = vmatprep.mubr.msk.bf16.mxu0 %vm383_vm2, %v2545_v39 }
  0x63   : > { %1990 = vmatmul.mubr.msk.bf16.gmra.mrb[4].mxu1 %vm383_vm2, %v2509_v12 }
  0x64   : > { %1993 = vmatprep.mubr.msk.bf16.mxu1 %vm383_vm2, %v2540_v35 }
  0x67   : > { %2070 = vmatmul.mubr.msk.bf16.gmra.mrb[12].mxu0 %vm383_vm2, %v2548_v43 }
  0x68   : > { %2075 = vmatprep.mubr.msk.bf16.mxu0 %vm383_vm2, %v2425_v57  ;;  %v964_v57 = vrot.slane %v273_v48, 1 }
  0x6b   : > { %1994 = vmatmul.mubr.msk.bf16.gmra.mrb[8].mxu1 %vm383_vm2, %v2542_v36 }
  0x6c   : > { %1997 = vmatprep.mubr.msk.bf16.mxu1 %vm383_vm2, %v2577_v23 }
  0x6f   : > { %2076 = vmatmul.mubr.msk.bf16.vlgmr.msra.gmra.mrb[0].mxu0 %vm383_vm2, %v2456_v17  ;;  %v963_v17 = vsel %vm318_vm1, %v961_v10, %v962_v11 }
  0x70   : > { %2092 = vmatpush3.bf16.msra.mxu0 %v1477_v1  ;;  %2079 = vmatprep.mubr.msk.bf16.mxu0 %vm383_vm2, %v2468_v26  ;;  %v965_v26 = vsel %vm318_vm1, %v962_v11, %v964_v57 }
  0x73   : > { %1998 = vmatmul.mubr.msk.bf16.gmra.mrb[12].mxu1 %vm383_vm2, %v2584_v24 }
  0x74   : > { %2003 = vmatprep.mubr.msk.bf16.mxu1 %vm383_vm2, %v2363_v8  ;;  %v968_v8 = vpack.c.bf16 %v965_v26, %v963_v17 }
  0x77   : > { %2080 = vmatmul.mubr.msk.bf16.gmra.mrb[4].mxu0 %vm383_vm2, %v2494_v59 }
  0x78   : > { %2083 = vmatprep.mubr.msk.bf16.mxu0 %vm383_vm2, %v2501_v61 }
  0x7b   : > { %2004 = vmatmul.mubr.msk.bf16.vlgmr.msra.gmra.mrb[0].mxu1 %vm383_vm2, %v2371_v14 }
  0x7c   : > { %2110 = vmatpush3.bf16.msra.mxu1 %v2336_v3  ;;  %2007 = vmatprep.mubr.msk.bf16.mxu1 %vm383_vm2, %v2388_v28 }
  0x7f   : > { %2084 = vmatmul.mubr.msk.bf16.gmra.mrb[8].mxu0 %vm383_vm2, %v2528_v42 }
  0x80   : > { %2087 = vmatprep.mubr.msk.bf16.mxu0 %vm383_vm2, %v968_v8 }
  0x83   : > { %2008 = vmatmul.mubr.msk.bf16.gmra.mrb[4].mxu1 %vm383_vm2, %v2399_v37 }
  0x84   : > { %2011 = vmatprep.mubr.msk.bf16.mxu1 %vm383_vm2, %v2423_v56 }
  0x87   : > { %2088 = vmatmul.mubr.msk.bf16.gmra.mrb[12].mxu0 %vm383_vm2, %v1345_v15 }
  0x88   : > { %2093 = vmatprep.mubr.msk.bf16.mxu0 %vm383_vm2, %v2503_v2 }
  0x8b   : > { %2012 = vmatmul.mubr.msk.bf16.gmra.mrb[8].mxu1 %vm383_vm2, %v2454_v16 }
  0x8c   : > { %2015 = vmatprep.mubr.msk.bf16.mxu1 %vm383_vm2, %v2473_v31 }
  0x8f   : > { %2094 = vmatmul.mubr.msk.bf16.vlgmr.msra.gmra.mrb[0].mxu0 %vm383_vm2, %v2509_v12 }
  0x90   : > { %2097 = vmatprep.mubr.msk.bf16.mxu0 %vm383_vm2, %v2540_v35 }
  0x93   : > { %2016 = vmatmul.mubr.msk.bf16.gmra.mrb[12].mxu1 %vm383_vm2, %v2545_v39 }
  0x94   : > { %2029 = vmatprep.mubr.msk.bf16.mxu1 %vm383_vm2, %v2494_v59 }
  0x97   : > { %2098 = vmatmul.mubr.msk.bf16.gmra.mrb[4].mxu0 %vm383_vm2, %v2542_v36 }
  0x98   : > { %2101 = vmatprep.mubr.msk.bf16.mxu0 %vm383_vm2, %v2577_v23 }
  0x9b   : > { %2030 = vmatmul.mubr.msk.bf16.vlgmr.msra.gmra.mrb[8].mxu1 %vm383_vm2, %v2501_v61 }
  0x9c   : > { %2033 = vmatprep.mubr.msk.bf16.mxu1 %vm383_vm2, %v2528_v42 }
  0x9f   : > { %2102 = vmatmul.mubr.msk.bf16.gmra.mrb[8].mxu0 %vm383_vm2, %v2584_v24 }
  0xa0   : > { %2105 = vmatprep.mubr.msk.bf16.mxu0 %vm383_vm2, %v2613_v38 }
  0xa3   : > { %2034 = vmatmul.mubr.msk.bf16.gmra.mrb[12].mxu1 %vm383_vm2, %v968_v8 }
  0xa7   : > { %2106 = vmatmul.mubr.msk.bf16.gmra.mrb[12].mxu0 %vm383_vm2, %v1472_v20 }
 0x14e   : > { %v2005_v3 = vpop.f32.mrb[0].mxu1 }
 0x14f   : > { %v879_v14 = vpop.f32.mrb[1].mxu1 }
 0x150   : > { %v2006_v28 = vpop.f32.mrb[2].mxu1 }
 0x151   : > { %v882_v37 = vpop.f32.mrb[3].mxu1 }
 0x156   : > { %v2009_v56 = vpop.f32.mrb[4].mxu1 }
 0x157   : > { %v895_v16 = vpop.f32.mrb[5].mxu1 }
 0x158   : > { %v2010_v31 = vpop.f32.mrb[6].mxu1 }
 0x159   : > { %v898_v32 = vpop.f32.mrb[7].mxu1 }
 0x162   : > { %v2095_v59 = vpop.f32.mrb[0].mxu0 }
 0x163   : > { %v2111_v61 = vadd.f32 %v2095_v59, %v2005_v3  ;;  %v1513_v2 = vpop.f32.mrb[1].mxu0 }
 0x164   : > { %v2112_v12 = vadd.f32 %v1513_v2, %v879_v14  ;;  %v2096_v54 = vpop.f32.mrb[2].mxu0 }
 0x165   : > { %1594 = vst [vmem:[%s2745_s20 + $0x10] sm:$0xff] %v2111_v61  ;;  %v2113_v42 = vadd.f32 %v2096_v54, %v2006_v28  ;;  %v1516_v35 = vpop.f32.mrb[3].mxu0  ;;  %v1632_v50 = vmul.f32 %v2111_v61, %v2111_v61 }
 0x166   : > { %1592 = vst [vmem:[%s2745_s20] sm:$0xff] %v2112_v12  ;;  %v2114_v36 = vadd.f32 %v1516_v35, %v882_v37  ;;  %v1630_v39 = vmul.f32 %v2112_v12, %v2112_v12 }
 0x167   : > { %1595 = vst [vmem:[%s2745_s20 + $0x18] sm:$0xff] %v2113_v42  ;;  %v1633_v58 = vmul.f32 %v2113_v42, %v2113_v42 }
 0x168   : > { %1593 = vst [vmem:[%s2745_s20 + $0x8] sm:$0xff] %v2114_v36  ;;  %v1608_v43 = vadd.f32 %v2114_v36, %v2112_v12  ;;  %v1631_v34 = vmul.f32 %v2114_v36, %v2114_v36 }
 0x16a   : > { %v1609_v52 = vadd.f32 %v2111_v61, %v1608_v43  ;;  %v1646_v40 = vadd.f32 %v1631_v34, %v1630_v39  ;;  %v2099_v41 = vpop.f32.mrb[4].mxu0 }
 0x16b   : > { %v2115_v60 = vadd.f32 %v2099_v41, %v2009_v56  ;;  %v1529_v53 = vpop.f32.mrb[5].mxu0 }
 0x16c   : > { %v1647_v48 = vadd.f32 %v1646_v40, %v1632_v50  ;;  %v2116_v62 = vadd.f32 %v1529_v53, %v895_v16  ;;  %v1610_v63 = vadd.f32 %v2113_v42, %v1609_v52  ;;  %v2100_v0 = vpop.f32.mrb[6].mxu0 }
 0x16d   : > { %1598 = vst [vmem:[%s2745_s20 + $0x30] sm:$0xff] %v2115_v60  ;;  %v2117_v5 = vadd.f32 %v2100_v0, %v2010_v31  ;;  %v1532_v18 = vpop.f32.mrb[7].mxu0  ;;  %v1636_v15 = vmul.f32 %v2115_v60, %v2115_v60 }
 0x16e   : > { %1596 = vst [vmem:[%s2745_s20 + $0x20] sm:$0xff] %v2116_v62  ;;  %v1611_v19 = vadd.f32 %v2116_v62, %v1610_v63  ;;  %v1634_v21 = vmul.f32 %v2116_v62, %v2116_v62  ;;  %v1648_v22 = vadd.f32 %v1647_v48, %v1633_v58  ;;  %v2118_v23 = vadd.f32 %v1532_v18, %v898_v32  ;;  %v2031_v51 = vpop.f32.mrb[8].mxu1 }
 0x16f   : > { %1599 = vst [vmem:[%s2745_s20 + $0x38] sm:$0xff] %v2117_v5  ;;  %v1041_v24 = vpop.f32.mrb[9].mxu1  ;;  %v1637_v30 = vmul.f32 %v2117_v5, %v2117_v5 }
 0x170   : > { %v1649_v25 = vadd.f32 %v1648_v22, %v1634_v21  ;;  %1597 = vst [vmem:[%s2745_s20 + $0x28] sm:$0xff] %v2118_v23  ;;  %v1612_v55 = vadd.f32 %v2118_v23, %v1611_v19  ;;  %v1635_v47 = vmul.f32 %v2118_v23, %v2118_v23  ;;  %v2032_v4 = vpop.f32.mrb[10].mxu1 }
 0x171   : > { %v1044_v13 = vpop.f32.mrb[11].mxu1 }
 0x172   : > { %v1613_v20 = vadd.f32 %v2115_v60, %v1612_v55  ;;  %v1650_v27 = vadd.f32 %v1649_v25, %v1635_v47  ;;  %v2103_v33 = vpop.f32.mrb[8].mxu0 }
 0x173   : > { %v2119_v38 = vadd.f32 %v2103_v33, %v2031_v51  ;;  %v1545_v29 = vpop.f32.mrb[9].mxu0 }
 0x174   : > { %v1651_v44 = vadd.f32 %v1650_v27, %v1636_v15  ;;  %v2120_v45 = vadd.f32 %v1545_v29, %v1041_v24  ;;  %v1614_v46 = vadd.f32 %v2117_v5, %v1613_v20  ;;  %v2104_v49 = vpop.f32.mrb[10].mxu0 }
 0x175   : > { %1602 = vst [vmem:[%s2745_s20 + $0x50] sm:$0xff] %v2119_v38  ;;  %v2121_v6 = vadd.f32 %v2104_v49, %v2032_v4  ;;  %v1548_v7 = vpop.f32.mrb[11].mxu0  ;;  %v1640_v37 = vmul.f32 %v2119_v38, %v2119_v38 }
 0x176   : > { %1600 = vst [vmem:[%s2745_s20 + $0x40] sm:$0xff] %v2120_v45  ;;  %v1615_v9 = vadd.f32 %v2120_v45, %v1614_v46  ;;  %v1638_v1 = vmul.f32 %v2120_v45, %v2120_v45  ;;  %v1652_v10 = vadd.f32 %v1651_v44, %v1637_v30  ;;  %v2122_v11 = vadd.f32 %v1548_v7, %v1044_v13  ;;  %v2035_v57 = vpop.f32.mrb[12].mxu1 }
 0x177   : > { %1603 = vst [vmem:[%s2745_s20 + $0x58] sm:$0xff] %v2121_v6  ;;  %v1057_v17 = vpop.f32.mrb[13].mxu1  ;;  %v1641_v61 = vmul.f32 %v2121_v6, %v2121_v6 }
 0x178   : > { %v1653_v26 = vadd.f32 %v1652_v10, %v1638_v1  ;;  %1601 = vst [vmem:[%s2745_s20 + $0x48] sm:$0xff] %v2122_v11  ;;  %v1616_v8 = vadd.f32 %v2122_v11, %v1615_v9  ;;  %v1639_v3 = vmul.f32 %v2122_v11, %v2122_v11  ;;  %v2036_v14 = vpop.f32.mrb[14].mxu1 }
 0x179   : > { %v1060_v28 = vpop.f32.mrb[15].mxu1 }
 0x17a   : > { %v1617_v56 = vadd.f32 %v2119_v38, %v1616_v8  ;;  %v1654_v16 = vadd.f32 %v1653_v26, %v1639_v3  ;;  %v2107_v31 = vpop.f32.mrb[12].mxu0 }
 0x17b   : > { %v2123_v32 = vadd.f32 %v2107_v31, %v2035_v57  ;;  %v1561_v59 = vpop.f32.mrb[13].mxu0 }
 0x17c   : > { %v1655_v2 = vadd.f32 %v1654_v16, %v1640_v37  ;;  %v2124_v12 = vadd.f32 %v1561_v59, %v1057_v17  ;;  %v1618_v54 = vadd.f32 %v2121_v6, %v1617_v56  ;;  %v2108_v42 = vpop.f32.mrb[14].mxu0 }
 0x17d   : > { %1606 = vst [vmem:[%s2745_s20 + $0x70] sm:$0xff] %v2123_v32  ;;  %v2125_v35 = vadd.f32 %v2108_v42, %v2036_v14  ;;  %v1564_v36 = vpop.f32.mrb[15].mxu0  ;;  %v1644_v60 = vmul.f32 %v2123_v32, %v2123_v32 }
 0x17e   : > { %1604 = vst [vmem:[%s2745_s20 + $0x60] sm:$0xff] %v2124_v12  ;;  %v1619_v39 = vadd.f32 %v2124_v12, %v1618_v54  ;;  %v1642_v43 = vmul.f32 %v2124_v12, %v2124_v12  ;;  %v1656_v34 = vadd.f32 %v1655_v2, %v1641_v61  ;;  %v2126_v50 = vadd.f32 %v1564_v36, %v1060_v28 }
 0x17f   : > { %1607 = vst [vmem:[%s2745_s20 + $0x78] sm:$0xff] %v2125_v35  ;;  %v1645_v48 = vmul.f32 %v2125_v35, %v2125_v35 }
 0x180   : > { %v1657_v52 = vadd.f32 %v1656_v34, %v1642_v43  ;;  %1605 = vst [vmem:[%s2745_s20 + $0x68] sm:$0xff] %v2126_v50  ;;  %v1620_v40 = vadd.f32 %v2126_v50, %v1619_v39  ;;  %v1643_v41 = vmul.f32 %v2126_v50, %v2126_v50 }
 0x182   : > { %v1621_v53 = vadd.f32 %v2123_v32, %v1620_v40  ;;  %v1658_v58 = vadd.f32 %v1657_v52, %v1643_v41 }
 0x184   : > { %v1622_v62 = vadd.f32 %v2125_v35, %v1621_v53  ;;  %v1659_v63 = vadd.f32 %v1658_v58, %v1644_v60 }
 0x186   : > { %v1623_v0 = vrot.slane %v1622_v62, 4  ;;  %v1660_v5 = vadd.f32 %v1659_v63, %v1645_v48 }
 0x188   : > { %v1624_v18 = vadd.f32 %v1623_v0, %v1622_v62  ;;  %v1661_v19 = vrot.slane %v1660_v5, 4 }
 0x18a   : > { %v1625_v21 = vrot.slane %v1624_v18, 2  ;;  %v1662_v22 = vadd.f32 %v1661_v19, %v1660_v5 }
 0x18c   : > { %v1626_v23 = vadd.f32 %v1625_v21, %v1624_v18  ;;  %v1663_v51 = vrot.slane %v1662_v22, 2 }
 0x18e   : > { %v1627_v24 = vrot.slane %v1626_v23, 1  ;;  %v1664_v25 = vadd.f32 %v1663_v51, %v1662_v22 }
 0x190   : > { %v1628_v55 = vadd.f32 %v1627_v24, %v1626_v23  ;;  %v1665_v47 = vrot.slane %v1664_v25, 1 }
 0x192   : > { %1629 = vst [vmem:[%s212_s22] sm:$0x1] %v1628_v55  ;;  %v1666_v4 = vadd.f32 %v1665_v47, %v1664_v25 }
 0x194   : > { %1667 = vst [vmem:[%s215_s26] sm:$0x1] %v1666_v4 }
 0x195 PF: > { %s15_s15 = sadd.s32 1, %s2284_s15  }
 0x196   : > { %p12_p5 = scmp.ge.s32.totalorder %s15_s15, 6  }
 0x198   :  { %14 = sbr.rel (!%p12_p5) target bundleno = 1 (0x1), region = 82 }

// kernel: _block_forward_nchw.7
= control target key start
LH: loop header
LB: loop body
LE: loop exit
PB: predicated region body
PF: predicated region fallthrough
CT: control target
= control target key end

     0   :  { %s896_s0 = inlined_call_operand.vmem [shape: f32[512,128], index: 0, kind: input, shape index: {}]   ;;  %s897_s1 = inlined_call_operand.vmem [shape: f32[1,128], index: 1, kind: input, shape index: {}]   ;;  %s898_s2 = inlined_call_operand.vmem [shape: f32[1,128], index: 2, kind: input, shape index: {}]   ;;  %s899_s3 = inlined_call_operand.vmem [shape: f32[512,128], index: 3, kind: output, shape index: {}]  }
   0x1   :  { %v14_v0 = vld [vmem:[%s896_s0] sm:$0xff]  ;;  %v15_v4 = vld [vmem:[%s896_s0 + $0x8] sm:$0xff]  ;;  %v16_v5 = vld [vmem:[%s896_s0 + $0x10] sm:$0xff] }
   0x2   :  { %v380_v1 = vld [vmem:[%s897_s1] ss:$0 sm:$0xff]  ;;  %v17_v6 = vld [vmem:[%s896_s0 + $0x18] sm:$0xff]  ;;  %v19_v11 = vld [vmem:[%s896_s0 + $0x28] sm:$0xff] }
   0x3   :  { %v385_v2 = vld [vmem:[%s898_s2] ss:$0 sm:$0xff]  ;;  %v85_v3 = vmul.f32 %v380_v1, %v14_v0  ;;  %v86_v7 = vmul.f32 %v380_v1, %v15_v4  ;;  %v87_v8 = vmul.f32 %v380_v1, %v16_v5  ;;  %v88_v9 = vmul.f32 %v380_v1, %v17_v6  ;;  %v20_v12 = vld [vmem:[%s896_s0 + $0x30] sm:$0xff]  ;;  %v21_v17 = vld [vmem:[%s896_s0 + $0x38] sm:$0xff] }
   0x4   :  { %v18_v10 = vld [vmem:[%s896_s0 + $0x20] sm:$0xff]  ;;  %v90_v15 = vmul.f32 %v380_v1, %v19_v11  ;;  %v91_v16 = vmul.f32 %v380_v1, %v20_v12  ;;  %v92_v21 = vmul.f32 %v380_v1, %v21_v17  ;;  %v23_v27 = vld [vmem:[%s896_s0 + $0x48] sm:$0xff]  ;;  %v24_v28 = vld [vmem:[%s896_s0 + $0x50] sm:$0xff] }
   0x5   :  { %v156_v13 = vadd.f32 %v385_v2, %v85_v3  ;;  %v89_v14 = vmul.f32 %v380_v1, %v18_v10  ;;  %v157_v18 = vadd.f32 %v385_v2, %v86_v7  ;;  %v158_v19 = vadd.f32 %v385_v2, %v87_v8  ;;  %v22_v22 = vld [vmem:[%s896_s0 + $0x40] sm:$0xff]  ;;  %v25_v29 = vld [vmem:[%s896_s0 + $0x58] sm:$0xff]  ;;  %v27_v35 = vld [vmem:[%s896_s0 + $0x68] sm:$0xff] }
   0x6   :  { %v159_v20 = vadd.f32 %v385_v2, %v88_v9  ;;  %v161_v25 = vadd.f32 %v385_v2, %v90_v15  ;;  %v162_v26 = vadd.f32 %v385_v2, %v91_v16  ;;  %v163_v33 = vadd.f32 %v385_v2, %v92_v21  ;;  %v26_v34 = vld [vmem:[%s896_s0 + $0x60] sm:$0xff]  ;;  %v28_v36 = vld [vmem:[%s896_s0 + $0x70] sm:$0xff]  ;;  %v29_v41 = vld [vmem:[%s896_s0 + $0x78] sm:$0xff] }
   0x7   :  { %v220_v23 = vmax.f32 %v156_v13, 0.0  ;;  %v160_v24 = vadd.f32 %v385_v2, %v89_v14  ;;  %v221_v30 = vmax.f32 %v157_v18, 0.0  ;;  %v222_v31 = vmax.f32 %v158_v19, 0.0  ;;  %v30_v54 = vld [vmem:[%s896_s0 + $0x80] sm:$0xff]  ;;  %v31_v59 = vld [vmem:[%s896_s0 + $0x88] sm:$0xff]  ;;  %v32_v60 = vld [vmem:[%s896_s0 + $0x90] sm:$0xff] }
   0x8   :  { %v223_v32 = vmax.f32 %v159_v20, 0.0  ;;  %v225_v38 = vmax.f32 %v161_v25, 0.0  ;;  %v226_v39 = vmax.f32 %v162_v26, 0.0  ;;  %v93_v40 = vmul.f32 %v380_v1, %v22_v22  ;;  %v33_v61 = vld [vmem:[%s896_s0 + $0x98] sm:$0xff]  ;;  %v34_v4 = vld [vmem:[%s896_s0 + $0xa0] sm:$0xff]  ;;  %v35_v5 = vld [vmem:[%s896_s0 + $0xa8] sm:$0xff] }
   0x9   :  { %284 = vst [vmem:[%s899_s3] sm:$0xff] %v220_v23  ;;  %v224_v37 = vmax.f32 %v160_v24, 0.0  ;;  %285 = vst [vmem:[%s899_s3 + $0x8] sm:$0xff] %v221_v30  ;;  %v227_v42 = vmax.f32 %v163_v33, 0.0  ;;  %v94_v43 = vmul.f32 %v380_v1, %v23_v27  ;;  %v95_v44 = vmul.f32 %v380_v1, %v24_v28  ;;  %v36_v6 = vld [vmem:[%s896_s0 + $0xb0] sm:$0xff]  ;;  %v37_v11 = vld [vmem:[%s896_s0 + $0xb8] sm:$0xff] }
   0xa   :  { %286 = vst [vmem:[%s899_s3 + $0x10] sm:$0xff] %v222_v31  ;;  %287 = vst [vmem:[%s899_s3 + $0x18] sm:$0xff] %v223_v32  ;;  %v96_v45 = vmul.f32 %v380_v1, %v25_v29  ;;  %v164_v46 = vadd.f32 %v385_v2, %v93_v40  ;;  %v97_v47 = vmul.f32 %v380_v1, %v26_v34  ;;  %v38_v24 = vld [vmem:[%s896_s0 + $0xc0] sm:$0xff]  ;;  %v39_v29 = vld [vmem:[%s896_s0 + $0xc8] sm:$0xff] }
   0xb   :  { %288 = vst [vmem:[%s899_s3 + $0x20] sm:$0xff] %v224_v37  ;;  %289 = vst [vmem:[%s899_s3 + $0x28] sm:$0xff] %v225_v38  ;;  %v98_v48 = vmul.f32 %v380_v1, %v27_v35  ;;  %v99_v49 = vmul.f32 %v380_v1, %v28_v36  ;;  %v165_v50 = vadd.f32 %v385_v2, %v94_v43  ;;  %v40_v30 = vld [vmem:[%s896_s0 + $0xd0] sm:$0xff]  ;;  %v41_v31 = vld [vmem:[%s896_s0 + $0xd8] sm:$0xff] }
   0xc   :  { %290 = vst [vmem:[%s899_s3 + $0x30] sm:$0xff] %v226_v39  ;;  %291 = vst [vmem:[%s899_s3 + $0x38] sm:$0xff] %v227_v42  ;;  %v166_v51 = vadd.f32 %v385_v2, %v95_v44  ;;  %v167_v52 = vadd.f32 %v385_v2, %v96_v45  ;;  %v100_v53 = vmul.f32 %v380_v1, %v29_v41  ;;  %v228_v55 = vmax.f32 %v164_v46, 0.0  ;;  %v42_v36 = vld [vmem:[%s896_s0 + $0xe0] sm:$0xff]  ;;  %v43_v37 = vld [vmem:[%s896_s0 + $0xe8] sm:$0xff] }
   0xd   :  { %v168_v56 = vadd.f32 %v385_v2, %v97_v47  ;;  %v169_v57 = vadd.f32 %v385_v2, %v98_v48  ;;  %v170_v58 = vadd.f32 %v385_v2, %v99_v49  ;;  %v229_v62 = vmax.f32 %v165_v50, 0.0  ;;  %v44_v38 = vld [vmem:[%s896_s0 + $0xf0] sm:$0xff]  ;;  %v45_v43 = vld [vmem:[%s896_s0 + $0xf8] sm:$0xff] }
   0xe   :  { %v230_v63 = vmax.f32 %v166_v51, 0.0  ;;  %v231_v0 = vmax.f32 %v167_v52, 0.0  ;;  %v171_v3 = vadd.f32 %v385_v2, %v100_v53  ;;  %292 = vst [vmem:[%s899_s3 + $0x40] sm:$0xff] %v228_v55  ;;  %v101_v10 = vmul.f32 %v380_v1, %v30_v54 }
   0xf   :  { %v232_v7 = vmax.f32 %v168_v56, 0.0  ;;  %v233_v8 = vmax.f32 %v169_v57, 0.0  ;;  %v234_v9 = vmax.f32 %v170_v58, 0.0  ;;  %293 = vst [vmem:[%s899_s3 + $0x48] sm:$0xff] %v229_v62  ;;  %v102_v13 = vmul.f32 %v380_v1, %v31_v59  ;;  %v46_v56 = vld [vmem:[%s896_s0 + $0x100] sm:$0xff]  ;;  %v48_v62 = vld [vmem:[%s896_s0 + $0x110] sm:$0xff] }
  0x10   :  { %294 = vst [vmem:[%s899_s3 + $0x50] sm:$0xff] %v230_v63  ;;  %295 = vst [vmem:[%s899_s3 + $0x58] sm:$0xff] %v231_v0  ;;  %v235_v12 = vmax.f32 %v171_v3, 0.0  ;;  %v103_v14 = vmul.f32 %v380_v1, %v32_v60  ;;  %v104_v15 = vmul.f32 %v380_v1, %v33_v61  ;;  %v172_v16 = vadd.f32 %v385_v2, %v101_v10  ;;  %v47_v61 = vld [vmem:[%s896_s0 + $0x108] sm:$0xff]  ;;  %v49_v63 = vld [vmem:[%s896_s0 + $0x118] sm:$0xff] }
  0x11   :  { %296 = vst [vmem:[%s899_s3 + $0x60] sm:$0xff] %v232_v7  ;;  %297 = vst [vmem:[%s899_s3 + $0x68] sm:$0xff] %v233_v8  ;;  %v105_v17 = vmul.f32 %v380_v1, %v34_v4  ;;  %v106_v18 = vmul.f32 %v380_v1, %v35_v5  ;;  %v107_v19 = vmul.f32 %v380_v1, %v36_v6  ;;  %v50_v6 = vld [vmem:[%s896_s0 + $0x120] sm:$0xff]  ;;  %v51_v7 = vld [vmem:[%s896_s0 + $0x128] sm:$0xff] }
  0x12   :  { %298 = vst [vmem:[%s899_s3 + $0x70] sm:$0xff] %v234_v9  ;;  %299 = vst [vmem:[%s899_s3 + $0x78] sm:$0xff] %v235_v12  ;;  %v173_v20 = vadd.f32 %v385_v2, %v102_v13  ;;  %v174_v21 = vadd.f32 %v385_v2, %v103_v14  ;;  %v175_v22 = vadd.f32 %v385_v2, %v104_v15  ;;  %v236_v25 = vmax.f32 %v172_v16, 0.0  ;;  %v52_v8 = vld [vmem:[%s896_s0 + $0x130] sm:$0xff]  ;;  %v53_v13 = vld [vmem:[%s896_s0 + $0x138] sm:$0xff] }
  0x13   :  { %v108_v23 = vmul.f32 %v380_v1, %v37_v11  ;;  %v176_v26 = vadd.f32 %v385_v2, %v105_v17  ;;  %v177_v27 = vadd.f32 %v385_v2, %v106_v18  ;;  %v178_v28 = vadd.f32 %v385_v2, %v107_v19 }
  0x14   :  { %v237_v32 = vmax.f32 %v173_v20, 0.0  ;;  %v238_v33 = vmax.f32 %v174_v21, 0.0  ;;  %v239_v34 = vmax.f32 %v175_v22, 0.0  ;;  %300 = vst [vmem:[%s899_s3 + $0x80] sm:$0xff] %v236_v25  ;;  %v109_v42 = vmul.f32 %v380_v1, %v38_v24 }
  0x15   :  { %v179_v35 = vadd.f32 %v385_v2, %v108_v23  ;;  %v240_v39 = vmax.f32 %v176_v26, 0.0  ;;  %v241_v40 = vmax.f32 %v177_v27, 0.0  ;;  %v242_v41 = vmax.f32 %v178_v28, 0.0  ;;  %v54_v26 = vld [vmem:[%s896_s0 + $0x140] sm:$0xff] }
  0x16   :  { %301 = vst [vmem:[%s899_s3 + $0x88] sm:$0xff] %v237_v32  ;;  %302 = vst [vmem:[%s899_s3 + $0x90] sm:$0xff] %v238_v33  ;;  %v110_v45 = vmul.f32 %v380_v1, %v39_v29  ;;  %v111_v46 = vmul.f32 %v380_v1, %v40_v30  ;;  %v112_v47 = vmul.f32 %v380_v1, %v41_v31  ;;  %v55_v31 = vld [vmem:[%s896_s0 + $0x148] sm:$0xff]  ;;  %v56_v32 = vld [vmem:[%s896_s0 + $0x150] sm:$0xff] }
  0x17   :  { %303 = vst [vmem:[%s899_s3 + $0x98] sm:$0xff] %v239_v34  ;;  %v243_v44 = vmax.f32 %v179_v35, 0.0  ;;  %304 = vst [vmem:[%s899_s3 + $0xa0] sm:$0xff] %v240_v39  ;;  %v180_v48 = vadd.f32 %v385_v2, %v109_v42  ;;  %v113_v49 = vmul.f32 %v380_v1, %v42_v36  ;;  %v114_v50 = vmul.f32 %v380_v1, %v43_v37  ;;  %v57_v33 = vld [vmem:[%s896_s0 + $0x158] sm:$0xff]  ;;  %v59_v39 = vld [vmem:[%s896_s0 + $0x168] sm:$0xff] }
  0x18   :  { %305 = vst [vmem:[%s899_s3 + $0xa8] sm:$0xff] %v241_v40  ;;  %306 = vst [vmem:[%s899_s3 + $0xb0] sm:$0xff] %v242_v41  ;;  %v115_v51 = vmul.f32 %v380_v1, %v44_v38  ;;  %v181_v52 = vadd.f32 %v385_v2, %v110_v45  ;;  %v182_v53 = vadd.f32 %v385_v2, %v111_v46  ;;  %v58_v38 = vld [vmem:[%s896_s0 + $0x160] sm:$0xff]  ;;  %v60_v40 = vld [vmem:[%s896_s0 + $0x170] sm:$0xff] }
  0x19   :  { %307 = vst [vmem:[%s899_s3 + $0xb8] sm:$0xff] %v243_v44  ;;  %v183_v54 = vadd.f32 %v385_v2, %v112_v47  ;;  %v116_v55 = vmul.f32 %v380_v1, %v45_v43  ;;  %v244_v57 = vmax.f32 %v180_v48, 0.0  ;;  %v184_v58 = vadd.f32 %v385_v2, %v113_v49  ;;  %v61_v45 = vld [vmem:[%s896_s0 + $0x178] sm:$0xff] }
  0x1a   :  { %v185_v59 = vadd.f32 %v385_v2, %v114_v50  ;;  %v186_v60 = vadd.f32 %v385_v2, %v115_v51  ;;  %v245_v0 = vmax.f32 %v181_v52, 0.0  ;;  %v246_v3 = vmax.f32 %v182_v53, 0.0 }
  0x1b   :  { %v247_v4 = vmax.f32 %v183_v54, 0.0  ;;  %v187_v5 = vadd.f32 %v385_v2, %v116_v55  ;;  %308 = vst [vmem:[%s899_s3 + $0xc0] sm:$0xff] %v244_v57  ;;  %v248_v9 = vmax.f32 %v184_v58, 0.0  ;;  %v117_v12 = vmul.f32 %v380_v1, %v46_v56  ;;  %v62_v58 = vld [vmem:[%s896_s0 + $0x180] sm:$0xff] }
  0x1c   :  { %v249_v10 = vmax.f32 %v185_v59, 0.0  ;;  %v250_v11 = vmax.f32 %v186_v60, 0.0  ;;  %309 = vst [vmem:[%s899_s3 + $0xc8] sm:$0xff] %v245_v0  ;;  %310 = vst [vmem:[%s899_s3 + $0xd0] sm:$0xff] %v246_v3  ;;  %v118_v15 = vmul.f32 %v380_v1, %v47_v61  ;;  %v119_v16 = vmul.f32 %v380_v1, %v48_v62  ;;  %v64_v0 = vld [vmem:[%s896_s0 + $0x190] sm:$0xff]  ;;  %v65_v3 = vld [vmem:[%s896_s0 + $0x198] sm:$0xff] }
  0x1d   :  { %311 = vst [vmem:[%s899_s3 + $0xd8] sm:$0xff] %v247_v4  ;;  %v251_v14 = vmax.f32 %v187_v5, 0.0  ;;  %v120_v17 = vmul.f32 %v380_v1, %v49_v63  ;;  %312 = vst [vmem:[%s899_s3 + $0xe0] sm:$0xff] %v248_v9  ;;  %v188_v18 = vadd.f32 %v385_v2, %v117_v12  ;;  %v121_v19 = vmul.f32 %v380_v1, %v50_v6  ;;  %v63_v63 = vld [vmem:[%s896_s0 + $0x188] sm:$0xff] }
  0x1e   :  { %313 = vst [vmem:[%s899_s3 + $0xe8] sm:$0xff] %v249_v10  ;;  %314 = vst [vmem:[%s899_s3 + $0xf0] sm:$0xff] %v250_v11  ;;  %v122_v20 = vmul.f32 %v380_v1, %v51_v7  ;;  %v123_v21 = vmul.f32 %v380_v1, %v52_v8  ;;  %v189_v22 = vadd.f32 %v385_v2, %v118_v15  ;;  %v66_v8 = vld [vmem:[%s896_s0 + $0x1a0] sm:$0xff]  ;;  %v67_v9 = vld [vmem:[%s896_s0 + $0x1a8] sm:$0xff] }
  0x1f   :  { %315 = vst [vmem:[%s899_s3 + $0xf8] sm:$0xff] %v251_v14  ;;  %v190_v23 = vadd.f32 %v385_v2, %v119_v16  ;;  %v191_v24 = vadd.f32 %v385_v2, %v120_v17  ;;  %v124_v25 = vmul.f32 %v380_v1, %v53_v13  ;;  %v252_v27 = vmax.f32 %v188_v18, 0.0  ;;  %v68_v10 = vld [vmem:[%s896_s0 + $0x1b0] sm:$0xff]  ;;  %v69_v15 = vld [vmem:[%s896_s0 + $0x1b8] sm:$0xff] }
  0x20   :  { %v192_v28 = vadd.f32 %v385_v2, %v121_v19  ;;  %v193_v29 = vadd.f32 %v385_v2, %v122_v20  ;;  %v194_v30 = vadd.f32 %v385_v2, %v123_v21  ;;  %v253_v34 = vmax.f32 %v189_v22, 0.0 }
  0x21   :  { %v254_v35 = vmax.f32 %v190_v23, 0.0  ;;  %v255_v36 = vmax.f32 %v191_v24, 0.0  ;;  %v195_v37 = vadd.f32 %v385_v2, %v124_v25  ;;  %316 = vst [vmem:[%s899_s3 + $0x100] sm:$0xff] %v252_v27  ;;  %v125_v44 = vmul.f32 %v380_v1, %v54_v26 }
  0x22   :  { %v256_v41 = vmax.f32 %v192_v28, 0.0  ;;  %v257_v42 = vmax.f32 %v193_v29, 0.0  ;;  %v258_v43 = vmax.f32 %v194_v30, 0.0  ;;  %317 = vst [vmem:[%s899_s3 + $0x108] sm:$0xff] %v253_v34  ;;  %v126_v47 = vmul.f32 %v380_v1, %v55_v31  ;;  %v70_v28 = vld [vmem:[%s896_s0 + $0x1c0] sm:$0xff]  ;;  %v72_v34 = vld [vmem:[%s896_s0 + $0x1d0] sm:$0xff] }
  0x23   :  { %318 = vst [vmem:[%s899_s3 + $0x110] sm:$0xff] %v254_v35  ;;  %319 = vst [vmem:[%s899_s3 + $0x118] sm:$0xff] %v255_v36  ;;  %v259_v46 = vmax.f32 %v195_v37, 0.0  ;;  %v127_v48 = vmul.f32 %v380_v1, %v56_v32  ;;  %v128_v49 = vmul.f32 %v380_v1, %v57_v33  ;;  %v196_v50 = vadd.f32 %v385_v2, %v125_v44  ;;  %v71_v33 = vld [vmem:[%s896_s0 + $0x1c8] sm:$0xff]  ;;  %v73_v35 = vld [vmem:[%s896_s0 + $0x1d8] sm:$0xff] }
  0x24   :  { %320 = vst [vmem:[%s899_s3 + $0x120] sm:$0xff] %v256_v41  ;;  %321 = vst [vmem:[%s899_s3 + $0x128] sm:$0xff] %v257_v42  ;;  %v129_v51 = vmul.f32 %v380_v1, %v58_v38  ;;  %v130_v52 = vmul.f32 %v380_v1, %v59_v39  ;;  %v131_v53 = vmul.f32 %v380_v1, %v60_v40  ;;  %v74_v40 = vld [vmem:[%s896_s0 + $0x1e0] sm:$0xff]  ;;  %v75_v41 = vld [vmem:[%s896_s0 + $0x1e8] sm:$0xff] }
  0x25   :  { %322 = vst [vmem:[%s899_s3 + $0x130] sm:$0xff] %v258_v43  ;;  %323 = vst [vmem:[%s899_s3 + $0x138] sm:$0xff] %v259_v46  ;;  %v197_v54 = vadd.f32 %v385_v2, %v126_v47  ;;  %v198_v55 = vadd.f32 %v385_v2, %v127_v48  ;;  %v199_v56 = vadd.f32 %v385_v2, %v128_v49  ;;  %v260_v59 = vmax.f32 %v196_v50, 0.0  ;;  %v76_v42 = vld [vmem:[%s896_s0 + $0x1f0] sm:$0xff]  ;;  %v77_v47 = vld [vmem:[%s896_s0 + $0x1f8] sm:$0xff] }
  0x26   :  { %v132_v57 = vmul.f32 %v380_v1, %v61_v45  ;;  %v200_v60 = vadd.f32 %v385_v2, %v129_v51  ;;  %v201_v61 = vadd.f32 %v385_v2, %v130_v52  ;;  %v202_v62 = vadd.f32 %v385_v2, %v131_v53 }
  0x27   :  { %v261_v4 = vmax.f32 %v197_v54, 0.0  ;;  %v262_v5 = vmax.f32 %v198_v55, 0.0  ;;  %v263_v6 = vmax.f32 %v199_v56, 0.0  ;;  %324 = vst [vmem:[%s899_s3 + $0x140] sm:$0xff] %v260_v59  ;;  %v133_v14 = vmul.f32 %v380_v1, %v62_v58 }
  0x28   :  { %v203_v7 = vadd.f32 %v385_v2, %v132_v57  ;;  %v264_v11 = vmax.f32 %v200_v60, 0.0  ;;  %v265_v12 = vmax.f32 %v201_v61, 0.0  ;;  %v266_v13 = vmax.f32 %v202_v62, 0.0 }
  0x29   :  { %325 = vst [vmem:[%s899_s3 + $0x148] sm:$0xff] %v261_v4  ;;  %326 = vst [vmem:[%s899_s3 + $0x150] sm:$0xff] %v262_v5  ;;  %v134_v17 = vmul.f32 %v380_v1, %v63_v63  ;;  %v135_v18 = vmul.f32 %v380_v1, %v64_v0  ;;  %v136_v19 = vmul.f32 %v380_v1, %v65_v3 }
  0x2a   :  { %327 = vst [vmem:[%s899_s3 + $0x158] sm:$0xff] %v263_v6  ;;  %v267_v16 = vmax.f32 %v203_v7, 0.0  ;;  %328 = vst [vmem:[%s899_s3 + $0x160] sm:$0xff] %v264_v11  ;;  %v204_v20 = vadd.f32 %v385_v2, %v133_v14  ;;  %v137_v21 = vmul.f32 %v380_v1, %v66_v8  ;;  %v138_v22 = vmul.f32 %v380_v1, %v67_v9 }
  0x2b   :  { %329 = vst [vmem:[%s899_s3 + $0x168] sm:$0xff] %v265_v12  ;;  %330 = vst [vmem:[%s899_s3 + $0x170] sm:$0xff] %v266_v13  ;;  %v139_v23 = vmul.f32 %v380_v1, %v68_v10  ;;  %v205_v24 = vadd.f32 %v385_v2, %v134_v17  ;;  %v206_v25 = vadd.f32 %v385_v2, %v135_v18 }
  0x2c   :  { %331 = vst [vmem:[%s899_s3 + $0x178] sm:$0xff] %v267_v16  ;;  %v207_v26 = vadd.f32 %v385_v2, %v136_v19  ;;  %v140_v27 = vmul.f32 %v380_v1, %v69_v15  ;;  %v268_v29 = vmax.f32 %v204_v20, 0.0  ;;  %v208_v30 = vadd.f32 %v385_v2, %v137_v21 }
  0x2d   :  { %v209_v31 = vadd.f32 %v385_v2, %v138_v22  ;;  %v210_v32 = vadd.f32 %v385_v2, %v139_v23  ;;  %v269_v36 = vmax.f32 %v205_v24, 0.0  ;;  %v270_v37 = vmax.f32 %v206_v25, 0.0 }
  0x2e   :  { %v271_v38 = vmax.f32 %v207_v26, 0.0  ;;  %v211_v39 = vadd.f32 %v385_v2, %v140_v27  ;;  %332 = vst [vmem:[%s899_s3 + $0x180] sm:$0xff] %v268_v29  ;;  %v272_v43 = vmax.f32 %v208_v30, 0.0  ;;  %v141_v46 = vmul.f32 %v380_v1, %v70_v28 }
  0x2f   :  { %v273_v44 = vmax.f32 %v209_v31, 0.0  ;;  %v274_v45 = vmax.f32 %v210_v32, 0.0  ;;  %333 = vst [vmem:[%s899_s3 + $0x188] sm:$0xff] %v269_v36  ;;  %334 = vst [vmem:[%s899_s3 + $0x190] sm:$0xff] %v270_v37  ;;  %v142_v49 = vmul.f32 %v380_v1, %v71_v33  ;;  %v143_v50 = vmul.f32 %v380_v1, %v72_v34 }
  0x30   :  { %335 = vst [vmem:[%s899_s3 + $0x198] sm:$0xff] %v271_v38  ;;  %v275_v48 = vmax.f32 %v211_v39, 0.0  ;;  %v144_v51 = vmul.f32 %v380_v1, %v73_v35  ;;  %336 = vst [vmem:[%s899_s3 + $0x1a0] sm:$0xff] %v272_v43  ;;  %v212_v52 = vadd.f32 %v385_v2, %v141_v46  ;;  %v145_v53 = vmul.f32 %v380_v1, %v74_v40 }
  0x31   :  { %337 = vst [vmem:[%s899_s3 + $0x1a8] sm:$0xff] %v273_v44  ;;  %338 = vst [vmem:[%s899_s3 + $0x1b0] sm:$0xff] %v274_v45  ;;  %v146_v54 = vmul.f32 %v380_v1, %v75_v41  ;;  %v147_v55 = vmul.f32 %v380_v1, %v76_v42  ;;  %v213_v56 = vadd.f32 %v385_v2, %v142_v49 }
  0x32   :  { %339 = vst [vmem:[%s899_s3 + $0x1b8] sm:$0xff] %v275_v48  ;;  %v214_v57 = vadd.f32 %v385_v2, %v143_v50  ;;  %v215_v58 = vadd.f32 %v385_v2, %v144_v51  ;;  %v148_v59 = vmul.f32 %v380_v1, %v77_v47  ;;  %v276_v60 = vmax.f32 %v212_v52, 0.0 }
  0x33   :  { %v216_v61 = vadd.f32 %v385_v2, %v145_v53  ;;  %v217_v62 = vadd.f32 %v385_v2, %v146_v54  ;;  %v218_v63 = vadd.f32 %v385_v2, %v147_v55  ;;  %v277_v0 = vmax.f32 %v213_v56, 0.0 }
  0x34   :  { %v278_v3 = vmax.f32 %v214_v57, 0.0  ;;  %v279_v4 = vmax.f32 %v215_v58, 0.0  ;;  %v219_v5 = vadd.f32 %v385_v2, %v148_v59  ;;  %340 = vst [vmem:[%s899_s3 + $0x1c0] sm:$0xff] %v276_v60 }
  0x35   :  { %v280_v6 = vmax.f32 %v216_v61, 0.0  ;;  %v281_v7 = vmax.f32 %v217_v62, 0.0  ;;  %v282_v8 = vmax.f32 %v218_v63, 0.0  ;;  %341 = vst [vmem:[%s899_s3 + $0x1c8] sm:$0xff] %v277_v0 }
  0x36   :  { %342 = vst [vmem:[%s899_s3 + $0x1d0] sm:$0xff] %v278_v3  ;;  %343 = vst [vmem:[%s899_s3 + $0x1d8] sm:$0xff] %v279_v4  ;;  %v283_v1 = vmax.f32 %v219_v5, 0.0 }
  0x37   :  { %344 = vst [vmem:[%s899_s3 + $0x1e0] sm:$0xff] %v280_v6  ;;  %345 = vst [vmem:[%s899_s3 + $0x1e8] sm:$0xff] %v281_v7 }
  0x38   :  { %346 = vst [vmem:[%s899_s3 + $0x1f0] sm:$0xff] %v282_v8  ;;  %347 = vst [vmem:[%s899_s3 + $0x1f8] sm:$0xff] %v283_v1 }

// kernel: _block_forward_nchw.6
= control target key start
LH: loop header
LB: loop body
LE: loop exit
PB: predicated region body
PF: predicated region fallthrough
CT: control target
= control target key end

     0   :  { %s3024_s15 = smov 0   ;;  %s3681_s0 = inlined_call_operand.vmem [shape: bf16[4,10,18,128], index: 0, kind: input, shape index: {}]   ;;  %s3682_s1 = inlined_call_operand.vmem [shape: bf16[3,3,128,128], index: 1, kind: input, shape index: {}]   ;;  %s3683_s2 = inlined_call_operand.vmem [shape: f32[512,128], index: 2, kind: output, shape index: {0}]   ;;  %s3684_s3 = inlined_call_operand.vmem [shape: f32[4,1,128], index: 3, kind: output, shape index: {1}]   ;;  %s3685_s4 = inlined_call_operand.vmem [shape: f32[4,1,128], index: 4, kind: output, shape index: {2}]  }
   0x1 LB: > { %s3030_s16 = sadd.s32 4294967295, %s2997_s15   ;;  %p2226_p0 = scmp.ge.s32.totalorder %s2997_s15, 1  ;;  %s2997_s15 = sphi %s3024_s15, %s15_s15  }
   0x2   : > { %p167_p1 = scmp.lt.s32.totalorder %s2997_s15, 5 }
   0x4   : > { %p168_p2 = pnand %p2226_p0, %p167_p1 }
   0x5   : > { %v2899_v0 = vld [vmem:[%s3682_s1 + $0x40] sm:$0xff] (!%p168_p2)   ;;  %p199_p3 = scmp.lt.s32.totalorder (!%p168_p2), %s3030_s16, 3  ;;  %v2901_v2 = vld [vmem:[%s3682_s1 + $0x48] sm:$0xff] (!%p168_p2)   ;;  %v2903_v4 = vld [vmem:[%s3682_s1 + $0x50] sm:$0xff] (!%p168_p2)   ;;  %vm453_vm0 = vcmask (!%p168_p2), 1046528   ;;  %vm808_vm1 = vcmask (!%p168_p2), 1045504  }
   0x6   : > { %171 = sbr.rel (%p168_p2) target bundleno = 429 (0x1ad), region = 28  ;;  %v2900_v1 = vld [vmem:[%s3682_s1 + $0x100] sm:$0xff] (!%p168_p2)   ;;  %2458 = vmatprep.subr.bf16.mxu1 (!%p168_p2), %v2899_v0  ;;  %v2902_v3 = vld [vmem:[%s3682_s1 + $0x108] sm:$0xff] (!%p168_p2)   ;;  %v2904_v5 = vld [vmem:[%s3682_s1 + $0x110] sm:$0xff] (!%p168_p2)   ;;  %s2228_s30 = sshll.u32 (!%p168_p2), %s3030_s16, 4 }
   0x7   : > { %2586 = vmatprep.subr.bf16.mxu0 (!%p168_p2), %v2900_v1  ;;  %2459 = vmatpush3.bf16.msra.mxu1 (!%p168_p2), %v2899_v0  ;;  %v2905_v6 = vld [vmem:[%s3682_s1 + $0x58] sm:$0xff] (!%p168_p2)   ;;  %v2907_v8 = vld [vmem:[%s3682_s1 + $0x60] sm:$0xff] (!%p168_p2)   ;;  %v2909_v10 = vld [vmem:[%s3682_s1 + $0x68] sm:$0xff] (!%p168_p2)   ;;  %p205_p4 = scmp.lt.s32.totalorder (!%p168_p2), %s2228_s30, 63 }
   0x8   : > { %2587 = vmatpush3.bf16.msra.mxu0 (!%p168_p2), %v2900_v1  ;;  %2460 = vmatprep.subr.bf16.mxu1 (!%p168_p2), %v2901_v2  ;;  %v2906_v7 = vld [vmem:[%s3682_s1 + $0x118] sm:$0xff] (!%p168_p2)   ;;  %v2908_v9 = vld [vmem:[%s3682_s1 + $0x120] sm:$0xff] (!%p168_p2)   ;;  %v2910_v11 = vld [vmem:[%s3682_s1 + $0x128] sm:$0xff] (!%p168_p2)  }
   0x9   : > { %2588 = vmatprep.subr.bf16.mxu0 (!%p168_p2), %v2902_v3  ;;  %v2911_v28 = vld [vmem:[%s3682_s1 + $0x70] sm:$0xff] (!%p168_p2)   ;;  %v2913_v42 = vld [vmem:[%s3682_s1 + $0x78] sm:$0xff] (!%p168_p2)   ;;  %v2916_v58 = vld [vmem:[%s3682_s1] sm:$0xff] (!%p168_p2)  }
   0xa   : > { %v2912_v29 = vld [vmem:[%s3682_s1 + $0x130] sm:$0xff] (!%p168_p2)   ;;  %v2914_v47 = vld [vmem:[%s3682_s1 + $0x138] sm:$0xff] (!%p168_p2)   ;;  %v2917_v0 = vld [vmem:[%s3682_s1 + $0x140] sm:$0xff] (!%p168_p2)  }
   0xb   : > { %2461 = vmatpush3.bf16.msra.mxu1 (!%p168_p2), %v2901_v2 }
   0xc   : > { %2589 = vmatpush3.bf16.msra.mxu0 (!%p168_p2), %v2902_v3  ;;  %2462 = vmatprep.subr.bf16.mxu1 (!%p168_p2), %v2903_v4 }
   0xd   : > { %s3054_s29 = scalar_select %p199_p3, %s3030_s16, 3  ;;  %2590 = vmatprep.subr.bf16.mxu0 %v2904_v5 }
   0xe   : > { %s3687_s30 = smov (!%p205_p4, %s2228_s30), 63 }
   0xf   : > { %s2890_s8 = smul.u32 120, %s3054_s29  ;;  %2463 = vmatpush3.bf16.msra.mxu1 %v2903_v4  ;;  %s2229_s16 = sshll.u32 %s3687_s30, 3 }
  0x10   : > { %2591 = vmatpush3.bf16.msra.mxu0 %v2904_v5  ;;  %2464 = vmatprep.subr.bf16.mxu1 %v2905_v6  ;;  %s3630_s7 = scalar_lea.vmem %s3683_s2, %s2229_s16  ;;  %s212_s10 = scalar_lea.vmem %s3684_s3, %s3054_s29 }
  0x11   : > { %2592 = vmatprep.subr.bf16.mxu0 %v2906_v7  ;;  %s3072_s17 = scalar_lea.vmem %s3681_s0, %s2890_s8  ;;  %s215_s13 = scalar_lea.vmem %s3685_s4, %s3054_s29 }
  0x12   : > { %v3081_v12 = vld [vmem:[%s3072_s17] sm:$0xff]   ;;  %v3084_v13 = vld [vmem:[%s3072_s17 + $0x8] sm:$0x1]  ;;  %v3087_v14 = vld [vmem:[%s3072_s17 + $0xc] sm:$0xff]  }
  0x13   : > { %2465 = vmatpush3.bf16.msra.mxu1 %v2905_v6  ;;  %v247_v15 = vunpack.c.l.bf16 %v3081_v12  ;;  %v248_v16 = vunpack.c.h.bf16 %v3081_v12  ;;  %v249_v17 = vunpack.c.l.bf16 %v3084_v13  ;;  %v3093_v18 = vld [vmem:[%s3072_s17 + $0x14] sm:$0x1]  ;;  %v250_v19 = vunpack.c.l.bf16 %v3087_v14  ;;  %v3099_v22 = vld [vmem:[%s3072_s17 + $0x18] sm:$0xff]   ;;  %v3102_v23 = vld [vmem:[%s3072_s17 + $0x20] sm:$0x1] }
  0x14   : > { %2593 = vmatpush3.bf16.msra.mxu0 %v2906_v7  ;;  %2466 = vmatprep.subr.bf16.mxu1 %v2907_v8  ;;  %v251_v20 = vunpack.c.h.bf16 %v3087_v14  ;;  %v252_v21 = vunpack.c.l.bf16 %v3093_v18  ;;  %v253_v32 = vunpack.c.l.bf16 %v3099_v22  ;;  %v254_v33 = vunpack.c.h.bf16 %v3099_v22  ;;  %v3132_v41 = vld [vmem:[%s3072_s17 + $0x24] sm:$0xff]   ;;  %v3142_v46 = vld [vmem:[%s3072_s17 + $0x2c] sm:$0x1]  ;;  %v3152_v52 = vld [vmem:[%s3072_s17 + $0x30] sm:$0xff]  }
  0x15   : > { %2594 = vmatprep.subr.bf16.mxu0 %v2908_v9  ;;  %v454_v24 = vrot.slane %v247_v15, 1  ;;  %v455_v25 = vrot.slane %v248_v16, 1  ;;  %v457_v26 = vrot.slane %v249_v17, 1  ;;  %v459_v27 = vrot.slane %v250_v19, 1  ;;  %v3155_v53 = vld [vmem:[%s3072_s17 + $0x38] sm:$0x1] }
  0x16   : > { %v460_v30 = vrot.slane %v251_v20, 1  ;;  %v462_v31 = vrot.slane %v252_v21, 1  ;;  %v255_v36 = vunpack.c.l.bf16 %v3102_v23  ;;  %v464_v40 = vrot.slane %v253_v32, 1  ;;  %v3171_v62 = vld [vmem:[%s3072_s17 + $0x3c] sm:$0xff]   ;;  %v3179_v1 = vld [vmem:[%s3072_s17 + $0x44] sm:$0x1] }
  0x17   : > { %2467 = vmatpush3.bf16.msra.mxu1 %v2907_v8  ;;  %v456_v34 = vsel %vm453_vm0, %v454_v24, %v455_v25  ;;  %v458_v35 = vsel %vm453_vm0, %v455_v25, %v457_v26  ;;  %v465_v44 = vrot.slane %v254_v33, 1  ;;  %v256_v48 = vunpack.c.l.bf16 %v3132_v41  ;;  %v2918_v6 = vld [vmem:[%s3682_s1 + $0x8] sm:$0xff]   ;;  %v3202_v25 = vld [vmem:[%s3072_s17 + $0x50] sm:$0x1] }
  0x18   : > { %2595 = vmatpush3.bf16.msra.mxu0 %v2908_v9  ;;  %2468 = vmatprep.subr.bf16.mxu1 %v2909_v10  ;;  %v510_v37 = vpack.c.bf16 %v458_v35, %v456_v34  ;;  %v461_v38 = vsel %vm453_vm0, %v459_v27, %v460_v30  ;;  %v463_v39 = vsel %vm453_vm0, %v460_v30, %v462_v31  ;;  %v467_v45 = vrot.slane %v255_v36, 1  ;;  %v2919_v24 = vld [vmem:[%s3682_s1 + $0x148] sm:$0xff]   ;;  %v2929_v18 = vld [vmem:[%s3682_s1 + $0x170] sm:$0xff]  }
  0x19   : > { %2596 = vmatprep.subr.bf16.mxu0 %v2910_v11  ;;  %v511_v43 = vpack.c.bf16 %v463_v39, %v461_v38  ;;  %v257_v49 = vunpack.c.h.bf16 %v3132_v41  ;;  %v466_v50 = vsel %vm453_vm0, %v464_v40, %v465_v44  ;;  %v258_v51 = vunpack.c.l.bf16 %v3142_v46  ;;  %v2920_v38 = vld [vmem:[%s3682_s1 + $0x10] sm:$0xff]   ;;  %v3225_v40 = vld [vmem:[%s3072_s17 + $0x5c] sm:$0x1]  ;;  %v2934_v46 = vld [vmem:[%s3682_s1 + $0x180] sm:$0xff]  }
  0x1a   : > { %2474 = vmatprep.mubr.bf16.mxu1 %v510_v37  ;;  %v468_v54 = vsel %vm453_vm0, %v465_v44, %v467_v45  ;;  %v469_v55 = vrot.slane %v256_v48, 1  ;;  %v259_v57 = vunpack.c.l.bf16 %v3152_v52  ;;  %v260_v60 = vunpack.c.h.bf16 %v3152_v52  ;;  %v3218_v37 = vld [vmem:[%s3072_s17 + $0x54] sm:$0xff]  }
  0x1b   : > { %2469 = vmatpush3.bf16.msra.mxu1 %v2909_v10  ;;  %2602 = vmatprep.mubr.bf16.mxu0 %v511_v43  ;;  %v470_v56 = vrot.slane %v257_v49, 1  ;;  %v472_v59 = vrot.slane %v258_v51, 1  ;;  %v261_v61 = vunpack.c.l.bf16 %v3155_v53  ;;  %v3173_v63 = vpack.c.bf16 %v468_v54, %v466_v50  ;;  %v2922_v44 = vld [vmem:[%s3682_s1 + $0x18] sm:$0xff]   ;;  %v2939_v53 = vld [vmem:[%s3682_s1 + $0x90] sm:$0xff]  }
  0x1c   : > { %2597 = vmatpush3.bf16.msra.mxu0 %v2910_v11  ;;  %2470 = vmatprep.subr.bf16.mxu1 %v2911_v28  ;;  %v474_v3 = vrot.slane %v259_v57, 1  ;;  %v262_v4 = vunpack.c.l.bf16 %v3171_v62  ;;  %v263_v5 = vunpack.c.h.bf16 %v3171_v62  ;;  %v475_v8 = vrot.slane %v260_v60, 1  ;;  %v3196_v11 = vld [vmem:[%s3072_s17 + $0x48] sm:$0xff]   ;;  %v2923_v54 = vld [vmem:[%s3682_s1 + $0x158] sm:$0xff]  }
  0x1d   : > { %2598 = vmatprep.subr.bf16.mxu0 %v2912_v29  ;;  %v471_v2 = vsel %vm453_vm0, %v469_v55, %v470_v56  ;;  %v473_v7 = vsel %vm453_vm0, %v470_v56, %v472_v59  ;;  %v477_v9 = vrot.slane %v261_v61, 1  ;;  %v264_v10 = vunpack.c.l.bf16 %v3179_v1 }
  0x1e   : > { %v3204_v26 = vpack.c.bf16 %v473_v7, %v471_v2  ;;  %v479_v27 = vrot.slane %v262_v4, 1  ;;  %v476_v30 = vsel %vm453_vm0, %v474_v3, %v475_v8  ;;  %v266_v35 = vunpack.c.h.bf16 %v3196_v11  ;;  %v3252_v2 = vld [vmem:[%s3072_s17 + $0x60] sm:$0xff]   ;;  %v3255_v3 = vld [vmem:[%s3072_s17 + $0x68] sm:$0x1] }
  0x1f   : > { %2471 = vmatpush3.bf16.msra.mxu1 %v2911_v28  ;;  %v480_v28 = vrot.slane %v263_v5, 1  ;;  %v478_v31 = vsel %vm453_vm0, %v475_v8, %v477_v9  ;;  %v482_v34 = vrot.slane %v264_v10, 1  ;;  %v267_v39 = vunpack.c.l.bf16 %v3202_v25 }
  0x20   : > { %2599 = vmatpush3.bf16.msra.mxu0 %v2912_v29  ;;  %2472 = vmatprep.subr.bf16.mxu1 %v2913_v42  ;;  %v265_v29 = vunpack.c.l.bf16 %v3196_v11  ;;  %v268_v50 = vunpack.c.l.bf16 %v3218_v37  ;;  %v485_v56 = vrot.slane %v266_v35, 1  ;;  %v270_v59 = vunpack.c.l.bf16 %v3225_v40  ;;  %v2946_v40 = vld [vmem:[%s3682_s1 + $0x1a0] sm:$0xff]  }
  0x21   : > { %2600 = vmatprep.subr.bf16.mxu0 %v2914_v47  ;;  %v481_v45 = vsel %vm453_vm0, %v479_v27, %v480_v28  ;;  %v483_v55 = vsel %vm453_vm0, %v480_v28, %v482_v34  ;;  %v2924_v27 = vld [vmem:[%s3682_s1 + $0x20] sm:$0xff]   ;;  %v273_v34 = vunpack.c.l.bf16 %v3255_v3  ;;  %v810_v23 = vrot.slane %v248_v16, 2  ;;  %v2951_v3 = vld [vmem:[%s3682_s1 + $0xb0] sm:$0xff]  }
  0x22   : > { %v489_v7 = vrot.slane %v268_v50, 1  ;;  %v825_v13 = vrot.slane %v257_v49, 2  ;;  %v842_v1 = vrot.slane %v267_v39, 2  ;;  %v844_v25 = vrot.slane %v268_v50, 2 }
  0x23   : > { %2473 = vmatpush3.bf16.msra.mxu1 %v2913_v42  ;;  %v2921_v42 = vld [vmem:[%s3682_s1 + $0x150] sm:$0xff]  }
  0x24   : > { %2601 = vmatpush3.bf16.msra.mxu0 %v2914_v47  ;;  %2490 = vmatprep.subr.bf16.mxu1 %v2916_v58  ;;  %v484_v47 = vrot.slane %v265_v29, 1 }
  0x25   : > { %2618 = vmatprep.subr.bf16.mxu0 %v2917_v0 }
  0x26   : > { %2475 = vmatmul.mubr.bf16.vlgmr.msra.gmra.mrb[0].mxu1 %v511_v43  ;;  %v3232_v43 = vpack.c.bf16 %v478_v31, %v476_v30  ;;  %v486_v8 = vsel %vm453_vm0, %v484_v47, %v485_v56  ;;  %v271_v30 = vunpack.c.l.bf16 %v3252_v2  ;;  %v272_v31 = vunpack.c.h.bf16 %v3252_v2 }
  0x27   : > { %2603 = vmatmul.mubr.bf16.vlgmr.msra.gmra.mrb[0].mxu0 %v3173_v63  ;;  %2491 = vmatpush3.bf16.msra.mxu1 %v2916_v58  ;;  %v269_v58 = vunpack.c.h.bf16 %v3218_v37 }
  0x28   : > { %2619 = vmatpush3.bf16.msra.mxu0 %v2917_v0  ;;  %2492 = vmatprep.subr.bf16.mxu1 %v2918_v6  ;;  %v487_v0 = vrot.slane %v267_v39, 1  ;;  %v2942_v39 = vld [vmem:[%s3682_s1 + $0x198] sm:$0xff]  }
  0x29   : > { %2620 = vmatprep.subr.bf16.mxu0 %v2919_v24  ;;  %2478 = vmatprep.mubr.bf16.mxu1 %v3173_v63  ;;  %v490_v9 = vrot.slane %v269_v58, 1  ;;  %v845_v50 = vrot.slane %v269_v58, 2 }
  0x2a   : > { %2606 = vmatprep.mubr.bf16.mxu0 %v3204_v26  ;;  %v488_v28 = vsel %vm453_vm0, %v485_v56, %v487_v0  ;;  %v1199_v56 = vrot.slane %v271_v30, 1  ;;  %v1200_v0 = vrot.slane %v272_v31, 1 }
  0x2b   : > { %2493 = vmatpush3.bf16.msra.mxu1 %v2918_v6  ;;  %v3258_v6 = vpack.c.bf16 %v483_v55, %v481_v45  ;;  %v491_v45 = vsel %vm453_vm0, %v489_v7, %v490_v9  ;;  %v2926_v55 = vld [vmem:[%s3682_s1 + $0x28] sm:$0xff]  }
  0x2c   : > { %2621 = vmatpush3.bf16.msra.mxu0 %v2919_v24  ;;  %2494 = vmatprep.subr.bf16.mxu1 %v2920_v38  ;;  %v492_v24 = vrot.slane %v270_v59, 1  ;;  %v2927_v7 = vld [vmem:[%s3682_s1 + $0x168] sm:$0xff]  }
  0x2d   : > { %2622 = vmatprep.subr.bf16.mxu0 %v2921_v42 }
  0x2e   : > { %2479 = vmatmul.mubr.bf16.gmra.mrb[4].mxu1 %v3204_v26  ;;  %v493_v47 = vsel %vm453_vm0, %v490_v9, %v492_v24  ;;  %v815_v9 = vrot.slane %v251_v20, 2  ;;  %v817_v24 = vrot.slane %v252_v21, 2  ;;  %v820_v20 = vrot.slane %v254_v33, 2  ;;  %v2930_v33 = vld [vmem:[%s3682_s1 + $0x38] sm:$0xff]  }
  0x2f   : > { %2607 = vmatmul.mubr.bf16.gmra.mrb[4].mxu0 %v3232_v43  ;;  %2495 = vmatpush3.bf16.msra.mxu1 %v2920_v38  ;;  %v2925_v38 = vld [vmem:[%s3682_s1 + $0x160] sm:$0xff]   ;;  %v822_v21 = vrot.slane %v255_v36, 2  ;;  %v2931_v36 = vld [vmem:[%s3682_s1 + $0x178] sm:$0xff]  }
  0x30   : > { %2623 = vmatpush3.bf16.msra.mxu0 %v2921_v42  ;;  %2496 = vmatprep.subr.bf16.mxu1 %v2922_v44  ;;  %v3280_v42 = vpack.c.bf16 %v488_v28, %v486_v8  ;;  %v3299_v8 = vpack.c.bf16 %v493_v47, %v491_v45  ;;  %v2928_v28 = vld [vmem:[%s3682_s1 + $0x30] sm:$0xff]   ;;  %v818_v47 = vsel %vm808_vm1, %v815_v9, %v817_v24 }
  0x31   : > { %2624 = vmatprep.subr.bf16.mxu0 %v2923_v54  ;;  %2482 = vmatprep.mubr.bf16.mxu1 %v3232_v43  ;;  %v823_v16 = vsel %vm808_vm1, %v820_v20, %v822_v21  ;;  %v837_v21 = vrot.slane %v264_v10, 2  ;;  %v3411_v10 = vld [vmem:[%s3072_s17 + $0x6c] sm:$0xff]  }
  0x32   : > { %2610 = vmatprep.mubr.bf16.mxu0 %v3258_v6 }
  0x33   : > { %2497 = vmatpush3.bf16.msra.mxu1 %v2922_v44  ;;  %v1202_v44 = vrot.slane %v273_v34, 1 }
  0x34   : > { %2625 = vmatpush3.bf16.msra.mxu0 %v2923_v54  ;;  %2498 = vmatprep.subr.bf16.mxu1 %v2924_v27  ;;  %v814_v54 = vrot.slane %v250_v19, 2  ;;  %v1201_v19 = vsel %vm453_vm0, %v1199_v56, %v1200_v0  ;;  %v809_v56 = vrot.slane %v247_v15, 2 }
  0x35   : > { %2626 = vmatprep.subr.bf16.mxu0 %v2925_v38  ;;  %v1203_v45 = vsel %vm453_vm0, %v1200_v0, %v1202_v44  ;;  %v824_v44 = vrot.slane %v256_v48, 2  ;;  %v2933_v48 = vld [vmem:[%s3682_s1 + $0x80] sm:$0xff]  }
  0x36   : > { %2483 = vmatmul.mubr.bf16.gmra.mrb[8].mxu1 %v3258_v6 }
  0x37   : > { %2611 = vmatmul.mubr.bf16.gmra.mrb[8].mxu0 %v3280_v42  ;;  %2499 = vmatpush3.bf16.msra.mxu1 %v2924_v27  ;;  %v819_v27 = vrot.slane %v253_v32, 2  ;;  %v816_v32 = vsel %vm808_vm1, %v814_v54, %v815_v9  ;;  %v826_v24 = vsel %vm808_vm1, %v824_v44, %v825_v13 }
  0x38   : > { %2627 = vmatpush3.bf16.msra.mxu0 %v2925_v38  ;;  %2500 = vmatprep.subr.bf16.mxu1 %v2926_v55  ;;  %v3322_v38 = vpack.c.bf16 %v1203_v45, %v1201_v19  ;;  %v3339_v15 = vpack.c.bf16 %v818_v47, %v816_v32  ;;  %v830_v19 = vrot.slane %v260_v60, 2  ;;  %v2935_v45 = vld [vmem:[%s3682_s1 + $0x88] sm:$0xff]   ;;  %v834_v60 = vrot.slane %v262_v4, 2  ;;  %v2940_v4 = vld [vmem:[%s3682_s1 + $0x190] sm:$0xff]  }
  0x39   : > { %2628 = vmatprep.subr.bf16.mxu0 %v2927_v7  ;;  %2486 = vmatprep.mubr.bf16.mxu1 %v3280_v42  ;;  %v821_v0 = vsel %vm808_vm1, %v819_v27, %v820_v20  ;;  %v835_v20 = vrot.slane %v263_v5, 2  ;;  %v839_v32 = vrot.slane %v265_v29, 2  ;;  %v840_v47 = vrot.slane %v266_v35, 2  ;;  %v2941_v35 = vld [vmem:[%s3682_s1 + $0x98] sm:$0xff]  }
  0x3a   : > { %2614 = vmatprep.mubr.bf16.mxu0 %v3299_v8  ;;  %v3366_v49 = vpack.c.bf16 %v823_v16, %v821_v0  ;;  %v275_v29 = vunpack.c.h.bf16 %v3411_v10 }
  0x3b   : > { %2501 = vmatpush3.bf16.msra.mxu1 %v2926_v55  ;;  %v812_v55 = vrot.slane %v249_v17, 2  ;;  %v827_v17 = vrot.slane %v258_v51, 2  ;;  %v829_v51 = vrot.slane %v259_v57, 2  ;;  %v2936_v57 = vld [vmem:[%s3682_s1 + $0x188] sm:$0xff]  }
  0x3c   : > { %2629 = vmatpush3.bf16.msra.mxu0 %v2927_v7  ;;  %2502 = vmatprep.subr.bf16.mxu1 %v2928_v28  ;;  %v3345_v7 = vsel %vm808_vm1, %v809_v56, %v810_v23  ;;  %v836_v56 = vsel %vm808_vm1, %v834_v60, %v835_v20  ;;  %v1872_v44 = vrot.slane %v275_v29, 2 }
  0x3d   : > { %2630 = vmatprep.subr.bf16.mxu0 %v2929_v18  ;;  %v3354_v54 = vsel %vm808_vm1, %v810_v23, %v812_v55  ;;  %v274_v23 = vunpack.c.l.bf16 %v3411_v10  ;;  %v1703_v55 = vrot.slane %v275_v29, 1  ;;  %v2955_v29 = vld [vmem:[%s3682_s1 + $0xc0] sm:$0xff]  }
  0x3e   : > { %2487 = vmatmul.mubr.bf16.gmra.mrb[12].mxu1 %v3299_v8  ;;  %v865_v9 = vpack.c.bf16 %v3354_v54, %v3345_v7  ;;  %v2959_v7 = vld [vmem:[%s3682_s1 + $0xd0] sm:$0xff]  }
  0x3f   : > { %2615 = vmatmul.mubr.bf16.gmra.mrb[12].mxu0 %v3322_v38  ;;  %2503 = vmatpush3.bf16.msra.mxu1 %v2928_v28  ;;  %v828_v28 = vsel %vm808_vm1, %v825_v13, %v827_v17  ;;  %v1871_v0 = vrot.slane %v274_v23, 2  ;;  %v841_v13 = vsel %vm808_vm1, %v839_v32, %v840_v47  ;;  %v843_v17 = vsel %vm808_vm1, %v840_v47, %v842_v1  ;;  %v2952_v32 = vld [vmem:[%s3682_s1 + $0x1b0] sm:$0xff]  }
  0x40   : > { %2631 = vmatpush3.bf16.msra.mxu0 %v2929_v18  ;;  %2504 = vmatprep.subr.bf16.mxu1 %v2930_v33  ;;  %v3383_v27 = vpack.c.bf16 %v828_v28, %v826_v24  ;;  %v2945_v24 = vld [vmem:[%s3682_s1 + $0xa0] sm:$0xff]   ;;  %v3449_v58 = vpack.c.bf16 %v843_v17, %v841_v13  ;;  %v2960_v54 = vld [vmem:[%s3682_s1 + $0x1d0] sm:$0xff]  }
  0x41   : > { %2632 = vmatprep.subr.bf16.mxu0 %v2931_v36  ;;  %2506 = vmatprep.mubr.bf16.mxu1 %v3081_v12  ;;  %v832_v12 = vrot.slane %v261_v61, 2  ;;  %v831_v61 = vsel %vm808_vm1, %v829_v51, %v830_v19  ;;  %v3439_v51 = vsel %vm808_vm1, %v1871_v0, %v1872_v44  ;;  %v2965_v0 = vld [vmem:[%s3682_s1 + $0xe8] sm:$0xff]   ;;  %v2968_v13 = vld [vmem:[%s3682_s1 + $0xf0] sm:$0xff]  }
  0x42   : > { %2634 = vmatprep.mubr.bf16.mxu0 %v3339_v15  ;;  %v2970_v17 = vld [vmem:[%s3682_s1 + $0x1f0] sm:$0xff]  }
  0x43   : > { %2505 = vmatpush3.bf16.msra.mxu1 %v2930_v33  ;;  %v833_v18 = vsel %vm808_vm1, %v830_v19, %v832_v12  ;;  %v838_v33 = vsel %vm808_vm1, %v835_v20, %v837_v21  ;;  %v1368_v19 = vrot.slane %v271_v30, 2  ;;  %v1369_v12 = vrot.slane %v272_v31, 2 }
  0x44   : > { %2633 = vmatpush3.bf16.msra.mxu0 %v2931_v36  ;;  %2522 = vmatprep.subr.bf16.mxu1 %v2933_v48  ;;  %v3406_v5 = vpack.c.bf16 %v833_v18, %v831_v61  ;;  %v1702_v36 = vrot.slane %v274_v23, 1  ;;  %v3426_v16 = vpack.c.bf16 %v838_v33, %v836_v56  ;;  %v2948_v61 = vld [vmem:[%s3682_s1 + $0x1a8] sm:$0xff]   ;;  %v2953_v33 = vld [vmem:[%s3682_s1 + $0xb8] sm:$0xff]  }
  0x45   : > { %2650 = vmatprep.subr.bf16.mxu0 %v2934_v46  ;;  %v1370_v20 = vsel %vm808_vm1, %v1368_v19, %v1369_v12  ;;  %v2954_v23 = vld [vmem:[%s3682_s1 + $0x1b8] sm:$0xff]  }
  0x46   : > { %2507 = vmatmul.mubr.bf16.vlgmr.msra.gmra.mrb[0].mxu1 %v3087_v14 }
  0x47   : > { %2635 = vmatmul.mubr.bf16.vlgmr.msra.gmra.mrb[0].mxu0 %v3366_v49  ;;  %2523 = vmatpush3.bf16.msra.mxu1 %v2933_v48  ;;  %v847_v48 = vrot.slane %v270_v59, 2  ;;  %v846_v59 = vsel %vm808_vm1, %v844_v25, %v845_v50  ;;  %v2957_v25 = vld [vmem:[%s3682_s1 + $0xc8] sm:$0xff]  }
  0x48   : > { %2651 = vmatpush3.bf16.msra.mxu0 %v2934_v46  ;;  %2524 = vmatprep.subr.bf16.mxu1 %v2935_v45  ;;  %v3436_v46 = vsel %vm453_vm0, %v1702_v36, %v1703_v55  ;;  %v2963_v36 = vld [vmem:[%s3682_s1 + $0xe0] sm:$0xff]  }
  0x49   : > { %2652 = vmatprep.subr.bf16.mxu0 %v2936_v57  ;;  %2510 = vmatprep.mubr.bf16.mxu1 %v3099_v22  ;;  %v848_v28 = vsel %vm808_vm1, %v845_v50, %v847_v48  ;;  %v2971_v50 = vld [vmem:[%s3682_s1 + $0xf8] sm:$0xff]  }
  0x4a   : > { %2638 = vmatprep.mubr.bf16.mxu0 %v3383_v27  ;;  %v3467_v30 = vpack.c.bf16 %v848_v28, %v846_v59  ;;  %v2972_v48 = vld [vmem:[%s3682_s1 + $0x1f8] sm:$0xff]  }
  0x4b   : > { %2525 = vmatpush3.bf16.msra.mxu1 %v2935_v45  ;;  %v246_v45 = vld [vmem:[%s3072_s17 + $0x74] sm:$0x1] }
  0x4c   : > { %2653 = vmatpush3.bf16.msra.mxu0 %v2936_v57  ;;  %2526 = vmatprep.subr.bf16.mxu1 %v2939_v53  ;;  %v2947_v57 = vld [vmem:[%s3682_s1 + $0xa8] sm:$0xff]   ;;  %v276_v60 = vunpack.c.l.bf16 %v246_v45 }
  0x4d   : > { %2654 = vmatprep.subr.bf16.mxu0 %v2940_v4 }
  0x4e   : > { %2511 = vmatmul.mubr.bf16.gmra.mrb[4].mxu1 %v3132_v41  ;;  %v1705_v31 = vrot.slane %v276_v60, 1  ;;  %v1874_v18 = vrot.slane %v276_v60, 2 }
  0x4f   : > { %2639 = vmatmul.mubr.bf16.gmra.mrb[4].mxu0 %v3406_v5  ;;  %2527 = vmatpush3.bf16.msra.mxu1 %v2939_v53  ;;  %v1371_v53 = vrot.slane %v273_v34, 2 }
  0x50   : > { %2655 = vmatpush3.bf16.msra.mxu0 %v2940_v4  ;;  %2528 = vmatprep.subr.bf16.mxu1 %v2941_v35  ;;  %v3476_v21 = vsel %vm453_vm0, %v1703_v55, %v1705_v31  ;;  %v3479_v4 = vsel %vm808_vm1, %v1872_v44, %v1874_v18  ;;  %v2964_v55 = vld [vmem:[%s3682_s1 + $0x1e0] sm:$0xff]   ;;  %v2966_v44 = vld [vmem:[%s3682_s1 + $0x1e8] sm:$0xff]  }
  0x51   : > { %2656 = vmatprep.subr.bf16.mxu0 %v2942_v39  ;;  %2514 = vmatprep.mubr.bf16.mxu1 %v3152_v52  ;;  %v1372_v34 = vsel %vm808_vm1, %v1369_v12, %v1371_v53  ;;  %v1709_v47 = vpack.c.bf16 %v3476_v21, %v3436_v46  ;;  %v1878_v1 = vpack.c.bf16 %v3479_v4, %v3439_v51 }
  0x52   : > { %2642 = vmatprep.mubr.bf16.mxu0 %v3426_v16  ;;  %v3490_v56 = vpack.c.bf16 %v1372_v34, %v1370_v20 }
  0x53   : > { %2529 = vmatpush3.bf16.msra.mxu1 %v2941_v35  ;;  %v2956_v35 = vld [vmem:[%s3682_s1 + $0x1c0] sm:$0xff]  }
  0x54   : > { %2657 = vmatpush3.bf16.msra.mxu0 %v2942_v39  ;;  %2530 = vmatprep.subr.bf16.mxu1 %v2945_v24  ;;  %v2958_v39 = vld [vmem:[%s3682_s1 + $0x1c8] sm:$0xff]  }
  0x55   : > { %2658 = vmatprep.subr.bf16.mxu0 %v2946_v40 }
  0x56   : > { %2515 = vmatmul.mubr.bf16.gmra.mrb[8].mxu1 %v3171_v62 }
  0x57   : > { %2643 = vmatmul.mubr.bf16.gmra.mrb[8].mxu0 %v3449_v58  ;;  %2531 = vmatpush3.bf16.msra.mxu1 %v2945_v24  ;;  %v2973_v24 = vld [vmem:[%s3682_s1 + $0x200] sm:$0xff]  }
  0x58   : > { %2659 = vmatpush3.bf16.msra.mxu0 %v2946_v40  ;;  %2532 = vmatprep.subr.bf16.mxu1 %v2947_v57  ;;  %v2974_v40 = vld [vmem:[%s3682_s1 + $0x208] sm:$0xff]  }
  0x59   : > { %2660 = vmatprep.subr.bf16.mxu0 %v2948_v61  ;;  %2518 = vmatprep.mubr.bf16.mxu1 %v3196_v11 }
  0x5a   : > { %2646 = vmatprep.mubr.bf16.mxu0 %v3467_v30 }
  0x5b   : > { %2533 = vmatpush3.bf16.msra.mxu1 %v2947_v57 }
  0x5c   : > { %2661 = vmatpush3.bf16.msra.mxu0 %v2948_v61  ;;  %2534 = vmatprep.subr.bf16.mxu1 %v2951_v3 }
  0x5d   : > { %2662 = vmatprep.subr.bf16.mxu0 %v2952_v32 }
  0x5e   : > { %2519 = vmatmul.mubr.bf16.gmra.mrb[12].mxu1 %v3218_v37 }
  0x5f   : > { %2647 = vmatmul.mubr.bf16.gmra.mrb[12].mxu0 %v3490_v56  ;;  %2535 = vmatpush3.bf16.msra.mxu1 %v2951_v3 }
  0x60   : > { %2663 = vmatpush3.bf16.msra.mxu0 %v2952_v32  ;;  %2536 = vmatprep.subr.bf16.mxu1 %v2953_v33 }
  0x61   : > { %2664 = vmatprep.subr.bf16.mxu0 %v2954_v23  ;;  %2538 = vmatprep.mubr.bf16.mxu1 %v865_v9  ;;  %v2962_v9 = vld [vmem:[%s3682_s1 + $0x1d8] sm:$0xff]  }
  0x62   : > { %2666 = vmatprep.mubr.bf16.mxu0 %v3099_v22 }
  0x63   : > { %2537 = vmatpush3.bf16.msra.mxu1 %v2953_v33 }
  0x64   : > { %2665 = vmatpush3.bf16.msra.mxu0 %v2954_v23  ;;  %2554 = vmatprep.subr.bf16.mxu1 %v2955_v29 }
  0x65   : > { %2682 = vmatprep.subr.bf16.mxu0 %v2956_v35 }
  0x66   : > { %2539 = vmatmul.mubr.bf16.vlgmr.msra.gmra.mrb[0].mxu1 %v3339_v15  ;;  %v2961_v15 = vld [vmem:[%s3682_s1 + $0xd8] sm:$0xff]  }
  0x67   : > { %2667 = vmatmul.mubr.bf16.vlgmr.msra.gmra.mrb[0].mxu0 %v3132_v41  ;;  %2555 = vmatpush3.bf16.msra.mxu1 %v2955_v29 }
  0x68   : > { %2683 = vmatpush3.bf16.msra.mxu0 %v2956_v35  ;;  %2556 = vmatprep.subr.bf16.mxu1 %v2957_v25 }
  0x69   : > { %2684 = vmatprep.subr.bf16.mxu0 %v2958_v39  ;;  %2542 = vmatprep.mubr.bf16.mxu1 %v3366_v49 }
  0x6a   : > { %2670 = vmatprep.mubr.bf16.mxu0 %v3152_v52 }
  0x6b   : > { %2557 = vmatpush3.bf16.msra.mxu1 %v2957_v25 }
  0x6c   : > { %2685 = vmatpush3.bf16.msra.mxu0 %v2958_v39  ;;  %2558 = vmatprep.subr.bf16.mxu1 %v2959_v7 }
  0x6d   : > { %2686 = vmatprep.subr.bf16.mxu0 %v2960_v54 }
  0x6e   : > { %2543 = vmatmul.mubr.bf16.gmra.mrb[4].mxu1 %v3383_v27 }
  0x6f   : > { %2671 = vmatmul.mubr.bf16.gmra.mrb[4].mxu0 %v3171_v62  ;;  %2559 = vmatpush3.bf16.msra.mxu1 %v2959_v7 }
  0x70   : > { %2687 = vmatpush3.bf16.msra.mxu0 %v2960_v54  ;;  %2560 = vmatprep.subr.bf16.mxu1 %v2961_v15 }
  0x71   : > { %2688 = vmatprep.subr.bf16.mxu0 %v2962_v9  ;;  %2546 = vmatprep.mubr.bf16.mxu1 %v3406_v5 }
  0x72   : > { %2674 = vmatprep.mubr.bf16.mxu0 %v3196_v11 }
  0x73   : > { %2561 = vmatpush3.bf16.msra.mxu1 %v2961_v15 }
  0x74   : > { %2689 = vmatpush3.bf16.msra.mxu0 %v2962_v9  ;;  %2562 = vmatprep.subr.bf16.mxu1 %v2963_v36 }
  0x75   : > { %2690 = vmatprep.subr.bf16.mxu0 %v2964_v55 }
  0x76   : > { %2547 = vmatmul.mubr.bf16.gmra.mrb[8].mxu1 %v3426_v16 }
  0x77   : > { %2675 = vmatmul.mubr.bf16.gmra.mrb[8].mxu0 %v3218_v37  ;;  %2563 = vmatpush3.bf16.msra.mxu1 %v2963_v36 }
  0x78   : > { %2691 = vmatpush3.bf16.msra.mxu0 %v2964_v55  ;;  %2564 = vmatprep.subr.bf16.mxu1 %v2965_v0 }
  0x79   : > { %2692 = vmatprep.subr.bf16.mxu0 %v2966_v44  ;;  %2550 = vmatprep.mubr.bf16.mxu1 %v3449_v58 }
  0x7a   : > { %2678 = vmatprep.mubr.bf16.mxu0 %v3252_v2 }
  0x7b   : > { %2565 = vmatpush3.bf16.msra.mxu1 %v2965_v0 }
  0x7c   : > { %2693 = vmatpush3.bf16.msra.mxu0 %v2966_v44  ;;  %2566 = vmatprep.subr.bf16.mxu1 %v2968_v13 }
  0x7d   : > { %2694 = vmatprep.subr.bf16.mxu0 %v2970_v17 }
  0x7e   : > { %2551 = vmatmul.mubr.bf16.gmra.mrb[12].mxu1 %v3467_v30 }
  0x7f   : > { %2679 = vmatmul.mubr.bf16.gmra.mrb[12].mxu0 %v3411_v10  ;;  %2567 = vmatpush3.bf16.msra.mxu1 %v2968_v13 }
  0x80   : > { %2695 = vmatpush3.bf16.msra.mxu0 %v2970_v17  ;;  %2568 = vmatprep.subr.bf16.mxu1 %v2971_v50 }
  0x81   : > { %2696 = vmatprep.subr.bf16.mxu0 %v2972_v48  ;;  %2570 = vmatprep.mubr.bf16.mxu1 %v3087_v14  ;;  %v2975_v14 = vld [vmem:[%s3682_s1 + $0x210] sm:$0xff]  }
  0x82   : > { %2698 = vmatprep.mubr.bf16.mxu0 %v3173_v63  ;;  %v2980_v63 = vld [vmem:[%s3682_s1 + $0x238] sm:$0xff]  }
  0x83   : > { %2569 = vmatpush3.bf16.msra.mxu1 %v2971_v50 }
  0x84   : > { %2697 = vmatpush3.bf16.msra.mxu0 %v2972_v48  ;;  %2746 = vmatprep.subr.bf16.mxu1 %v2973_v24 }
  0x85   : > { %2714 = vmatprep.subr.bf16.mxu0 %v2973_v24 }
  0x86   : > { %2571 = vmatmul.mubr.bf16.vlgmr.msra.gmra.mrb[0].mxu1 %v3099_v22  ;;  %v2976_v22 = vld [vmem:[%s3682_s1 + $0x218] sm:$0xff]  }
  0x87   : > { %2699 = vmatmul.mubr.bf16.vlgmr.msra.gmra.mrb[0].mxu0 %v3204_v26  ;;  %2754 = vmatpush3.bf16.msra.mxu1 %v2973_v24 }
  0x88   : > { %2715 = vmatpush3.bf16.msra.mxu0 %v2973_v24  ;;  %2747 = vmatprep.subr.bf16.mxu1 %v2974_v40 }
  0x89   : > { %2716 = vmatprep.subr.bf16.mxu0 %v2974_v40  ;;  %2574 = vmatprep.mubr.bf16.mxu1 %v3132_v41  ;;  %v2977_v41 = vld [vmem:[%s3682_s1 + $0x220] sm:$0xff]  }
  0x8a   : > { %2702 = vmatprep.mubr.bf16.mxu0 %v3232_v43 }
  0x8b   : > { %2755 = vmatpush3.bf16.msra.mxu1 %v2974_v40 }
  0x8c   : > { %2717 = vmatpush3.bf16.msra.mxu0 %v2974_v40  ;;  %2748 = vmatprep.subr.bf16.mxu1 %v2975_v14 }
  0x8d   : > { %2718 = vmatprep.subr.bf16.mxu0 %v2975_v14 }
  0x8e   : > { %2575 = vmatmul.mubr.bf16.gmra.mrb[4].mxu1 %v3152_v52  ;;  %v2978_v52 = vld [vmem:[%s3682_s1 + $0x228] sm:$0xff]  }
  0x8f   : > { %2703 = vmatmul.mubr.bf16.gmra.mrb[4].mxu0 %v3258_v6  ;;  %2756 = vmatpush3.bf16.msra.mxu1 %v2975_v14 }
  0x90   : > { %2719 = vmatpush3.bf16.msra.mxu0 %v2975_v14  ;;  %2749 = vmatprep.subr.bf16.mxu1 %v2976_v22 }
  0x91   : > { %2720 = vmatprep.subr.bf16.mxu0 %v2976_v22  ;;  %2578 = vmatprep.mubr.bf16.mxu1 %v3171_v62  ;;  %v2979_v62 = vld [vmem:[%s3682_s1 + $0x230] sm:$0xff]  }
  0x92   : > { %2706 = vmatprep.mubr.bf16.mxu0 %v3280_v42 }
  0x93   : > { %2757 = vmatpush3.bf16.msra.mxu1 %v2976_v22 }
  0x94   : > { %2721 = vmatpush3.bf16.msra.mxu0 %v2976_v22  ;;  %2750 = vmatprep.subr.bf16.mxu1 %v2977_v41 }
  0x95   : > { %2722 = vmatprep.subr.bf16.mxu0 %v2977_v41 }
  0x96   : > { %2579 = vmatmul.mubr.bf16.gmra.mrb[8].mxu1 %v3196_v11 }
  0x97   : > { %2707 = vmatmul.mubr.bf16.gmra.mrb[8].mxu0 %v3299_v8  ;;  %2758 = vmatpush3.bf16.msra.mxu1 %v2977_v41 }
  0x98   : > { %2723 = vmatpush3.bf16.msra.mxu0 %v2977_v41  ;;  %2751 = vmatprep.subr.bf16.mxu1 %v2978_v52 }
  0x99   : > { %2724 = vmatprep.subr.bf16.mxu0 %v2978_v52  ;;  %2582 = vmatprep.mubr.bf16.mxu1 %v3218_v37 }
  0x9a   : > { %2710 = vmatprep.mubr.bf16.mxu0 %v3322_v38 }
  0x9b   : > { %2759 = vmatpush3.bf16.msra.mxu1 %v2978_v52 }
  0x9c   : > { %2725 = vmatpush3.bf16.msra.mxu0 %v2978_v52  ;;  %2752 = vmatprep.subr.bf16.mxu1 %v2979_v62 }
  0x9d   : > { %2726 = vmatprep.subr.bf16.mxu0 %v2979_v62 }
  0x9e   : > { %2583 = vmatmul.mubr.bf16.gmra.mrb[12].mxu1 %v3252_v2 }
  0x9f   : > { %2711 = vmatmul.mubr.bf16.gmra.mrb[12].mxu0 %v1709_v47  ;;  %2760 = vmatpush3.bf16.msra.mxu1 %v2979_v62 }
  0xa0   : > { %2727 = vmatpush3.bf16.msra.mxu0 %v2979_v62  ;;  %2753 = vmatprep.subr.bf16.mxu1 %v2980_v63 }
  0xa1   : > { %2728 = vmatprep.subr.bf16.mxu0 %v2980_v63  ;;  %2730 = vmatprep.mubr.bf16.mxu0 %v3366_v49 }
  0xa2   : > { %2738 = vmatprep.mubr.bf16.mxu1 %v3449_v58 }
  0xa3   : > { %2761 = vmatpush3.bf16.msra.mxu1 %v2980_v63 }
  0xa4   : > { %2729 = vmatpush3.bf16.msra.mxu0 %v2980_v63 }
  0xa6   : > { %2739 = vmatmul.mubr.bf16.vlgmr.msra.gmra.mrb[16].mxu1 %v3467_v30 }
  0xa7   : > { %2731 = vmatmul.mubr.bf16.vlgmr.msra.gmra.mrb[0].mxu0 %v3383_v27  ;;  %2742 = vmatprep.mubr.bf16.mxu1 %v3490_v56 }
  0xa8   : > { %2734 = vmatprep.mubr.bf16.mxu0 %v3406_v5 }
  0xae   : > { %2743 = vmatmul.mubr.bf16.gmra.mrb[20].mxu1 %v1878_v1 }
  0xaf   : > { %2735 = vmatmul.mubr.bf16.gmra.mrb[4].mxu0 %v3426_v16 }
 0x159   : > { %v2572_v11 = vpop.f32.mrb[0].mxu1 }
 0x15a   : > { %v1117_v26 = vpop.f32.mrb[1].mxu1 }
 0x15b   : > { %v2573_v37 = vpop.f32.mrb[2].mxu1 }
 0x15c   : > { %v1120_v43 = vpop.f32.mrb[3].mxu1 }
 0x161   : > { %v3618_v2 = vpop.f32.mrb[4].mxu1 }
 0x162   : > { %v3620_v6 = vpop.f32.mrb[5].mxu1 }
 0x163   : > { %v3622_v42 = vpop.f32.mrb[6].mxu1 }
 0x164   : > { %v3624_v8 = vpop.f32.mrb[7].mxu1 }
 0x169   : > { %v2580_v38 = vpop.f32.mrb[8].mxu1 }
 0x16a   : > { %v2708_v49 = vpop.f32.mrb[8].mxu0  ;;  %v1149_v27 = vpop.f32.mrb[9].mxu1 }
 0x16b   : > { %v2770_v5 = vadd.f32 %v2708_v49, %v2580_v38  ;;  %v1824_v10 = vpop.f32.mrb[9].mxu0  ;;  %v2581_v46 = vpop.f32.mrb[10].mxu1 }
 0x16c   : > { %v2772_v16 = vadd.f32 %v1824_v10, %v1149_v27  ;;  %v2709_v51 = vpop.f32.mrb[10].mxu0  ;;  %v1152_v58 = vpop.f32.mrb[11].mxu1 }
 0x16d   : > { %v2774_v59 = vadd.f32 %v2709_v51, %v2581_v46  ;;  %v1827_v28 = vpop.f32.mrb[11].mxu0 }
 0x16e   : > { %v2776_v19 = vadd.f32 %v1827_v28, %v1152_v58 }
 0x171   : > { %v2584_v12 = vpop.f32.mrb[12].mxu1 }
 0x172   : > { %v2712_v45 = vpop.f32.mrb[12].mxu0  ;;  %v1165_v57 = vpop.f32.mrb[13].mxu1 }
 0x173   : > { %v2778_v53 = vadd.f32 %v2712_v45, %v2584_v12  ;;  %v1840_v60 = vpop.f32.mrb[13].mxu0  ;;  %v2585_v61 = vpop.f32.mrb[14].mxu1 }
 0x174   : > { %v2780_v30 = vadd.f32 %v1840_v60, %v1165_v57  ;;  %v2713_v31 = vpop.f32.mrb[14].mxu0  ;;  %v1168_v18 = vpop.f32.mrb[15].mxu1 }
 0x175   : > { %v2782_v20 = vadd.f32 %v2713_v31, %v2585_v61  ;;  %v1843_v3 = vpop.f32.mrb[15].mxu0 }
 0x176   : > { %v2784_v34 = vadd.f32 %v1843_v3, %v1168_v18 }
 0x179   : > { %v2740_v21 = vpop.f32.mrb[16].mxu1 }
 0x17a   : > { %v2732_v4 = vpop.f32.mrb[0].mxu0  ;;  %v3632_v32 = vadd.f32 %v2770_v5, %v2740_v21  ;;  %v1993_v47 = vpop.f32.mrb[17].mxu1 }
 0x17b   : > { %v2762_v1 = vadd.f32 %v2732_v4, %v2572_v11  ;;  %v1961_v56 = vpop.f32.mrb[1].mxu0  ;;  %v3634_v33 = vadd.f32 %v2772_v16, %v1993_v47  ;;  %v2741_v23 = vpop.f32.mrb[18].mxu1 }
 0x17c   : > { %2050 = vst [vmem:[%s3630_s7 + $0x50] sm:$0xff] %v3632_v32  ;;  %v2763_v29 = vadd.f32 %v1961_v56, %v1117_v26  ;;  %v2733_v35 = vpop.f32.mrb[2].mxu0  ;;  %v3638_v25 = vadd.f32 %v2774_v59, %v2741_v23  ;;  %v1996_v39 = vpop.f32.mrb[19].mxu1  ;;  %v2088_v31 = vmul.f32 %v3632_v32, %v3632_v32 }
 0x17d   : > { %2042 = vst [vmem:[%s3630_s7 + $0x10] sm:$0xff] %v2762_v1  ;;  %2048 = vst [vmem:[%s3630_s7 + $0x40] sm:$0xff] %v3634_v33  ;;  %v2764_v7 = vadd.f32 %v2733_v35, %v2573_v37  ;;  %v1964_v54 = vpop.f32.mrb[3].mxu0  ;;  %v2777_v15 = vadd.f32 %v2776_v19, %v1996_v39  ;;  %v2080_v13 = vmul.f32 %v2762_v1, %v2762_v1 }
 0x17e   : > { %2040 = vst [vmem:[%s3630_s7] sm:$0xff] %v2763_v29  ;;  %2051 = vst [vmem:[%s3630_s7 + $0x58] sm:$0xff] %v3638_v25  ;;  %v2765_v9 = vadd.f32 %v1964_v54, %v1120_v43  ;;  %v2078_v36 = vmul.f32 %v2763_v29, %v2763_v29  ;;  %v2086_v57 = vmul.f32 %v3634_v33, %v3634_v33 }
 0x17f   : > { %2043 = vst [vmem:[%s3630_s7 + $0x18] sm:$0xff] %v2764_v7  ;;  %2049 = vst [vmem:[%s3630_s7 + $0x48] sm:$0xff] %v2777_v15  ;;  %v2081_v62 = vmul.f32 %v2764_v7, %v2764_v7  ;;  %v2087_v60 = vmul.f32 %v2777_v15, %v2777_v15  ;;  %v2089_v3 = vmul.f32 %v3638_v25, %v3638_v25 }
 0x180   : > { %2041 = vst [vmem:[%s3630_s7 + $0x8] sm:$0xff] %v2765_v9  ;;  %v2056_v55 = vadd.f32 %v2765_v9, %v2763_v29  ;;  %v2079_v0 = vmul.f32 %v2765_v9, %v2765_v9 }
 0x181   : > { %v2744_v44 = vpop.f32.mrb[20].mxu1 }
 0x182   : > { %v2057_v17 = vadd.f32 %v2762_v1, %v2056_v55  ;;  %v2094_v50 = vadd.f32 %v2079_v0, %v2078_v36  ;;  %v2736_v48 = vpop.f32.mrb[4].mxu0  ;;  %v2779_v24 = vadd.f32 %v2778_v53, %v2744_v44  ;;  %v2009_v40 = vpop.f32.mrb[21].mxu1 }
 0x183   : > { %v2766_v14 = vadd.f32 %v2736_v48, %v3618_v2  ;;  %v1977_v22 = vpop.f32.mrb[5].mxu0  ;;  %v2781_v41 = vadd.f32 %v2780_v30, %v2009_v40  ;;  %v2745_v52 = vpop.f32.mrb[22].mxu1 }
 0x184   : > { %v2095_v63 = vadd.f32 %v2094_v50, %v2080_v13  ;;  %2054 = vst [vmem:[%s3630_s7 + $0x70] sm:$0xff] %v2779_v24  ;;  %v2767_v11 = vadd.f32 %v1977_v22, %v3620_v6  ;;  %v2058_v26 = vadd.f32 %v2764_v7, %v2057_v17  ;;  %v2737_v37 = vpop.f32.mrb[6].mxu0  ;;  %v2012_v43 = vpop.f32.mrb[23].mxu1  ;;  %v2783_v38 = vadd.f32 %v2782_v20, %v2745_v52 }
 0x185   : > { %2046 = vst [vmem:[%s3630_s7 + $0x30] sm:$0xff] %v2766_v14  ;;  %2052 = vst [vmem:[%s3630_s7 + $0x60] sm:$0xff] %v2781_v41  ;;  %v2768_v2 = vadd.f32 %v2737_v37, %v3622_v42  ;;  %v1980_v49 = vpop.f32.mrb[7].mxu0  ;;  %v2785_v6 = vadd.f32 %v2784_v34, %v2012_v43  ;;  %v2084_v59 = vmul.f32 %v2766_v14, %v2766_v14 }
 0x186   : > { %2044 = vst [vmem:[%s3630_s7 + $0x20] sm:$0xff] %v2767_v11  ;;  %v2059_v27 = vadd.f32 %v2767_v11, %v2058_v26  ;;  %v2082_v5 = vmul.f32 %v2767_v11, %v2767_v11  ;;  %v2096_v10 = vadd.f32 %v2095_v63, %v2081_v62  ;;  %v2769_v46 = vadd.f32 %v1980_v49, %v3624_v8 }
 0x187   : > { %2047 = vst [vmem:[%s3630_s7 + $0x38] sm:$0xff] %v2768_v2  ;;  %2055 = vst [vmem:[%s3630_s7 + $0x78] sm:$0xff] %v2783_v38  ;;  %v2085_v42 = vmul.f32 %v2768_v2, %v2768_v2  ;;  %v2090_v4 = vmul.f32 %v2781_v41, %v2781_v41  ;;  %v2092_v29 = vmul.f32 %v2779_v24, %v2779_v24 }
 0x188   : > { %v2097_v16 = vadd.f32 %v2096_v10, %v2082_v5  ;;  %2045 = vst [vmem:[%s3630_s7 + $0x28] sm:$0xff] %v2769_v46  ;;  %v2060_v51 = vadd.f32 %v2769_v46, %v2059_v27  ;;  %v2083_v58 = vmul.f32 %v2769_v46, %v2769_v46  ;;  %2053 = vst [vmem:[%s3630_s7 + $0x68] sm:$0xff] %v2785_v6 }
 0x189   : > { %v2093_v7 = vmul.f32 %v2783_v38, %v2783_v38 }
 0x18a   : > { %v2061_v28 = vadd.f32 %v2766_v14, %v2060_v51  ;;  %v2098_v19 = vadd.f32 %v2097_v16, %v2083_v58 }
 0x18c   : > { %v2062_v12 = vadd.f32 %v2768_v2, %v2061_v28  ;;  %v2099_v45 = vadd.f32 %v2098_v19, %v2084_v59 }
 0x18e   : > { %v2063_v53 = vadd.f32 %v3634_v33, %v2062_v12  ;;  %v2100_v8 = vadd.f32 %v2099_v45, %v2085_v42  ;;  %v2091_v33 = vmul.f32 %v2785_v6, %v2785_v6 }
 0x190   : > { %v2101_v61 = vadd.f32 %v2100_v8, %v2086_v57  ;;  %v2064_v30 = vadd.f32 %v2777_v15, %v2063_v53 }
 0x192   : > { %v2065_v18 = vadd.f32 %v3632_v32, %v2064_v30  ;;  %v2102_v20 = vadd.f32 %v2101_v61, %v2087_v60 }
 0x194   : > { %v2066_v34 = vadd.f32 %v3638_v25, %v2065_v18  ;;  %v2103_v21 = vadd.f32 %v2102_v20, %v2088_v31 }
 0x196   : > { %v2067_v47 = vadd.f32 %v2781_v41, %v2066_v34  ;;  %v2104_v1 = vadd.f32 %v2103_v21, %v2089_v3 }
 0x198   : > { %v2068_v56 = vadd.f32 %v2785_v6, %v2067_v47  ;;  %v2105_v23 = vadd.f32 %v2104_v1, %v2090_v4 }
 0x19a   : > { %v2069_v35 = vadd.f32 %v2779_v24, %v2068_v56  ;;  %v2106_v39 = vadd.f32 %v2105_v23, %v2091_v33 }
 0x19c   : > { %v2070_v32 = vadd.f32 %v2783_v38, %v2069_v35  ;;  %v2107_v54 = vadd.f32 %v2106_v39, %v2092_v29 }
 0x19e   : > { %v2071_v15 = vrot.slane %v2070_v32, 4  ;;  %v2108_v9 = vadd.f32 %v2107_v54, %v2093_v7 }
 0x1a0   : > { %v2072_v36 = vadd.f32 %v2071_v15, %v2070_v32  ;;  %v2109_v55 = vrot.slane %v2108_v9, 4 }
 0x1a2   : > { %v2073_v25 = vrot.slane %v2072_v36, 2  ;;  %v2110_v0 = vadd.f32 %v2109_v55, %v2108_v9 }
 0x1a4   : > { %v2074_v44 = vadd.f32 %v2073_v25, %v2072_v36  ;;  %v2111_v13 = vrot.slane %v2110_v0, 2 }
 0x1a6   : > { %v2075_v17 = vrot.slane %v2074_v44, 1  ;;  %v2112_v50 = vadd.f32 %v2111_v13, %v2110_v0 }
 0x1a8   : > { %v2076_v48 = vadd.f32 %v2075_v17, %v2074_v44  ;;  %v2113_v24 = vrot.slane %v2112_v50, 1 }
 0x1aa   : > { %2077 = vst [vmem:[%s212_s10] sm:$0x1] %v2076_v48  ;;  %v2114_v40 = vadd.f32 %v2113_v24, %v2112_v50 }
 0x1ac   : > { %2115 = vst [vmem:[%s215_s13] sm:$0x1] %v2114_v40 }
 0x1ad PF: > { %s15_s15 = sadd.s32 1, %s2997_s15  }
 0x1ae   : > { %p12_p5 = scmp.ge.s32.totalorder %s15_s15, 6  }
 0x1b0   :  { %14 = sbr.rel (!%p12_p5) target bundleno = 1 (0x1), region = 82 }

</bundles_post_ra>
